<compile_context>
chip_gen: v6e
topology: v6e:2x2x1
jax: 0.10.0
libtpu: 0.0.40
codegen_flags: <defaults>
</compile_context>

<pallas_src>
import jax
import jax.numpy as jnp
from jax.experimental import pallas as pl
from jax.experimental.pallas import tpu as pltpu


# MXU operand dtype (accumulation is always f32). bf16 doubles MXU throughput
# on v6e/v7x and halves weight/activation HBM + VMEM traffic.
MATMUL_DTYPE = jnp.bfloat16


def _round_up(x, m):
    return ((x + m - 1) // m) * m


# --------------------------- tiled linear (MXU) -----------------------------

def _linear_kernel_onek(x_ref, w_ref, b_ref, o_ref):
    # Single K tile: no accumulator round trip.
    w = w_ref[...]
    o_ref[...] = (jnp.dot(x_ref[...].astype(w.dtype), w,
                          preferred_element_type=jnp.float32)
                  + b_ref[...]).astype(o_ref.dtype)


def _linear_kernel_acc(x_ref, w_ref, b_ref, o_ref, acc_ref):
    @pl.when(pl.program_id(2) == 0)
    def _():
        acc_ref[...] = jnp.zeros_like(acc_ref)

    w = w_ref[...]
    acc_ref[...] += jnp.dot(x_ref[...].astype(w.dtype), w,
                            preferred_element_type=jnp.float32)

    @pl.when(pl.program_id(2) == pl.num_programs(2) - 1)
    def _():
        o_ref[...] = (acc_ref[...] + b_ref[...]).astype(o_ref.dtype)


def linear(x2d, w, b, *, out_dtype=jnp.float32, tm=256, tn=256, tk=512):
    """(M, K) @ (K, N) + (N,) -> (M, N) in `out_dtype`.

    Tiles fall back to the full dimension when smaller than the tile (valid
    block shapes without padding); otherwise inputs are zero-padded (exact for
    a matmul) and the result is sliced back.  The in-kernel astype is a no-op
    when x is already in the weight dtype (bf16 activations).
    """
    M, K = x2d.shape
    Kw, N = w.shape
    assert K == Kw
    bm = M if M <= tm else tm
    bk = K if K <= tk else tk
    bn = N if N <= tn else tn
    Mp, Kp, Np = _round_up(M, bm), _round_up(K, bk), _round_up(N, bn)
    xp = x2d if (Mp, Kp) == (M, K) else jnp.pad(x2d, ((0, Mp - M), (0, Kp - K)))
    wp = w if (Kp, Np) == (K, N) else jnp.pad(w, ((0, Kp - K), (0, Np - N)))
    bp = (b if Np == N else jnp.pad(b, (0, Np - N)))
    bp = bp.reshape(1, Np).astype(jnp.float32)

    if Kp == bk:
        out = pl.pallas_call(
            _linear_kernel_onek,
            out_shape=jax.ShapeDtypeStruct((Mp, Np), out_dtype),
            grid_spec=pltpu.PrefetchScalarGridSpec(
                num_scalar_prefetch=0,
                grid=(Mp // bm, Np // bn),
                in_specs=[
                    pl.BlockSpec((bm, bk), lambda i, j: (i, 0)),
                    pl.BlockSpec((bk, bn), lambda i, j: (0, j)),
                    pl.BlockSpec((1, bn), lambda i, j: (0, j)),
                ],
                out_specs=pl.BlockSpec((bm, bn), lambda i, j: (i, j)),
            ),
            compiler_params=pltpu.CompilerParams(
                dimension_semantics=("parallel", "parallel")),
        )(xp, wp, bp)
    else:
        out = pl.pallas_call(
            _linear_kernel_acc,
            out_shape=jax.ShapeDtypeStruct((Mp, Np), out_dtype),
            grid_spec=pltpu.PrefetchScalarGridSpec(
                num_scalar_prefetch=0,
                grid=(Mp // bm, Np // bn, Kp // bk),
                in_specs=[
                    pl.BlockSpec((bm, bk), lambda i, j, k: (i, k)),
                    pl.BlockSpec((bk, bn), lambda i, j, k: (k, j)),
                    pl.BlockSpec((1, bn), lambda i, j, k: (0, j)),
                ],
                out_specs=pl.BlockSpec((bm, bn), lambda i, j, k: (i, j)),
                scratch_shapes=[pltpu.VMEM((bm, bn), jnp.float32)],
            ),
            compiler_params=pltpu.CompilerParams(
                dimension_semantics=("parallel", "parallel", "arbitrary")),
        )(xp, wp, bp)
    return out if (Mp, Np) == (M, N) else out[:M, :N]


# -------------------- dual linear (x1@W1 + x2@W2 + b) -----------------------

def _dual_linear_kernel(x1_ref, w1_ref, x2_ref, w2_ref, b_ref, o_ref):
    w1 = w1_ref[...]
    w2 = w2_ref[...]
    acc = jnp.dot(x1_ref[...].astype(w1.dtype), w1,
                  preferred_element_type=jnp.float32)
    acc = acc + jnp.dot(x2_ref[...].astype(w2.dtype), w2,
                        preferred_element_type=jnp.float32)
    o_ref[...] = (acc + b_ref[...]).astype(o_ref.dtype)


def dual_linear(x1, w1, x2, w2, b, *, out_dtype=jnp.float32, tm=256, tn=256):
    """x1 @ w1 + x2 @ w2 + b, with each K loaded as a single tile.

    Replaces concat([h_fwd, h_bwd]) @ w_lin: no HBM concat of the encoder
    output is needed (w_lin is split per direction at param-prep time).
    """
    M, K1 = x1.shape
    M2, K2 = x2.shape
    Kw1, N = w1.shape
    assert M == M2 and Kw1 == K1 and w2.shape == (K2, N)
    bm = M if M <= tm else tm
    bn = N if N <= tn else tn
    Mp, Np = _round_up(M, bm), _round_up(N, bn)
    x1p = x1 if Mp == M else jnp.pad(x1, ((0, Mp - M), (0, 0)))
    x2p = x2 if Mp == M else jnp.pad(x2, ((0, Mp - M), (0, 0)))
    w1p = w1 if Np == N else jnp.pad(w1, ((0, 0), (0, Np - N)))
    w2p = w2 if Np == N else jnp.pad(w2, ((0, 0), (0, Np - N)))
    bp = (b if Np == N else jnp.pad(b, (0, Np - N)))
    bp = bp.reshape(1, Np).astype(jnp.float32)

    out = pl.pallas_call(
        _dual_linear_kernel,
        out_shape=jax.ShapeDtypeStruct((Mp, Np), out_dtype),
        grid_spec=pltpu.PrefetchScalarGridSpec(
            num_scalar_prefetch=0,
            grid=(Mp // bm, Np // bn),
            in_specs=[
                pl.BlockSpec((bm, K1), lambda i, j: (i, 0)),
                pl.BlockSpec((K1, bn), lambda i, j: (0, j)),
                pl.BlockSpec((bm, K2), lambda i, j: (i, 0)),
                pl.BlockSpec((K2, bn), lambda i, j: (0, j)),
                pl.BlockSpec((1, bn), lambda i, j: (0, j)),
            ],
            out_specs=pl.BlockSpec((bm, bn), lambda i, j: (i, j)),
        ),
        compiler_params=pltpu.CompilerParams(
            dimension_semantics=("parallel", "parallel")),
    )(x1p, w1p, x2p, w2p, bp)
    return out if (Mp, Np) == (M, N) else out[:M, :N]


# --------------- fused bidirectional GRU recurrence (one kernel) ------------

def _make_bigru_kernel(T_real, Tb, nTb, Hp, unroll):
    needs_mask = (Tb * nTb != T_real)   # padded timesteps present?

    def kernel(gxf_ref, gxb_ref, whf_ref, whb_ref, bhf_ref, bhb_ref,
               of_ref, ob_ref, hf_ref, hb_ref):
        """One time-block grid step; both directions per timestep.

        gxf_ref : (Tb, B, 3*Hp) bf16  forward  x-side gates, time block t
        gxb_ref : (Tb, B, 3*Hp) bf16  backward x-side gates, time block nTb-1-t
        whf/whb : (Hp, 3*Hp)          hidden-to-hidden weights (resident)
        bhf/bhb : (1, 3*Hp) f32       hidden biases
        of/ob   : (Tb, B, Hp) bf16    per-direction hidden outputs
        hf/hb   : (B, Hp) f32         carried hidden states (VMEM scratch)
        """
        t = pl.program_id(0)

        @pl.when(t == 0)
        def _():
            hf_ref[...] = jnp.zeros_like(hf_ref)
            hb_ref[...] = jnp.zeros_like(hb_ref)

        whf = whf_ref[...]
        whb = whb_ref[...]
        bhf = bhf_ref[...]
        bhb = bhb_ref[...]

        def gru_cell(gx, gh, h_prev):
            r = jax.nn.sigmoid(gx[:, :Hp] + gh[:, :Hp])
            z = jax.nn.sigmoid(gx[:, Hp:2 * Hp] + gh[:, Hp:2 * Hp])
            n = jnp.tanh(gx[:, 2 * Hp:] + r * gh[:, 2 * Hp:])
            return (1.0 - z) * n + z * h_prev

        def step(i, carry):
            hf, hb = carry
            ib = Tb - 1 - i                       # backward walks its block in reverse
            gxf = gxf_ref[i].astype(jnp.float32)
            gxb = gxb_ref[ib].astype(jnp.float32)
            # two independent MXU chains issued back to back -> latency hiding
            ghf = jnp.dot(hf.astype(whf.dtype), whf,
                          preferred_element_type=jnp.float32) + bhf
            ghb = jnp.dot(hb.astype(whb.dtype), whb,
                          preferred_element_type=jnp.float32) + bhb
            hf_new = gru_cell(gxf, ghf, hf)
            hb_new = gru_cell(gxb, ghb, hb)
            if needs_mask:
                # padded (beyond T_real) timesteps must not update h; for the
                # backward direction they are processed FIRST, so this matters.
                hf_new = jnp.where(t * Tb + i < T_real, hf_new, hf)
                hb_new = jnp.where((nTb - 1 - t) * Tb + ib < T_real, hb_new, hb)
            of_ref[i] = hf_new.astype(of_ref.dtype)
            ob_ref[ib] = hb_new.astype(ob_ref.dtype)
            return hf_new, hb_new

        hf, hb = jax.lax.fori_loop(0, Tb, step, (hf_ref[...], hb_ref[...]),
                                   unroll=unroll)
        hf_ref[...] = hf
        hb_ref[...] = hb

    return kernel


def bigru_recurrence(gates, wh_f, wh_b, bh_f, bh_b, *, T_real,
                     time_block=32, unroll=8):
    """Both GRU directions fused per timestep; grid = (ceil(T/Tb),).

    `gates` is (T, B, 6*Hp) in its natural post-matmul layout (forward gate
    columns [0:3Hp], backward [3Hp:6Hp]); no transpose is needed — the two
    in_specs read the same array with mirrored time indices and different
    column blocks.  VMEM/step budget ~ 4*Tb*B*3Hp*2 (gx) + 4*Tb*B*Hp*2 (out)
    bytes double-buffered + 2*Hp*3Hp*2 (weights); Tb=32 is safe on v7x.
    """
    T, B, G6 = gates.shape
    Hp = wh_f.shape[0]
    assert G6 == 6 * Hp
    Tb = min(T_real, time_block)
    Tp = _round_up(T_real, Tb)
    nTb = Tp // Tb
    if Tp != T:
        gates = jnp.pad(gates, ((0, Tp - T), (0, 0), (0, 0)))

    kernel = _make_bigru_kernel(T_real, Tb, nTb, Hp, min(unroll, Tb))
    out_fwd, out_bwd = pl.pallas_call(
        kernel,
        out_shape=(jax.ShapeDtypeStruct((Tp, B, Hp), MATMUL_DTYPE),
                   jax.ShapeDtypeStruct((Tp, B, Hp), MATMUL_DTYPE)),
        grid_spec=pltpu.PrefetchScalarGridSpec(
            num_scalar_prefetch=0,
            grid=(nTb,),
            in_specs=[
                # forward gates: time block t, columns [0:3Hp]
                pl.BlockSpec((Tb, B, 3 * Hp), lambda t: (t, 0, 0)),
                # backward gates: time block nTb-1-t, columns [3Hp:6Hp]
                pl.BlockSpec((Tb, B, 3 * Hp), lambda t: (nTb - 1 - t, 0, 1)),
                pl.BlockSpec((Hp, 3 * Hp), lambda t: (0, 0)),
                pl.BlockSpec((Hp, 3 * Hp), lambda t: (0, 0)),
                pl.BlockSpec((1, 3 * Hp), lambda t: (0, 0)),
                pl.BlockSpec((1, 3 * Hp), lambda t: (0, 0)),
            ],
            out_specs=[pl.BlockSpec((Tb, B, Hp), lambda t: (t, 0, 0)),
                       pl.BlockSpec((Tb, B, Hp), lambda t: (nTb - 1 - t, 0, 0))],
            scratch_shapes=[pltpu.VMEM((B, Hp), jnp.float32),
                            pltpu.VMEM((B, Hp), jnp.float32)],
        ),
        compiler_params=pltpu.CompilerParams(
            # single time axis carries both recurrences -> sequential
            dimension_semantics=("arbitrary",)),
    )(gates, gates, wh_f, wh_b, bh_f, bh_b)
    return out_fwd, out_bwd


# ---------------------- LLM token-embedding gather --------------------------

def _make_embed_kernel(G):
    def kernel(ids_ref, table_ref, o_ref, buf, sems):
        """Gather G table rows per grid step with G concurrent DMAs."""
        base = pl.program_id(0) * G
        copies = []
        for g in range(G):                       # static unroll, G DMAs in flight
            cp = pltpu.make_async_copy(table_ref.at[ids_ref[base + g]],
                                       buf.at[g], sems.at[g])
            cp.start()
            copies.append(cp)
        for cp in copies:
            cp.wait()
        o_ref[...] = buf[...]                    # full-block, lane-dense store
    return kernel


def embed_lookup(ids_flat, table, *, group=16):
    """table[ids]: batched data-dependent row gather.

    ids are scalar-prefetched into SMEM, the table stays in HBM (pl.ANY) and
    G rows are fetched per grid step into a (G, D) VMEM buffer (O(M*D) DMA
    bytes total).  ids are clamped to [0, V) for safety.
    """
    M = ids_flat.shape[0]
    V, D = table.shape
    G = group
    Mp = _round_up(M, G)
    ids = jnp.clip(ids_flat.astype(jnp.int32), 0, V - 1)
    if Mp != M:
        ids = jnp.pad(ids, (0, Mp - M))          # pad with a valid index (0)

    out = pl.pallas_call(
        _make_embed_kernel(G),
        out_shape=jax.ShapeDtypeStruct((Mp, D), table.dtype),
        grid_spec=pltpu.PrefetchScalarGridSpec(
            num_scalar_prefetch=1,
            grid=(Mp // G,),
            in_specs=[pl.BlockSpec(memory_space=pl.ANY)],      # table in HBM
            out_specs=pl.BlockSpec((G, D), lambda i, ids: (i, 0)),
            scratch_shapes=[pltpu.VMEM((G, D), table.dtype),
                            pltpu.SemaphoreType.DMA((G,))],
        ),
        compiler_params=pltpu.CompilerParams(
            # independent blocks -> split across TCs on v7x
            dimension_semantics=("parallel",)),
    )(ids, table)
    return out[:M]


# ----------------------------- parameters ----------------------------------

def init_params(key, F, H, D, V):
    ks = jax.random.split(key, 12)

    def u(k, shape, scale):
        return jax.random.uniform(k, shape, jnp.float32, -1.0, 1.0) * scale

    si = 1.0 / float(F) ** 0.5
    sh = 1.0 / float(H) ** 0.5

    def gru_dir(i):
        # fused gate weights / biases, gate order (r | z | n), torch GRU layout
        return {
            "wx": u(ks[i + 0], (F, 3 * H), sh).astype(MATMUL_DTYPE),
            "wh": u(ks[i + 1], (H, 3 * H), sh).astype(MATMUL_DTYPE),
            "bx": u(ks[i + 2], (3 * H,), sh),
            "bh": u(ks[i + 3], (3 * H,), sh),
        }

    return {
        # BGRU per-session input network (single session key)
        "w_in": u(ks[0], (F, F), si).astype(MATMUL_DTYPE),
        "b_in": u(ks[1], (F,), si),
        "gru_fwd": gru_dir(2),
        "gru_bwd": gru_dir(6),
        # projection linear: torch.nn.init.eye_ on the weight -> identity
        "w_lin": jnp.eye(2 * H, D, dtype=jnp.float32).astype(MATMUL_DTYPE),
        "b_lin": u(ks[10], (D,), 1.0 / float(2 * H) ** 0.5),
        # frozen pretrained LLM token embedding table (f32; gather only)
        "wte": jax.random.normal(ks[11], (V, D), jnp.float32) * 0.02,
    }


def prepare_params(params):
    """One-time weight prep (hoisted out of the jitted forward).

    Pads each GRU gate to Hp (128-lane multiple) so every recurrence store is
    lane-dense, fuses the x-side weights of both directions into one (F, 6Hp)
    matrix, and splits the projection weight per direction with zero rows in
    the padded lanes (exact: padded hidden lanes stay 0 in the recurrence).
    """
    H = params["gru_fwd"]["wh"].shape[0]
    D = params["w_lin"].shape[1]
    Hp = max(_round_up(H, 128), 128)

    def pad_gates(a):
        if Hp == H:
            return a
        lead = a.shape[:-1]
        a3 = a.reshape(lead + (3, H))
        a3 = jnp.pad(a3, [(0, 0)] * (len(lead) + 1) + [(0, Hp - H)])
        return a3.reshape(lead + (3 * Hp,))

    def prep_dir(p):
        wx = pad_gates(p["wx"])                                    # (F, 3Hp)
        bx = pad_gates(p["bx"])                                    # (3Hp,)
        wh = pad_gates(jnp.pad(p["wh"], ((0, Hp - H), (0, 0))))    # (Hp, 3Hp)
        bh = pad_gates(p["bh"]).reshape(1, 3 * Hp)                 # (1, 3Hp)
        return wx, bx, wh, bh

    wx_f, bx_f, wh_f, bh_f = prep_dir(params["gru_fwd"])
    wx_b, bx_b, wh_b, bh_b = prep_dir(params["gru_bwd"])

    w_lin = params["w_lin"].astype(jnp.float32)                    # (2H, D)
    wl_f = jnp.zeros((Hp, D), jnp.float32).at[:H].set(w_lin[:H])
    wl_b = jnp.zeros((Hp, D), jnp.float32).at[:H].set(w_lin[H:2 * H])

    return {
        "w_in": params["w_in"],
        "b_in": params["b_in"],
        "wx_all": jnp.concatenate([wx_f, wx_b], axis=1).astype(MATMUL_DTYPE),
        "bx_all": jnp.concatenate([bx_f, bx_b], axis=0).astype(jnp.float32),
        "wh_fwd": wh_f.astype(MATMUL_DTYPE),
        "wh_bwd": wh_b.astype(MATMUL_DTYPE),
        "bh_fwd": bh_f.astype(jnp.float32),
        "bh_bwd": bh_b.astype(jnp.float32),
        "w_lin_fwd": wl_f.astype(MATMUL_DTYPE),
        "w_lin_bwd": wl_b.astype(MATMUL_DTYPE),
        "b_lin": params["b_lin"],
        "wte": params["wte"],
    }


# ----------------------------- forward --------------------------------------

def brain_gpt_forward(spikepow, labels, prep, pad_token_id=1):
    # Mirrors the reference forward exactly, including its (odd)
    # `labels.dim() == 1 -> spikepow.unsqueeze(-1)` branch.
    if spikepow.ndim == 2:
        spikepow = spikepow[:, None, :]
    if labels.ndim == 1:
        spikepow = spikepow[..., None]
    labels = labels.T                                    # (L, B) -> (B, L)

    T, B, F = spikepow.shape
    Hp = prep["wh_fwd"].shape[0]
    D = prep["w_lin_fwd"].shape[1]

    # pad batch to a full-sublane multiple (gate math / recurrence stores)
    Bp = max(_round_up(B, 8), 8)
    if Bp != B:
        spikepow = jnp.pad(spikepow, ((0, 0), (0, Bp - B), (0, 0)))

    # --- BGRU encoder ---
    # TODO(synk): per-session inputNetworks dict collapsed to one linear.
    x_in = linear(spikepow.reshape(T * Bp, F), prep["w_in"], prep["b_in"],
                  out_dtype=MATMUL_DTYPE)                       # bf16 (T*Bp, F)

    # x-side gate matmul hoisted out of the recurrence; both directions fused.
    gates = linear(x_in, prep["wx_all"], prep["bx_all"],
                   out_dtype=MATMUL_DTYPE)                      # bf16 (T*Bp, 6Hp)
    gates = gates.reshape(T, Bp, 6 * Hp)                        # free reshape

    h_fwd, h_bwd = bigru_recurrence(
        gates, prep["wh_fwd"], prep["wh_bwd"], prep["bh_fwd"], prep["bh_bwd"],
        T_real=T)                                               # (Tp, Bp, Hp) bf16

    h_fwd = h_fwd[:T, :B]
    h_bwd = h_bwd[:T, :B]

    # --- projection linear (identity-initialized weight), concat-free ---
    proj = dual_linear(h_fwd.reshape(T * B, Hp), prep["w_lin_fwd"],
                       h_bwd.reshape(T * B, Hp), prep["w_lin_bwd"],
                       prep["b_lin"])                           # (T*B, D) f32
    spikepow_embeds = jnp.transpose(proj.reshape(T, B, D), (1, 0, 2))

    spikepow_ids = jnp.full((B, T), -100, jnp.int32)

    # --- LLM token embedding of the labels (-100 -> pad_token_id) ---
    labels_ = jnp.where(labels == -100, pad_token_id, labels).astype(jnp.int32)
    Bl, L = labels_.shape
    tgt_embeds = embed_lookup(labels_.reshape(Bl * L),
                              prep["wte"]).reshape(Bl, L, D)

    inputs_embeds = jnp.concatenate([spikepow_embeds, tgt_embeds], axis=1)
    labels_full = jnp.concatenate([spikepow_ids, labels.astype(jnp.int32)],
                                  axis=1)

    # TODO(synk): frozen pretrained LLM decoder forward (self.llm(...)) is not
    # reproducible as a Pallas kernel; return the tensors that would feed it.
    return {"inputs_embeds": inputs_embeds, "labels": labels_full}


# ------------------------ pure-JAX reference (f32) ---------------------------

def _reference_forward(spikepow, labels, params, pad_token_id=1):
    if spikepow.ndim == 2:
        spikepow = spikepow[:, None, :]
    if labels.ndim == 1:
        spikepow = spikepow[..., None]
    labels = labels.T
    T, B, F = spikepow.shape
    H = params["gru_fwd"]["wh"].shape[0]
    D = params["w_lin"].shape[1]
    f32 = lambda a: a.astype(jnp.float32)

    x_in = (spikepow.reshape(T * B, F) @ f32(params["w_in"])
            + params["b_in"]).reshape(T, B, F)

    def gru(x_seq, p):
        wx, wh, bx, bh = f32(p["wx"]), f32(p["wh"]), p["bx"], p["bh"]

        def step(hprev, x):
            gx = x @ wx + bx
            gh = hprev @ wh + bh
            r = jax.nn.sigmoid(gx[:, :H] + gh[:, :H])
            z = jax.nn.sigmoid(gx[:, H:2 * H] + gh[:, H:2 * H])
            n = jnp.tanh(gx[:, 2 * H:] + r * gh[:, 2 * H:])
            h_new = (1.0 - z) * n + z * hprev
            return h_new, h_new

        h0 = jnp.zeros((x_seq.shape[1], H), jnp.float32)
        return jax.lax.scan(step, h0, x_seq)[1]

    h_fwd = gru(x_in, params["gru_fwd"])
    h_bwd = gru(x_in[::-1], params["gru_bwd"])[::-1]
    enc = jnp.transpose(jnp.concatenate([h_fwd, h_bwd], axis=-1), (1, 0, 2))

    spikepow_embeds = (enc.reshape(B * T, 2 * H) @ f32(params["w_lin"])
                       + params["b_lin"]).reshape(B, T, D)
    labels_ = jnp.where(labels == -100, pad_token_id, labels).astype(jnp.int32)
    tgt_embeds = params["wte"][labels_]
    inputs_embeds = jnp.concatenate([spikepow_embeds, tgt_embeds], axis=1)
    labels_full = jnp.concatenate(
        [jnp.full((B, T), -100, jnp.int32), labels.astype(jnp.int32)], axis=1)
    return {"inputs_embeds": inputs_embeds, "labels": labels_full}


# ------------------------------- main ----------------------------------------

if __name__ == "__main__":
    key = jax.random.PRNGKey(0)
    T, B, F, H, D, V, L = 8, 2, 16, 32, 64, 50, 6

    kp, kx, kl = jax.random.split(key, 3)
    params = init_params(kp, F, H, D, V)
    prep = prepare_params(params)          # one-time weight prep (outside jit)

    spikepow = jax.random.normal(kx, (T, B, F), jnp.float32)
    labels = jax.random.randint(kl, (L, B), 0, V)
    labels = labels.at[-1, :].set(-100)    # a few ignored positions

    fwd = jax.jit(brain_gpt_forward)
    out = jax.block_until_ready(fwd(spikepow, labels, prep))

    assert out["inputs_embeds"].shape == (B, T + L, D)
    assert out["labels"].shape == (B, T + L)

    # correctness check vs a pure-JAX f32 reference (loose tolerance since the
    # kernels use bf16 MXU operands / bf16 intermediates with f32 accumulation)
    ref = _reference_forward(spikepow, labels, params)
    err = float(jnp.max(jnp.abs(out["inputs_embeds"] - ref["inputs_embeds"])))
    assert err < 5e-2, f"inputs_embeds mismatch vs reference: max abs err {err}"
    assert bool(jnp.all(out["labels"] == ref["labels"]))

    print("KERNEL_OK")
</pallas_src>

<mosaic_0001>
module attributes {stable_mosaic.version = 11 : i64} {
  func.func @_linear_kernel_onek(%arg0: i32, %arg1: i32, %arg2: memref<64x16xf32, #tpu.memory_space<vmem>>, %arg3: memref<16x16xbf16, #tpu.memory_space<vmem>>, %arg4: memref<1x16xf32, #tpu.memory_space<vmem>>, %arg5: memref<64x16xbf16, #tpu.memory_space<vmem>>) attributes {dimension_semantics = [#tpu.dimension_semantics<parallel>, #tpu.dimension_semantics<parallel>], iteration_bounds = array<i64: 1, 1>, scalar_prefetch = 0 : i64, scratch_operands = 0 : i64, tpu.core_type = #tpu.core_type<tc>, window_params = [{transform_indices = @transform_0, window_bounds = array<i64: 64, 16>}, {transform_indices = @transform_1, window_bounds = array<i64: 16, 16>}, {transform_indices = @transform_2, window_bounds = array<i64: 1, 16>}, {transform_indices = @transform_3, window_bounds = array<i64: 64, 16>}]} {
    %c0 = arith.constant 0 : index
    %c0_0 = arith.constant 0 : index
    %0 = vector.load %arg3[%c0, %c0_0] : memref<16x16xbf16, #tpu.memory_space<vmem>>, vector<16x16xbf16>
    %c0_1 = arith.constant 0 : index
    %c0_2 = arith.constant 0 : index
    %1 = vector.load %arg2[%c0_1, %c0_2] : memref<64x16xf32, #tpu.memory_space<vmem>>, vector<64x16xf32>
    %2 = arith.truncf %1 : vector<64x16xf32> to vector<64x16xbf16>
    %cst = arith.constant dense<0.000000e+00> : vector<64x16xf32>
    %3 = tpu.matmul %2, %0, %cst {dimension_numbers = #tpu.dot_dimension_numbers<[1], [0], [0], [1], [0, 0, 1, 1], [], []>} : vector<64x16xbf16>, vector<16x16xbf16>, vector<64x16xf32> -> vector<64x16xf32>
    %c0_3 = arith.constant 0 : index
    %c0_4 = arith.constant 0 : index
    %4 = vector.load %arg4[%c0_3, %c0_4] : memref<1x16xf32, #tpu.memory_space<vmem>>, vector<1x16xf32>
    %5 = vector.broadcast %4 : vector<1x16xf32> to vector<64x16xf32>
    %6 = arith.addf %3, %5 : vector<64x16xf32>
    %7 = arith.truncf %6 : vector<64x16xf32> to vector<64x16xbf16>
    %c0_5 = arith.constant 0 : index
    %c0_6 = arith.constant 0 : index
    %8 = vector.load %arg5[%c0_5, %c0_6] : memref<64x16xbf16, #tpu.memory_space<vmem>>, vector<64x16xbf16>
    tpu.vector_store %arg5[%c0_5, %c0_6], %7 {strides = array<i32>} : memref<64x16xbf16, #tpu.memory_space<vmem>>, vector<64x16xbf16>,
    return
  }
  func.func @transform_0(%arg0: i32, %arg1: i32) -> (i32, i32) {
    %c0_i32 = arith.constant 0 : i32
    %c0_i32_0 = arith.constant 0 : i32
    return %arg0, %c0_i32 : i32, i32
  }
  func.func @transform_1(%arg0: i32, %arg1: i32) -> (i32, i32) {
    %c0_i32 = arith.constant 0 : i32
    %c0_i32_0 = arith.constant 0 : i32
    return %c0_i32, %arg1 : i32, i32
  }
  func.func @transform_2(%arg0: i32, %arg1: i32) -> (i32, i32) {
    %c0_i32 = arith.constant 0 : i32
    %c0_i32_0 = arith.constant 0 : i32
    return %c0_i32, %arg1 : i32, i32
  }
  func.func @transform_3(%arg0: i32, %arg1: i32) -> (i32, i32) {
    %c0_i32 = arith.constant 0 : i32
    return %arg0, %arg1 : i32, i32
  }
}

module attributes {stable_mosaic.version = 11 : i64} {
  func.func @_linear_kernel_onek(%arg0: i32, %arg1: i32, %arg2: memref<64x16xbf16, #tpu.memory_space<vmem>>, %arg3: memref<16x256xbf16, #tpu.memory_space<vmem>>, %arg4: memref<1x256xf32, #tpu.memory_space<vmem>>, %arg5: memref<64x256xbf16, #tpu.memory_space<vmem>>) attributes {dimension_semantics = [#tpu.dimension_semantics<parallel>, #tpu.dimension_semantics<parallel>], iteration_bounds = array<i64: 1, 3>, scalar_prefetch = 0 : i64, scratch_operands = 0 : i64, tpu.core_type = #tpu.core_type<tc>, window_params = [{transform_indices = @transform_0, window_bounds = array<i64: 64, 16>}, {transform_indices = @transform_1, window_bounds = array<i64: 16, 256>}, {transform_indices = @transform_2, window_bounds = array<i64: 1, 256>}, {transform_indices = @transform_3, window_bounds = array<i64: 64, 256>}]} {
    %c0 = arith.constant 0 : index
    %c0_0 = arith.constant 0 : index
    %0 = vector.load %arg3[%c0, %c0_0] : memref<16x256xbf16, #tpu.memory_space<vmem>>, vector<16x256xbf16>
    %c0_1 = arith.constant 0 : index
    %c0_2 = arith.constant 0 : index
    %1 = vector.load %arg2[%c0_1, %c0_2] : memref<64x16xbf16, #tpu.memory_space<vmem>>, vector<64x16xbf16>
    %cst = arith.constant dense<0.000000e+00> : vector<64x256xf32>
    %2 = tpu.matmul %1, %0, %cst {dimension_numbers = #tpu.dot_dimension_numbers<[1], [0], [0], [1], [0, 0, 1, 1], [], []>} : vector<64x16xbf16>, vector<16x256xbf16>, vector<64x256xf32> -> vector<64x256xf32>
    %c0_3 = arith.constant 0 : index
    %c0_4 = arith.constant 0 : index
    %3 = vector.load %arg4[%c0_3, %c0_4] : memref<1x256xf32, #tpu.memory_space<vmem>>, vector<1x256xf32>
    %4 = vector.broadcast %3 : vector<1x256xf32> to vector<64x256xf32>
    %5 = arith.addf %2, %4 : vector<64x256xf32>
    %6 = arith.truncf %5 : vector<64x256xf32> to vector<64x256xbf16>
    %c0_5 = arith.constant 0 : index
    %c0_6 = arith.constant 0 : index
    %7 = vector.load %arg5[%c0_5, %c0_6] : memref<64x256xbf16, #tpu.memory_space<vmem>>, vector<64x256xbf16>
    tpu.vector_store %arg5[%c0_5, %c0_6], %6 {strides = array<i32>} : memref<64x256xbf16, #tpu.memory_space<vmem>>, vector<64x256xbf16>,
    return
  }
  func.func @transform_0(%arg0: i32, %arg1: i32) -> (i32, i32) {
    %c0_i32 = arith.constant 0 : i32
    %c0_i32_0 = arith.constant 0 : i32
    return %arg0, %c0_i32 : i32, i32
  }
  func.func @transform_1(%arg0: i32, %arg1: i32) -> (i32, i32) {
    %c0_i32 = arith.constant 0 : i32
    %c0_i32_0 = arith.constant 0 : i32
    return %c0_i32, %arg1 : i32, i32
  }
  func.func @transform_2(%arg0: i32, %arg1: i32) -> (i32, i32) {
    %c0_i32 = arith.constant 0 : i32
    %c0_i32_0 = arith.constant 0 : i32
    return %c0_i32, %arg1 : i32, i32
  }
  func.func @transform_3(%arg0: i32, %arg1: i32) -> (i32, i32) {
    %c0_i32 = arith.constant 0 : i32
    return %arg0, %arg1 : i32, i32
  }
}

module attributes {stable_mosaic.version = 11 : i64} {
  func.func @kernel(%arg0: i32, %arg1: memref<8x8x384xbf16, #tpu.memory_space<vmem>>, %arg2: memref<8x8x384xbf16, #tpu.memory_space<vmem>>, %arg3: memref<128x384xbf16, #tpu.memory_space<vmem>>, %arg4: memref<128x384xbf16, #tpu.memory_space<vmem>>, %arg5: memref<1x384xf32, #tpu.memory_space<vmem>>, %arg6: memref<1x384xf32, #tpu.memory_space<vmem>>, %arg7: memref<8x8x128xbf16, #tpu.memory_space<vmem>>, %arg8: memref<8x8x128xbf16, #tpu.memory_space<vmem>>, %arg9: memref<8x128xf32, #tpu.memory_space<vmem>>, %arg10: memref<8x128xf32, #tpu.memory_space<vmem>>) attributes {dimension_semantics = [#tpu.dimension_semantics<arbitrary>], iteration_bounds = array<i64: 1>, scalar_prefetch = 0 : i64, scratch_operands = 2 : i64, tpu.core_type = #tpu.core_type<tc>, window_params = [{transform_indices = @transform_0, window_bounds = array<i64: 8, 8, 384>}, {transform_indices = @transform_1, window_bounds = array<i64: 8, 8, 384>}, {pipeline_mode = #tpu.pipeline_mode<synchronous>, transform_indices = @transform_2, window_bounds = array<i64: 128, 384>}, {pipeline_mode = #tpu.pipeline_mode<synchronous>, transform_indices = @transform_3, window_bounds = array<i64: 128, 384>}, {pipeline_mode = #tpu.pipeline_mode<synchronous>, transform_indices = @transform_4, window_bounds = array<i64: 1, 384>}, {pipeline_mode = #tpu.pipeline_mode<synchronous>, transform_indices = @transform_5, window_bounds = array<i64: 1, 384>}, {transform_indices = @transform_6, window_bounds = array<i64: 8, 8, 128>}, {transform_indices = @transform_7, window_bounds = array<i64: 8, 8, 128>}]} {
    %c0_i32 = arith.constant 0 : i32
    %0 = arith.cmpi eq, %arg0, %c0_i32 : i32
    %1 = arith.extui %0 : i1 to i32
    %c0_i32_0 = arith.constant 0 : i32
    %2 = arith.cmpi ne, %1, %c0_i32_0 : i32
    scf.if %2 {
      %cst_152 = arith.constant 0.000000e+00 : f32
      %643 = vector.broadcast %cst_152 : f32 to vector<8x128xf32>
      %c0_153 = arith.constant 0 : index
      %c0_154 = arith.constant 0 : index
      %644 = vector.load %arg9[%c0_153, %c0_154] : memref<8x128xf32, #tpu.memory_space<vmem>>, vector<8x128xf32>
      tpu.vector_store %arg9[%c0_153, %c0_154], %643 {strides = array<i32>} : memref<8x128xf32, #tpu.memory_space<vmem>>, vector<8x128xf32>,
      %cst_155 = arith.constant 0.000000e+00 : f32
      %645 = vector.broadcast %cst_155 : f32 to vector<8x128xf32>
      %c0_156 = arith.constant 0 : index
      %c0_157 = arith.constant 0 : index
      %646 = vector.load %arg10[%c0_156, %c0_157] : memref<8x128xf32, #tpu.memory_space<vmem>>, vector<8x128xf32>
      tpu.vector_store %arg10[%c0_156, %c0_157], %645 {strides = array<i32>} : memref<8x128xf32, #tpu.memory_space<vmem>>, vector<8x128xf32>,
    } else {
    }
    %c0 = arith.constant 0 : index
    %c0_1 = arith.constant 0 : index
    %3 = vector.load %arg3[%c0, %c0_1] : memref<128x384xbf16, #tpu.memory_space<vmem>>, vector<128x384xbf16>
    %c0_2 = arith.constant 0 : index
    %c0_3 = arith.constant 0 : index
    %4 = vector.load %arg4[%c0_2, %c0_3] : memref<128x384xbf16, #tpu.memory_space<vmem>>, vector<128x384xbf16>
    %c0_4 = arith.constant 0 : index
    %c0_5 = arith.constant 0 : index
    %5 = vector.load %arg5[%c0_4, %c0_5] : memref<1x384xf32, #tpu.memory_space<vmem>>, vector<1x384xf32>
    %c0_6 = arith.constant 0 : index
    %c0_7 = arith.constant 0 : index
    %6 = vector.load %arg6[%c0_6, %c0_7] : memref<1x384xf32, #tpu.memory_space<vmem>>, vector<1x384xf32>
    %c0_8 = arith.constant 0 : index
    %c0_9 = arith.constant 0 : index
    %7 = vector.load %arg9[%c0_8, %c0_9] : memref<8x128xf32, #tpu.memory_space<vmem>>, vector<8x128xf32>
    %c0_10 = arith.constant 0 : index
    %c0_11 = arith.constant 0 : index
    %8 = vector.load %arg10[%c0_10, %c0_11] : memref<8x128xf32, #tpu.memory_space<vmem>>, vector<8x128xf32>
    %c0_i32_12 = arith.constant 0 : i32
    %c7_i32 = arith.constant 7 : i32
    %9 = arith.subi %c7_i32, %c0_i32_12 : i32
    %10 = arith.index_cast %c0_i32_12 : i32 to index
    %c0_13 = arith.constant 0 : index
    %c0_14 = arith.constant 0 : index
    %11 = vector.load %arg1[%10, %c0_13, %c0_14] : memref<8x8x384xbf16, #tpu.memory_space<vmem>>, vector<1x8x384xbf16>
    %12 = vector.shape_cast %11 : vector<1x8x384xbf16> to vector<8x384xbf16>
    %13 = arith.extf %12 : vector<8x384xbf16> to vector<8x384xf32>
    %14 = arith.index_cast %9 : i32 to index
    %c0_15 = arith.constant 0 : index
    %c0_16 = arith.constant 0 : index
    %15 = vector.load %arg2[%14, %c0_15, %c0_16] : memref<8x8x384xbf16, #tpu.memory_space<vmem>>, vector<1x8x384xbf16>
    %16 = vector.shape_cast %15 : vector<1x8x384xbf16> to vector<8x384xbf16>
    %17 = arith.extf %16 : vector<8x384xbf16> to vector<8x384xf32>
    %18 = arith.truncf %7 : vector<8x128xf32> to vector<8x128xbf16>
    %cst = arith.constant dense<0.000000e+00> : vector<8x384xf32>
    %19 = tpu.matmul %18, %3, %cst {dimension_numbers = #tpu.dot_dimension_numbers<[1], [0], [0], [1], [0, 0, 1, 1], [], []>} : vector<8x128xbf16>, vector<128x384xbf16>, vector<8x384xf32> -> vector<8x384xf32>
    %20 = vector.broadcast %5 : vector<1x384xf32> to vector<8x384xf32>
    %21 = arith.addf %19, %20 : vector<8x384xf32>
    %22 = arith.truncf %8 : vector<8x128xf32> to vector<8x128xbf16>
    %cst_17 = arith.constant dense<0.000000e+00> : vector<8x384xf32>
    %23 = tpu.matmul %22, %4, %cst_17 {dimension_numbers = #tpu.dot_dimension_numbers<[1], [0], [0], [1], [0, 0, 1, 1], [], []>} : vector<8x128xbf16>, vector<128x384xbf16>, vector<8x384xf32> -> vector<8x384xf32>
    %24 = vector.broadcast %6 : vector<1x384xf32> to vector<8x384xf32>
    %25 = arith.addf %23, %24 : vector<8x384xf32>
    %26 = vector.extract_strided_slice %13 {offsets = [0, 0], sizes = [8, 128], strides = [1, 1]} : vector<8x384xf32> to vector<8x128xf32>
    %27 = vector.extract_strided_slice %21 {offsets = [0, 0], sizes = [8, 128], strides = [1, 1]} : vector<8x384xf32> to vector<8x128xf32>
    %28 = arith.addf %26, %27 : vector<8x128xf32>
    %29 = arith.negf %28 : vector<8x128xf32>
    %30 = math.exp %29 : vector<8x128xf32>
    %cst_18 = arith.constant 1.000000e+00 : f32
    %31 = vector.broadcast %cst_18 : f32 to vector<8x128xf32>
    %32 = arith.addf %31, %30 : vector<8x128xf32>
    %33 = arith.divf %31, %32 : vector<8x128xf32>
    %34 = vector.extract_strided_slice %13 {offsets = [0, 128], sizes = [8, 128], strides = [1, 1]} : vector<8x384xf32> to vector<8x128xf32>
    %35 = vector.extract_strided_slice %21 {offsets = [0, 128], sizes = [8, 128], strides = [1, 1]} : vector<8x384xf32> to vector<8x128xf32>
    %36 = arith.addf %34, %35 : vector<8x128xf32>
    %37 = arith.negf %36 : vector<8x128xf32>
    %38 = math.exp %37 : vector<8x128xf32>
    %cst_19 = arith.constant 1.000000e+00 : f32
    %39 = vector.broadcast %cst_19 : f32 to vector<8x128xf32>
    %40 = arith.addf %39, %38 : vector<8x128xf32>
    %41 = arith.divf %39, %40 : vector<8x128xf32>
    %42 = vector.extract_strided_slice %13 {offsets = [0, 256], sizes = [8, 128], strides = [1, 1]} : vector<8x384xf32> to vector<8x128xf32>
    %43 = vector.extract_strided_slice %21 {offsets = [0, 256], sizes = [8, 128], strides = [1, 1]} : vector<8x384xf32> to vector<8x128xf32>
    %44 = arith.mulf %33, %43 : vector<8x128xf32>
    %45 = arith.addf %42, %44 : vector<8x128xf32>
    %46 = math.tanh %45 : vector<8x128xf32>
    %cst_20 = arith.constant 1.000000e+00 : f32
    %47 = vector.broadcast %cst_20 : f32 to vector<8x128xf32>
    %48 = arith.subf %47, %41 : vector<8x128xf32>
    %49 = arith.mulf %48, %46 : vector<8x128xf32>
    %50 = arith.mulf %41, %7 : vector<8x128xf32>
    %51 = arith.addf %49, %50 : vector<8x128xf32>
    %52 = vector.extract_strided_slice %17 {offsets = [0, 0], sizes = [8, 128], strides = [1, 1]} : vector<8x384xf32> to vector<8x128xf32>
    %53 = vector.extract_strided_slice %25 {offsets = [0, 0], sizes = [8, 128], strides = [1, 1]} : vector<8x384xf32> to vector<8x128xf32>
    %54 = arith.addf %52, %53 : vector<8x128xf32>
    %55 = arith.negf %54 : vector<8x128xf32>
    %56 = math.exp %55 : vector<8x128xf32>
    %cst_21 = arith.constant 1.000000e+00 : f32
    %57 = vector.broadcast %cst_21 : f32 to vector<8x128xf32>
    %58 = arith.addf %57, %56 : vector<8x128xf32>
    %59 = arith.divf %57, %58 : vector<8x128xf32>
    %60 = vector.extract_strided_slice %17 {offsets = [0, 128], sizes = [8, 128], strides = [1, 1]} : vector<8x384xf32> to vector<8x128xf32>
    %61 = vector.extract_strided_slice %25 {offsets = [0, 128], sizes = [8, 128], strides = [1, 1]} : vector<8x384xf32> to vector<8x128xf32>
    %62 = arith.addf %60, %61 : vector<8x128xf32>
    %63 = arith.negf %62 : vector<8x128xf32>
    %64 = math.exp %63 : vector<8x128xf32>
    %cst_22 = arith.constant 1.000000e+00 : f32
    %65 = vector.broadcast %cst_22 : f32 to vector<8x128xf32>
    %66 = arith.addf %65, %64 : vector<8x128xf32>
    %67 = arith.divf %65, %66 : vector<8x128xf32>
    %68 = vector.extract_strided_slice %17 {offsets = [0, 256], sizes = [8, 128], strides = [1, 1]} : vector<8x384xf32> to vector<8x128xf32>
    %69 = vector.extract_strided_slice %25 {offsets = [0, 256], sizes = [8, 128], strides = [1, 1]} : vector<8x384xf32> to vector<8x128xf32>
    %70 = arith.mulf %59, %69 : vector<8x128xf32>
    %71 = arith.addf %68, %70 : vector<8x128xf32>
    %72 = math.tanh %71 : vector<8x128xf32>
    %cst_23 = arith.constant 1.000000e+00 : f32
    %73 = vector.broadcast %cst_23 : f32 to vector<8x128xf32>
    %74 = arith.subf %73, %67 : vector<8x128xf32>
    %75 = arith.mulf %74, %72 : vector<8x128xf32>
    %76 = arith.mulf %67, %8 : vector<8x128xf32>
    %77 = arith.addf %75, %76 : vector<8x128xf32>
    %78 = arith.truncf %51 : vector<8x128xf32> to vector<8x128xbf16>
    %79 = arith.index_cast %c0_i32_12 : i32 to index
    %c0_24 = arith.constant 0 : index
    %c0_25 = arith.constant 0 : index
    %80 = vector.load %arg7[%79, %c0_24, %c0_25] : memref<8x8x128xbf16, #tpu.memory_space<vmem>>, vector<1x8x128xbf16>
    %81 = vector.shape_cast %80 : vector<1x8x128xbf16> to vector<8x128xbf16>
    %82 = vector.shape_cast %78 : vector<8x128xbf16> to vector<1x8x128xbf16>
    tpu.vector_store %arg7[%79, %c0_24, %c0_25], %82 {strides = array<i32>} : memref<8x8x128xbf16, #tpu.memory_space<vmem>>, vector<1x8x128xbf16>,
    %83 = arith.truncf %77 : vector<8x128xf32> to vector<8x128xbf16>
    %84 = arith.index_cast %9 : i32 to index
    %c0_26 = arith.constant 0 : index
    %c0_27 = arith.constant 0 : index
    %85 = vector.load %arg8[%84, %c0_26, %c0_27] : memref<8x8x128xbf16, #tpu.memory_space<vmem>>, vector<1x8x128xbf16>
    %86 = vector.shape_cast %85 : vector<1x8x128xbf16> to vector<8x128xbf16>
    %87 = vector.shape_cast %83 : vector<8x128xbf16> to vector<1x8x128xbf16>
    tpu.vector_store %arg8[%84, %c0_26, %c0_27], %87 {strides = array<i32>} : memref<8x8x128xbf16, #tpu.memory_space<vmem>>, vector<1x8x128xbf16>,
    %c1_i32 = arith.constant 1 : i32
    %c7_i32_28 = arith.constant 7 : i32
    %88 = arith.subi %c7_i32_28, %c1_i32 : i32
    %89 = arith.index_cast %c1_i32 : i32 to index
    %c0_29 = arith.constant 0 : index
    %c0_30 = arith.constant 0 : index
    %90 = vector.load %arg1[%89, %c0_29, %c0_30] : memref<8x8x384xbf16, #tpu.memory_space<vmem>>, vector<1x8x384xbf16>
    %91 = vector.shape_cast %90 : vector<1x8x384xbf16> to vector<8x384xbf16>
    %92 = arith.extf %91 : vector<8x384xbf16> to vector<8x384xf32>
    %93 = arith.index_cast %88 : i32 to index
    %c0_31 = arith.constant 0 : index
    %c0_32 = arith.constant 0 : index
    %94 = vector.load %arg2[%93, %c0_31, %c0_32] : memref<8x8x384xbf16, #tpu.memory_space<vmem>>, vector<1x8x384xbf16>
    %95 = vector.shape_cast %94 : vector<1x8x384xbf16> to vector<8x384xbf16>
    %96 = arith.extf %95 : vector<8x384xbf16> to vector<8x384xf32>
    %97 = arith.truncf %51 : vector<8x128xf32> to vector<8x128xbf16>
    %cst_33 = arith.constant dense<0.000000e+00> : vector<8x384xf32>
    %98 = tpu.matmul %97, %3, %cst_33 {dimension_numbers = #tpu.dot_dimension_numbers<[1], [0], [0], [1], [0, 0, 1, 1], [], []>} : vector<8x128xbf16>, vector<128x384xbf16>, vector<8x384xf32> -> vector<8x384xf32>
    %99 = vector.broadcast %5 : vector<1x384xf32> to vector<8x384xf32>
    %100 = arith.addf %98, %99 : vector<8x384xf32>
    %101 = arith.truncf %77 : vector<8x128xf32> to vector<8x128xbf16>
    %cst_34 = arith.constant dense<0.000000e+00> : vector<8x384xf32>
    %102 = tpu.matmul %101, %4, %cst_34 {dimension_numbers = #tpu.dot_dimension_numbers<[1], [0], [0], [1], [0, 0, 1, 1], [], []>} : vector<8x128xbf16>, vector<128x384xbf16>, vector<8x384xf32> -> vector<8x384xf32>
    %103 = vector.broadcast %6 : vector<1x384xf32> to vector<8x384xf32>
    %104 = arith.addf %102, %103 : vector<8x384xf32>
    %105 = vector.extract_strided_slice %92 {offsets = [0, 0], sizes = [8, 128], strides = [1, 1]} : vector<8x384xf32> to vector<8x128xf32>
    %106 = vector.extract_strided_slice %100 {offsets = [0, 0], sizes = [8, 128], strides = [1, 1]} : vector<8x384xf32> to vector<8x128xf32>
    %107 = arith.addf %105, %106 : vector<8x128xf32>
    %108 = arith.negf %107 : vector<8x128xf32>
    %109 = math.exp %108 : vector<8x128xf32>
    %cst_35 = arith.constant 1.000000e+00 : f32
    %110 = vector.broadcast %cst_35 : f32 to vector<8x128xf32>
    %111 = arith.addf %110, %109 : vector<8x128xf32>
    %112 = arith.divf %110, %111 : vector<8x128xf32>
    %113 = vector.extract_strided_slice %92 {offsets = [0, 128], sizes = [8, 128], strides = [1, 1]} : vector<8x384xf32> to vector<8x128xf32>
    %114 = vector.extract_strided_slice %100 {offsets = [0, 128], sizes = [8, 128], strides = [1, 1]} : vector<8x384xf32> to vector<8x128xf32>
    %115 = arith.addf %113, %114 : vector<8x128xf32>
    %116 = arith.negf %115 : vector<8x128xf32>
    %117 = math.exp %116 : vector<8x128xf32>
    %cst_36 = arith.constant 1.000000e+00 : f32
    %118 = vector.broadcast %cst_36 : f32 to vector<8x128xf32>
    %119 = arith.addf %118, %117 : vector<8x128xf32>
    %120 = arith.divf %118, %119 : vector<8x128xf32>
    %121 = vector.extract_strided_slice %92 {offsets = [0, 256], sizes = [8, 128], strides = [1, 1]} : vector<8x384xf32> to vector<8x128xf32>
    %122 = vector.extract_strided_slice %100 {offsets = [0, 256], sizes = [8, 128], strides = [1, 1]} : vector<8x384xf32> to vector<8x128xf32>
    %123 = arith.mulf %112, %122 : vector<8x128xf32>
    %124 = arith.addf %121, %123 : vector<8x128xf32>
    %125 = math.tanh %124 : vector<8x128xf32>
    %cst_37 = arith.constant 1.000000e+00 : f32
    %126 = vector.broadcast %cst_37 : f32 to vector<8x128xf32>
    %127 = arith.subf %126, %120 : vector<8x128xf32>
    %128 = arith.mulf %127, %125 : vector<8x128xf32>
    %129 = arith.mulf %120, %51 : vector<8x128xf32>
    %130 = arith.addf %128, %129 : vector<8x128xf32>
    %131 = vector.extract_strided_slice %96 {offsets = [0, 0], sizes = [8, 128], strides = [1, 1]} : vector<8x384xf32> to vector<8x128xf32>
    %132 = vector.extract_strided_slice %104 {offsets = [0, 0], sizes = [8, 128], strides = [1, 1]} : vector<8x384xf32> to vector<8x128xf32>
    %133 = arith.addf %131, %132 : vector<8x128xf32>
    %134 = arith.negf %133 : vector<8x128xf32>
    %135 = math.exp %134 : vector<8x128xf32>
    %cst_38 = arith.constant 1.000000e+00 : f32
    %136 = vector.broadcast %cst_38 : f32 to vector<8x128xf32>
    %137 = arith.addf %136, %135 : vector<8x128xf32>
    %138 = arith.divf %136, %137 : vector<8x128xf32>
    %139 = vector.extract_strided_slice %96 {offsets = [0, 128], sizes = [8, 128], strides = [1, 1]} : vector<8x384xf32> to vector<8x128xf32>
    %140 = vector.extract_strided_slice %104 {offsets = [0, 128], sizes = [8, 128], strides = [1, 1]} : vector<8x384xf32> to vector<8x128xf32>
    %141 = arith.addf %139, %140 : vector<8x128xf32>
    %142 = arith.negf %141 : vector<8x128xf32>
    %143 = math.exp %142 : vector<8x128xf32>
    %cst_39 = arith.constant 1.000000e+00 : f32
    %144 = vector.broadcast %cst_39 : f32 to vector<8x128xf32>
    %145 = arith.addf %144, %143 : vector<8x128xf32>
    %146 = arith.divf %144, %145 : vector<8x128xf32>
    %147 = vector.extract_strided_slice %96 {offsets = [0, 256], sizes = [8, 128], strides = [1, 1]} : vector<8x384xf32> to vector<8x128xf32>
    %148 = vector.extract_strided_slice %104 {offsets = [0, 256], sizes = [8, 128], strides = [1, 1]} : vector<8x384xf32> to vector<8x128xf32>
    %149 = arith.mulf %138, %148 : vector<8x128xf32>
    %150 = arith.addf %147, %149 : vector<8x128xf32>
    %151 = math.tanh %150 : vector<8x128xf32>
    %cst_40 = arith.constant 1.000000e+00 : f32
    %152 = vector.broadcast %cst_40 : f32 to vector<8x128xf32>
    %153 = arith.subf %152, %146 : vector<8x128xf32>
    %154 = arith.mulf %153, %151 : vector<8x128xf32>
    %155 = arith.mulf %146, %77 : vector<8x128xf32>
    %156 = arith.addf %154, %155 : vector<8x128xf32>
    %157 = arith.truncf %130 : vector<8x128xf32> to vector<8x128xbf16>
    %158 = arith.index_cast %c1_i32 : i32 to index
    %c0_41 = arith.constant 0 : index
    %c0_42 = arith.constant 0 : index
    %159 = vector.load %arg7[%158, %c0_41, %c0_42] : memref<8x8x128xbf16, #tpu.memory_space<vmem>>, vector<1x8x128xbf16>
    %160 = vector.shape_cast %159 : vector<1x8x128xbf16> to vector<8x128xbf16>
    %161 = vector.shape_cast %157 : vector<8x128xbf16> to vector<1x8x128xbf16>
    tpu.vector_store %arg7[%158, %c0_41, %c0_42], %161 {strides = array<i32>} : memref<8x8x128xbf16, #tpu.memory_space<vmem>>, vector<1x8x128xbf16>,
    %162 = arith.truncf %156 : vector<8x128xf32> to vector<8x128xbf16>
    %163 = arith.index_cast %88 : i32 to index
    %c0_43 = arith.constant 0 : index
    %c0_44 = arith.constant 0 : index
    %164 = vector.load %arg8[%163, %c0_43, %c0_44] : memref<8x8x128xbf16, #tpu.memory_space<vmem>>, vector<1x8x128xbf16>
    %165 = vector.shape_cast %164 : vector<1x8x128xbf16> to vector<8x128xbf16>
    %166 = vector.shape_cast %162 : vector<8x128xbf16> to vector<1x8x128xbf16>
    tpu.vector_store %arg8[%163, %c0_43, %c0_44], %166 {strides = array<i32>} : memref<8x8x128xbf16, #tpu.memory_space<vmem>>, vector<1x8x128xbf16>,
    %c2_i32 = arith.constant 2 : i32
    %c7_i32_45 = arith.constant 7 : i32
    %167 = arith.subi %c7_i32_45, %c2_i32 : i32
    %168 = arith.index_cast %c2_i32 : i32 to index
    %c0_46 = arith.constant 0 : index
    %c0_47 = arith.constant 0 : index
    %169 = vector.load %arg1[%168, %c0_46, %c0_47] : memref<8x8x384xbf16, #tpu.memory_space<vmem>>, vector<1x8x384xbf16>
    %170 = vector.shape_cast %169 : vector<1x8x384xbf16> to vector<8x384xbf16>
    %171 = arith.extf %170 : vector<8x384xbf16> to vector<8x384xf32>
    %172 = arith.index_cast %167 : i32 to index
    %c0_48 = arith.constant 0 : index
    %c0_49 = arith.constant 0 : index
    %173 = vector.load %arg2[%172, %c0_48, %c0_49] : memref<8x8x384xbf16, #tpu.memory_space<vmem>>, vector<1x8x384xbf16>
    %174 = vector.shape_cast %173 : vector<1x8x384xbf16> to vector<8x384xbf16>
    %175 = arith.extf %174 : vector<8x384xbf16> to vector<8x384xf32>
    %176 = arith.truncf %130 : vector<8x128xf32> to vector<8x128xbf16>
    %cst_50 = arith.constant dense<0.000000e+00> : vector<8x384xf32>
    %177 = tpu.matmul %176, %3, %cst_50 {dimension_numbers = #tpu.dot_dimension_numbers<[1], [0], [0], [1], [0, 0, 1, 1], [], []>} : vector<8x128xbf16>, vector<128x384xbf16>, vector<8x384xf32> -> vector<8x384xf32>
    %178 = vector.broadcast %5 : vector<1x384xf32> to vector<8x384xf32>
    %179 = arith.addf %177, %178 : vector<8x384xf32>
    %180 = arith.truncf %156 : vector<8x128xf32> to vector<8x128xbf16>
    %cst_51 = arith.constant dense<0.000000e+00> : vector<8x384xf32>
    %181 = tpu.matmul %180, %4, %cst_51 {dimension_numbers = #tpu.dot_dimension_numbers<[1], [0], [0], [1], [0, 0, 1, 1], [], []>} : vector<8x128xbf16>, vector<128x384xbf16>, vector<8x384xf32> -> vector<8x384xf32>
    %182 = vector.broadcast %6 : vector<1x384xf32> to vector<8x384xf32>
    %183 = arith.addf %181, %182 : vector<8x384xf32>
    %184 = vector.extract_strided_slice %171 {offsets = [0, 0], sizes = [8, 128], strides = [1, 1]} : vector<8x384xf32> to vector<8x128xf32>
    %185 = vector.extract_strided_slice %179 {offsets = [0, 0], sizes = [8, 128], strides = [1, 1]} : vector<8x384xf32> to vector<8x128xf32>
    %186 = arith.addf %184, %185 : vector<8x128xf32>
    %187 = arith.negf %186 : vector<8x128xf32>
    %188 = math.exp %187 : vector<8x128xf32>
    %cst_52 = arith.constant 1.000000e+00 : f32
    %189 = vector.broadcast %cst_52 : f32 to vector<8x128xf32>
    %190 = arith.addf %189, %188 : vector<8x128xf32>
    %191 = arith.divf %189, %190 : vector<8x128xf32>
    %192 = vector.extract_strided_slice %171 {offsets = [0, 128], sizes = [8, 128], strides = [1, 1]} : vector<8x384xf32> to vector<8x128xf32>
    %193 = vector.extract_strided_slice %179 {offsets = [0, 128], sizes = [8, 128], strides = [1, 1]} : vector<8x384xf32> to vector<8x128xf32>
    %194 = arith.addf %192, %193 : vector<8x128xf32>
    %195 = arith.negf %194 : vector<8x128xf32>
    %196 = math.exp %195 : vector<8x128xf32>
    %cst_53 = arith.constant 1.000000e+00 : f32
    %197 = vector.broadcast %cst_53 : f32 to vector<8x128xf32>
    %198 = arith.addf %197, %196 : vector<8x128xf32>
    %199 = arith.divf %197, %198 : vector<8x128xf32>
    %200 = vector.extract_strided_slice %171 {offsets = [0, 256], sizes = [8, 128], strides = [1, 1]} : vector<8x384xf32> to vector<8x128xf32>
    %201 = vector.extract_strided_slice %179 {offsets = [0, 256], sizes = [8, 128], strides = [1, 1]} : vector<8x384xf32> to vector<8x128xf32>
    %202 = arith.mulf %191, %201 : vector<8x128xf32>
    %203 = arith.addf %200, %202 : vector<8x128xf32>
    %204 = math.tanh %203 : vector<8x128xf32>
    %cst_54 = arith.constant 1.000000e+00 : f32
    %205 = vector.broadcast %cst_54 : f32 to vector<8x128xf32>
    %206 = arith.subf %205, %199 : vector<8x128xf32>
    %207 = arith.mulf %206, %204 : vector<8x128xf32>
    %208 = arith.mulf %199, %130 : vector<8x128xf32>
    %209 = arith.addf %207, %208 : vector<8x128xf32>
    %210 = vector.extract_strided_slice %175 {offsets = [0, 0], sizes = [8, 128], strides = [1, 1]} : vector<8x384xf32> to vector<8x128xf32>
    %211 = vector.extract_strided_slice %183 {offsets = [0, 0], sizes = [8, 128], strides = [1, 1]} : vector<8x384xf32> to vector<8x128xf32>
    %212 = arith.addf %210, %211 : vector<8x128xf32>
    %213 = arith.negf %212 : vector<8x128xf32>
    %214 = math.exp %213 : vector<8x128xf32>
    %cst_55 = arith.constant 1.000000e+00 : f32
    %215 = vector.broadcast %cst_55 : f32 to vector<8x128xf32>
    %216 = arith.addf %215, %214 : vector<8x128xf32>
    %217 = arith.divf %215, %216 : vector<8x128xf32>
    %218 = vector.extract_strided_slice %175 {offsets = [0, 128], sizes = [8, 128], strides = [1, 1]} : vector<8x384xf32> to vector<8x128xf32>
    %219 = vector.extract_strided_slice %183 {offsets = [0, 128], sizes = [8, 128], strides = [1, 1]} : vector<8x384xf32> to vector<8x128xf32>
    %220 = arith.addf %218, %219 : vector<8x128xf32>
    %221 = arith.negf %220 : vector<8x128xf32>
    %222 = math.exp %221 : vector<8x128xf32>
    %cst_56 = arith.constant 1.000000e+00 : f32
    %223 = vector.broadcast %cst_56 : f32 to vector<8x128xf32>
    %224 = arith.addf %223, %222 : vector<8x128xf32>
    %225 = arith.divf %223, %224 : vector<8x128xf32>
    %226 = vector.extract_strided_slice %175 {offsets = [0, 256], sizes = [8, 128], strides = [1, 1]} : vector<8x384xf32> to vector<8x128xf32>
    %227 = vector.extract_strided_slice %183 {offsets = [0, 256], sizes = [8, 128], strides = [1, 1]} : vector<8x384xf32> to vector<8x128xf32>
    %228 = arith.mulf %217, %227 : vector<8x128xf32>
    %229 = arith.addf %226, %228 : vector<8x128xf32>
    %230 = math.tanh %229 : vector<8x128xf32>
    %cst_57 = arith.constant 1.000000e+00 : f32
    %231 = vector.broadcast %cst_57 : f32 to vector<8x128xf32>
    %232 = arith.subf %231, %225 : vector<8x128xf32>
    %233 = arith.mulf %232, %230 : vector<8x128xf32>
    %234 = arith.mulf %225, %156 : vector<8x128xf32>
    %235 = arith.addf %233, %234 : vector<8x128xf32>
    %236 = arith.truncf %209 : vector<8x128xf32> to vector<8x128xbf16>
    %237 = arith.index_cast %c2_i32 : i32 to index
    %c0_58 = arith.constant 0 : index
    %c0_59 = arith.constant 0 : index
    %238 = vector.load %arg7[%237, %c0_58, %c0_59] : memref<8x8x128xbf16, #tpu.memory_space<vmem>>, vector<1x8x128xbf16>
    %239 = vector.shape_cast %238 : vector<1x8x128xbf16> to vector<8x128xbf16>
    %240 = vector.shape_cast %236 : vector<8x128xbf16> to vector<1x8x128xbf16>
    tpu.vector_store %arg7[%237, %c0_58, %c0_59], %240 {strides = array<i32>} : memref<8x8x128xbf16, #tpu.memory_space<vmem>>, vector<1x8x128xbf16>,
    %241 = arith.truncf %235 : vector<8x128xf32> to vector<8x128xbf16>
    %242 = arith.index_cast %167 : i32 to index
    %c0_60 = arith.constant 0 : index
    %c0_61 = arith.constant 0 : index
    %243 = vector.load %arg8[%242, %c0_60, %c0_61] : memref<8x8x128xbf16, #tpu.memory_space<vmem>>, vector<1x8x128xbf16>
    %244 = vector.shape_cast %243 : vector<1x8x128xbf16> to vector<8x128xbf16>
    %245 = vector.shape_cast %241 : vector<8x128xbf16> to vector<1x8x128xbf16>
    tpu.vector_store %arg8[%242, %c0_60, %c0_61], %245 {strides = array<i32>} : memref<8x8x128xbf16, #tpu.memory_space<vmem>>, vector<1x8x128xbf16>,
    %c3_i32 = arith.constant 3 : i32
    %c7_i32_62 = arith.constant 7 : i32
    %246 = arith.subi %c7_i32_62, %c3_i32 : i32
    %247 = arith.index_cast %c3_i32 : i32 to index
    %c0_63 = arith.constant 0 : index
    %c0_64 = arith.constant 0 : index
    %248 = vector.load %arg1[%247, %c0_63, %c0_64] : memref<8x8x384xbf16, #tpu.memory_space<vmem>>, vector<1x8x384xbf16>
    %249 = vector.shape_cast %248 : vector<1x8x384xbf16> to vector<8x384xbf16>
    %250 = arith.extf %249 : vector<8x384xbf16> to vector<8x384xf32>
    %251 = arith.index_cast %246 : i32 to index
    %c0_65 = arith.constant 0 : index
    %c0_66 = arith.constant 0 : index
    %252 = vector.load %arg2[%251, %c0_65, %c0_66] : memref<8x8x384xbf16, #tpu.memory_space<vmem>>, vector<1x8x384xbf16>
    %253 = vector.shape_cast %252 : vector<1x8x384xbf16> to vector<8x384xbf16>
    %254 = arith.extf %253 : vector<8x384xbf16> to vector<8x384xf32>
    %255 = arith.truncf %209 : vector<8x128xf32> to vector<8x128xbf16>
    %cst_67 = arith.constant dense<0.000000e+00> : vector<8x384xf32>
    %256 = tpu.matmul %255, %3, %cst_67 {dimension_numbers = #tpu.dot_dimension_numbers<[1], [0], [0], [1], [0, 0, 1, 1], [], []>} : vector<8x128xbf16>, vector<128x384xbf16>, vector<8x384xf32> -> vector<8x384xf32>
    %257 = vector.broadcast %5 : vector<1x384xf32> to vector<8x384xf32>
    %258 = arith.addf %256, %257 : vector<8x384xf32>
    %259 = arith.truncf %235 : vector<8x128xf32> to vector<8x128xbf16>
    %cst_68 = arith.constant dense<0.000000e+00> : vector<8x384xf32>
    %260 = tpu.matmul %259, %4, %cst_68 {dimension_numbers = #tpu.dot_dimension_numbers<[1], [0], [0], [1], [0, 0, 1, 1], [], []>} : vector<8x128xbf16>, vector<128x384xbf16>, vector<8x384xf32> -> vector<8x384xf32>
    %261 = vector.broadcast %6 : vector<1x384xf32> to vector<8x384xf32>
    %262 = arith.addf %260, %261 : vector<8x384xf32>
    %263 = vector.extract_strided_slice %250 {offsets = [0, 0], sizes = [8, 128], strides = [1, 1]} : vector<8x384xf32> to vector<8x128xf32>
    %264 = vector.extract_strided_slice %258 {offsets = [0, 0], sizes = [8, 128], strides = [1, 1]} : vector<8x384xf32> to vector<8x128xf32>
    %265 = arith.addf %263, %264 : vector<8x128xf32>
    %266 = arith.negf %265 : vector<8x128xf32>
    %267 = math.exp %266 : vector<8x128xf32>
    %cst_69 = arith.constant 1.000000e+00 : f32
    %268 = vector.broadcast %cst_69 : f32 to vector<8x128xf32>
    %269 = arith.addf %268, %267 : vector<8x128xf32>
    %270 = arith.divf %268, %269 : vector<8x128xf32>
    %271 = vector.extract_strided_slice %250 {offsets = [0, 128], sizes = [8, 128], strides = [1, 1]} : vector<8x384xf32> to vector<8x128xf32>
    %272 = vector.extract_strided_slice %258 {offsets = [0, 128], sizes = [8, 128], strides = [1, 1]} : vector<8x384xf32> to vector<8x128xf32>
    %273 = arith.addf %271, %272 : vector<8x128xf32>
    %274 = arith.negf %273 : vector<8x128xf32>
    %275 = math.exp %274 : vector<8x128xf32>
    %cst_70 = arith.constant 1.000000e+00 : f32
    %276 = vector.broadcast %cst_70 : f32 to vector<8x128xf32>
    %277 = arith.addf %276, %275 : vector<8x128xf32>
    %278 = arith.divf %276, %277 : vector<8x128xf32>
    %279 = vector.extract_strided_slice %250 {offsets = [0, 256], sizes = [8, 128], strides = [1, 1]} : vector<8x384xf32> to vector<8x128xf32>
    %280 = vector.extract_strided_slice %258 {offsets = [0, 256], sizes = [8, 128], strides = [1, 1]} : vector<8x384xf32> to vector<8x128xf32>
    %281 = arith.mulf %270, %280 : vector<8x128xf32>
    %282 = arith.addf %279, %281 : vector<8x128xf32>
    %283 = math.tanh %282 : vector<8x128xf32>
    %cst_71 = arith.constant 1.000000e+00 : f32
    %284 = vector.broadcast %cst_71 : f32 to vector<8x128xf32>
    %285 = arith.subf %284, %278 : vector<8x128xf32>
    %286 = arith.mulf %285, %283 : vector<8x128xf32>
    %287 = arith.mulf %278, %209 : vector<8x128xf32>
    %288 = arith.addf %286, %287 : vector<8x128xf32>
    %289 = vector.extract_strided_slice %254 {offsets = [0, 0], sizes = [8, 128], strides = [1, 1]} : vector<8x384xf32> to vector<8x128xf32>
    %290 = vector.extract_strided_slice %262 {offsets = [0, 0], sizes = [8, 128], strides = [1, 1]} : vector<8x384xf32> to vector<8x128xf32>
    %291 = arith.addf %289, %290 : vector<8x128xf32>
    %292 = arith.negf %291 : vector<8x128xf32>
    %293 = math.exp %292 : vector<8x128xf32>
    %cst_72 = arith.constant 1.000000e+00 : f32
    %294 = vector.broadcast %cst_72 : f32 to vector<8x128xf32>
    %295 = arith.addf %294, %293 : vector<8x128xf32>
    %296 = arith.divf %294, %295 : vector<8x128xf32>
    %297 = vector.extract_strided_slice %254 {offsets = [0, 128], sizes = [8, 128], strides = [1, 1]} : vector<8x384xf32> to vector<8x128xf32>
    %298 = vector.extract_strided_slice %262 {offsets = [0, 128], sizes = [8, 128], strides = [1, 1]} : vector<8x384xf32> to vector<8x128xf32>
    %299 = arith.addf %297, %298 : vector<8x128xf32>
    %300 = arith.negf %299 : vector<8x128xf32>
    %301 = math.exp %300 : vector<8x128xf32>
    %cst_73 = arith.constant 1.000000e+00 : f32
    %302 = vector.broadcast %cst_73 : f32 to vector<8x128xf32>
    %303 = arith.addf %302, %301 : vector<8x128xf32>
    %304 = arith.divf %302, %303 : vector<8x128xf32>
    %305 = vector.extract_strided_slice %254 {offsets = [0, 256], sizes = [8, 128], strides = [1, 1]} : vector<8x384xf32> to vector<8x128xf32>
    %306 = vector.extract_strided_slice %262 {offsets = [0, 256], sizes = [8, 128], strides = [1, 1]} : vector<8x384xf32> to vector<8x128xf32>
    %307 = arith.mulf %296, %306 : vector<8x128xf32>
    %308 = arith.addf %305, %307 : vector<8x128xf32>
    %309 = math.tanh %308 : vector<8x128xf32>
    %cst_74 = arith.constant 1.000000e+00 : f32
    %310 = vector.broadcast %cst_74 : f32 to vector<8x128xf32>
    %311 = arith.subf %310, %304 : vector<8x128xf32>
    %312 = arith.mulf %311, %309 : vector<8x128xf32>
    %313 = arith.mulf %304, %235 : vector<8x128xf32>
    %314 = arith.addf %312, %313 : vector<8x128xf32>
    %315 = arith.truncf %288 : vector<8x128xf32> to vector<8x128xbf16>
    %316 = arith.index_cast %c3_i32 : i32 to index
    %c0_75 = arith.constant 0 : index
    %c0_76 = arith.constant 0 : index
    %317 = vector.load %arg7[%316, %c0_75, %c0_76] : memref<8x8x128xbf16, #tpu.memory_space<vmem>>, vector<1x8x128xbf16>
    %318 = vector.shape_cast %317 : vector<1x8x128xbf16> to vector<8x128xbf16>
    %319 = vector.shape_cast %315 : vector<8x128xbf16> to vector<1x8x128xbf16>
    tpu.vector_store %arg7[%316, %c0_75, %c0_76], %319 {strides = array<i32>} : memref<8x8x128xbf16, #tpu.memory_space<vmem>>, vector<1x8x128xbf16>,
    %320 = arith.truncf %314 : vector<8x128xf32> to vector<8x128xbf16>
    %321 = arith.index_cast %246 : i32 to index
    %c0_77 = arith.constant 0 : index
    %c0_78 = arith.constant 0 : index
    %322 = vector.load %arg8[%321, %c0_77, %c0_78] : memref<8x8x128xbf16, #tpu.memory_space<vmem>>, vector<1x8x128xbf16>
    %323 = vector.shape_cast %322 : vector<1x8x128xbf16> to vector<8x128xbf16>
    %324 = vector.shape_cast %320 : vector<8x128xbf16> to vector<1x8x128xbf16>
    tpu.vector_store %arg8[%321, %c0_77, %c0_78], %324 {strides = array<i32>} : memref<8x8x128xbf16, #tpu.memory_space<vmem>>, vector<1x8x128xbf16>,
    %c4_i32 = arith.constant 4 : i32
    %c7_i32_79 = arith.constant 7 : i32
    %325 = arith.subi %c7_i32_79, %c4_i32 : i32
    %326 = arith.index_cast %c4_i32 : i32 to index
    %c0_80 = arith.constant 0 : index
    %c0_81 = arith.constant 0 : index
    %327 = vector.load %arg1[%326, %c0_80, %c0_81] : memref<8x8x384xbf16, #tpu.memory_space<vmem>>, vector<1x8x384xbf16>
    %328 = vector.shape_cast %327 : vector<1x8x384xbf16> to vector<8x384xbf16>
    %329 = arith.extf %328 : vector<8x384xbf16> to vector<8x384xf32>
    %330 = arith.index_cast %325 : i32 to index
    %c0_82 = arith.constant 0 : index
    %c0_83 = arith.constant 0 : index
    %331 = vector.load %arg2[%330, %c0_82, %c0_83] : memref<8x8x384xbf16, #tpu.memory_space<vmem>>, vector<1x8x384xbf16>
    %332 = vector.shape_cast %331 : vector<1x8x384xbf16> to vector<8x384xbf16>
    %333 = arith.extf %332 : vector<8x384xbf16> to vector<8x384xf32>
    %334 = arith.truncf %288 : vector<8x128xf32> to vector<8x128xbf16>
    %cst_84 = arith.constant dense<0.000000e+00> : vector<8x384xf32>
    %335 = tpu.matmul %334, %3, %cst_84 {dimension_numbers = #tpu.dot_dimension_numbers<[1], [0], [0], [1], [0, 0, 1, 1], [], []>} : vector<8x128xbf16>, vector<128x384xbf16>, vector<8x384xf32> -> vector<8x384xf32>
    %336 = vector.broadcast %5 : vector<1x384xf32> to vector<8x384xf32>
    %337 = arith.addf %335, %336 : vector<8x384xf32>
    %338 = arith.truncf %314 : vector<8x128xf32> to vector<8x128xbf16>
    %cst_85 = arith.constant dense<0.000000e+00> : vector<8x384xf32>
    %339 = tpu.matmul %338, %4, %cst_85 {dimension_numbers = #tpu.dot_dimension_numbers<[1], [0], [0], [1], [0, 0, 1, 1], [], []>} : vector<8x128xbf16>, vector<128x384xbf16>, vector<8x384xf32> -> vector<8x384xf32>
    %340 = vector.broadcast %6 : vector<1x384xf32> to vector<8x384xf32>
    %341 = arith.addf %339, %340 : vector<8x384xf32>
    %342 = vector.extract_strided_slice %329 {offsets = [0, 0], sizes = [8, 128], strides = [1, 1]} : vector<8x384xf32> to vector<8x128xf32>
    %343 = vector.extract_strided_slice %337 {offsets = [0, 0], sizes = [8, 128], strides = [1, 1]} : vector<8x384xf32> to vector<8x128xf32>
    %344 = arith.addf %342, %343 : vector<8x128xf32>
    %345 = arith.negf %344 : vector<8x128xf32>
    %346 = math.exp %345 : vector<8x128xf32>
    %cst_86 = arith.constant 1.000000e+00 : f32
    %347 = vector.broadcast %cst_86 : f32 to vector<8x128xf32>
    %348 = arith.addf %347, %346 : vector<8x128xf32>
    %349 = arith.divf %347, %348 : vector<8x128xf32>
    %350 = vector.extract_strided_slice %329 {offsets = [0, 128], sizes = [8, 128], strides = [1, 1]} : vector<8x384xf32> to vector<8x128xf32>
    %351 = vector.extract_strided_slice %337 {offsets = [0, 128], sizes = [8, 128], strides = [1, 1]} : vector<8x384xf32> to vector<8x128xf32>
    %352 = arith.addf %350, %351 : vector<8x128xf32>
    %353 = arith.negf %352 : vector<8x128xf32>
    %354 = math.exp %353 : vector<8x128xf32>
    %cst_87 = arith.constant 1.000000e+00 : f32
    %355 = vector.broadcast %cst_87 : f32 to vector<8x128xf32>
    %356 = arith.addf %355, %354 : vector<8x128xf32>
    %357 = arith.divf %355, %356 : vector<8x128xf32>
    %358 = vector.extract_strided_slice %329 {offsets = [0, 256], sizes = [8, 128], strides = [1, 1]} : vector<8x384xf32> to vector<8x128xf32>
    %359 = vector.extract_strided_slice %337 {offsets = [0, 256], sizes = [8, 128], strides = [1, 1]} : vector<8x384xf32> to vector<8x128xf32>
    %360 = arith.mulf %349, %359 : vector<8x128xf32>
    %361 = arith.addf %358, %360 : vector<8x128xf32>
    %362 = math.tanh %361 : vector<8x128xf32>
    %cst_88 = arith.constant 1.000000e+00 : f32
    %363 = vector.broadcast %cst_88 : f32 to vector<8x128xf32>
    %364 = arith.subf %363, %357 : vector<8x128xf32>
    %365 = arith.mulf %364, %362 : vector<8x128xf32>
    %366 = arith.mulf %357, %288 : vector<8x128xf32>
    %367 = arith.addf %365, %366 : vector<8x128xf32>
    %368 = vector.extract_strided_slice %333 {offsets = [0, 0], sizes = [8, 128], strides = [1, 1]} : vector<8x384xf32> to vector<8x128xf32>
    %369 = vector.extract_strided_slice %341 {offsets = [0, 0], sizes = [8, 128], strides = [1, 1]} : vector<8x384xf32> to vector<8x128xf32>
    %370 = arith.addf %368, %369 : vector<8x128xf32>
    %371 = arith.negf %370 : vector<8x128xf32>
    %372 = math.exp %371 : vector<8x128xf32>
    %cst_89 = arith.constant 1.000000e+00 : f32
    %373 = vector.broadcast %cst_89 : f32 to vector<8x128xf32>
    %374 = arith.addf %373, %372 : vector<8x128xf32>
    %375 = arith.divf %373, %374 : vector<8x128xf32>
    %376 = vector.extract_strided_slice %333 {offsets = [0, 128], sizes = [8, 128], strides = [1, 1]} : vector<8x384xf32> to vector<8x128xf32>
    %377 = vector.extract_strided_slice %341 {offsets = [0, 128], sizes = [8, 128], strides = [1, 1]} : vector<8x384xf32> to vector<8x128xf32>
    %378 = arith.addf %376, %377 : vector<8x128xf32>
    %379 = arith.negf %378 : vector<8x128xf32>
    %380 = math.exp %379 : vector<8x128xf32>
    %cst_90 = arith.constant 1.000000e+00 : f32
    %381 = vector.broadcast %cst_90 : f32 to vector<8x128xf32>
    %382 = arith.addf %381, %380 : vector<8x128xf32>
    %383 = arith.divf %381, %382 : vector<8x128xf32>
    %384 = vector.extract_strided_slice %333 {offsets = [0, 256], sizes = [8, 128], strides = [1, 1]} : vector<8x384xf32> to vector<8x128xf32>
    %385 = vector.extract_strided_slice %341 {offsets = [0, 256], sizes = [8, 128], strides = [1, 1]} : vector<8x384xf32> to vector<8x128xf32>
    %386 = arith.mulf %375, %385 : vector<8x128xf32>
    %387 = arith.addf %384, %386 : vector<8x128xf32>
    %388 = math.tanh %387 : vector<8x128xf32>
    %cst_91 = arith.constant 1.000000e+00 : f32
    %389 = vector.broadcast %cst_91 : f32 to vector<8x128xf32>
    %390 = arith.subf %389, %383 : vector<8x128xf32>
    %391 = arith.mulf %390, %388 : vector<8x128xf32>
    %392 = arith.mulf %383, %314 : vector<8x128xf32>
    %393 = arith.addf %391, %392 : vector<8x128xf32>
    %394 = arith.truncf %367 : vector<8x128xf32> to vector<8x128xbf16>
    %395 = arith.index_cast %c4_i32 : i32 to index
    %c0_92 = arith.constant 0 : index
    %c0_93 = arith.constant 0 : index
    %396 = vector.load %arg7[%395, %c0_92, %c0_93] : memref<8x8x128xbf16, #tpu.memory_space<vmem>>, vector<1x8x128xbf16>
    %397 = vector.shape_cast %396 : vector<1x8x128xbf16> to vector<8x128xbf16>
    %398 = vector.shape_cast %394 : vector<8x128xbf16> to vector<1x8x128xbf16>
    tpu.vector_store %arg7[%395, %c0_92, %c0_93], %398 {strides = array<i32>} : memref<8x8x128xbf16, #tpu.memory_space<vmem>>, vector<1x8x128xbf16>,
    %399 = arith.truncf %393 : vector<8x128xf32> to vector<8x128xbf16>
    %400 = arith.index_cast %325 : i32 to index
    %c0_94 = arith.constant 0 : index
    %c0_95 = arith.constant 0 : index
    %401 = vector.load %arg8[%400, %c0_94, %c0_95] : memref<8x8x128xbf16, #tpu.memory_space<vmem>>, vector<1x8x128xbf16>
    %402 = vector.shape_cast %401 : vector<1x8x128xbf16> to vector<8x128xbf16>
    %403 = vector.shape_cast %399 : vector<8x128xbf16> to vector<1x8x128xbf16>
    tpu.vector_store %arg8[%400, %c0_94, %c0_95], %403 {strides = array<i32>} : memref<8x8x128xbf16, #tpu.memory_space<vmem>>, vector<1x8x128xbf16>,
    %c5_i32 = arith.constant 5 : i32
    %c7_i32_96 = arith.constant 7 : i32
    %404 = arith.subi %c7_i32_96, %c5_i32 : i32
    %405 = arith.index_cast %c5_i32 : i32 to index
    %c0_97 = arith.constant 0 : index
    %c0_98 = arith.constant 0 : index
    %406 = vector.load %arg1[%405, %c0_97, %c0_98] : memref<8x8x384xbf16, #tpu.memory_space<vmem>>, vector<1x8x384xbf16>
    %407 = vector.shape_cast %406 : vector<1x8x384xbf16> to vector<8x384xbf16>
    %408 = arith.extf %407 : vector<8x384xbf16> to vector<8x384xf32>
    %409 = arith.index_cast %404 : i32 to index
    %c0_99 = arith.constant 0 : index
    %c0_100 = arith.constant 0 : index
    %410 = vector.load %arg2[%409, %c0_99, %c0_100] : memref<8x8x384xbf16, #tpu.memory_space<vmem>>, vector<1x8x384xbf16>
    %411 = vector.shape_cast %410 : vector<1x8x384xbf16> to vector<8x384xbf16>
    %412 = arith.extf %411 : vector<8x384xbf16> to vector<8x384xf32>
    %413 = arith.truncf %367 : vector<8x128xf32> to vector<8x128xbf16>
    %cst_101 = arith.constant dense<0.000000e+00> : vector<8x384xf32>
    %414 = tpu.matmul %413, %3, %cst_101 {dimension_numbers = #tpu.dot_dimension_numbers<[1], [0], [0], [1], [0, 0, 1, 1], [], []>} : vector<8x128xbf16>, vector<128x384xbf16>, vector<8x384xf32> -> vector<8x384xf32>
    %415 = vector.broadcast %5 : vector<1x384xf32> to vector<8x384xf32>
    %416 = arith.addf %414, %415 : vector<8x384xf32>
    %417 = arith.truncf %393 : vector<8x128xf32> to vector<8x128xbf16>
    %cst_102 = arith.constant dense<0.000000e+00> : vector<8x384xf32>
    %418 = tpu.matmul %417, %4, %cst_102 {dimension_numbers = #tpu.dot_dimension_numbers<[1], [0], [0], [1], [0, 0, 1, 1], [], []>} : vector<8x128xbf16>, vector<128x384xbf16>, vector<8x384xf32> -> vector<8x384xf32>
    %419 = vector.broadcast %6 : vector<1x384xf32> to vector<8x384xf32>
    %420 = arith.addf %418, %419 : vector<8x384xf32>
    %421 = vector.extract_strided_slice %408 {offsets = [0, 0], sizes = [8, 128], strides = [1, 1]} : vector<8x384xf32> to vector<8x128xf32>
    %422 = vector.extract_strided_slice %416 {offsets = [0, 0], sizes = [8, 128], strides = [1, 1]} : vector<8x384xf32> to vector<8x128xf32>
    %423 = arith.addf %421, %422 : vector<8x128xf32>
    %424 = arith.negf %423 : vector<8x128xf32>
    %425 = math.exp %424 : vector<8x128xf32>
    %cst_103 = arith.constant 1.000000e+00 : f32
    %426 = vector.broadcast %cst_103 : f32 to vector<8x128xf32>
    %427 = arith.addf %426, %425 : vector<8x128xf32>
    %428 = arith.divf %426, %427 : vector<8x128xf32>
    %429 = vector.extract_strided_slice %408 {offsets = [0, 128], sizes = [8, 128], strides = [1, 1]} : vector<8x384xf32> to vector<8x128xf32>
    %430 = vector.extract_strided_slice %416 {offsets = [0, 128], sizes = [8, 128], strides = [1, 1]} : vector<8x384xf32> to vector<8x128xf32>
    %431 = arith.addf %429, %430 : vector<8x128xf32>
    %432 = arith.negf %431 : vector<8x128xf32>
    %433 = math.exp %432 : vector<8x128xf32>
    %cst_104 = arith.constant 1.000000e+00 : f32
    %434 = vector.broadcast %cst_104 : f32 to vector<8x128xf32>
    %435 = arith.addf %434, %433 : vector<8x128xf32>
    %436 = arith.divf %434, %435 : vector<8x128xf32>
    %437 = vector.extract_strided_slice %408 {offsets = [0, 256], sizes = [8, 128], strides = [1, 1]} : vector<8x384xf32> to vector<8x128xf32>
    %438 = vector.extract_strided_slice %416 {offsets = [0, 256], sizes = [8, 128], strides = [1, 1]} : vector<8x384xf32> to vector<8x128xf32>
    %439 = arith.mulf %428, %438 : vector<8x128xf32>
    %440 = arith.addf %437, %439 : vector<8x128xf32>
    %441 = math.tanh %440 : vector<8x128xf32>
    %cst_105 = arith.constant 1.000000e+00 : f32
    %442 = vector.broadcast %cst_105 : f32 to vector<8x128xf32>
    %443 = arith.subf %442, %436 : vector<8x128xf32>
    %444 = arith.mulf %443, %441 : vector<8x128xf32>
    %445 = arith.mulf %436, %367 : vector<8x128xf32>
    %446 = arith.addf %444, %445 : vector<8x128xf32>
    %447 = vector.extract_strided_slice %412 {offsets = [0, 0], sizes = [8, 128], strides = [1, 1]} : vector<8x384xf32> to vector<8x128xf32>
    %448 = vector.extract_strided_slice %420 {offsets = [0, 0], sizes = [8, 128], strides = [1, 1]} : vector<8x384xf32> to vector<8x128xf32>
    %449 = arith.addf %447, %448 : vector<8x128xf32>
    %450 = arith.negf %449 : vector<8x128xf32>
    %451 = math.exp %450 : vector<8x128xf32>
    %cst_106 = arith.constant 1.000000e+00 : f32
    %452 = vector.broadcast %cst_106 : f32 to vector<8x128xf32>
    %453 = arith.addf %452, %451 : vector<8x128xf32>
    %454 = arith.divf %452, %453 : vector<8x128xf32>
    %455 = vector.extract_strided_slice %412 {offsets = [0, 128], sizes = [8, 128], strides = [1, 1]} : vector<8x384xf32> to vector<8x128xf32>
    %456 = vector.extract_strided_slice %420 {offsets = [0, 128], sizes = [8, 128], strides = [1, 1]} : vector<8x384xf32> to vector<8x128xf32>
    %457 = arith.addf %455, %456 : vector<8x128xf32>
    %458 = arith.negf %457 : vector<8x128xf32>
    %459 = math.exp %458 : vector<8x128xf32>
    %cst_107 = arith.constant 1.000000e+00 : f32
    %460 = vector.broadcast %cst_107 : f32 to vector<8x128xf32>
    %461 = arith.addf %460, %459 : vector<8x128xf32>
    %462 = arith.divf %460, %461 : vector<8x128xf32>
    %463 = vector.extract_strided_slice %412 {offsets = [0, 256], sizes = [8, 128], strides = [1, 1]} : vector<8x384xf32> to vector<8x128xf32>
    %464 = vector.extract_strided_slice %420 {offsets = [0, 256], sizes = [8, 128], strides = [1, 1]} : vector<8x384xf32> to vector<8x128xf32>
    %465 = arith.mulf %454, %464 : vector<8x128xf32>
    %466 = arith.addf %463, %465 : vector<8x128xf32>
    %467 = math.tanh %466 : vector<8x128xf32>
    %cst_108 = arith.constant 1.000000e+00 : f32
    %468 = vector.broadcast %cst_108 : f32 to vector<8x128xf32>
    %469 = arith.subf %468, %462 : vector<8x128xf32>
    %470 = arith.mulf %469, %467 : vector<8x128xf32>
    %471 = arith.mulf %462, %393 : vector<8x128xf32>
    %472 = arith.addf %470, %471 : vector<8x128xf32>
    %473 = arith.truncf %446 : vector<8x128xf32> to vector<8x128xbf16>
    %474 = arith.index_cast %c5_i32 : i32 to index
    %c0_109 = arith.constant 0 : index
    %c0_110 = arith.constant 0 : index
    %475 = vector.load %arg7[%474, %c0_109, %c0_110] : memref<8x8x128xbf16, #tpu.memory_space<vmem>>, vector<1x8x128xbf16>
    %476 = vector.shape_cast %475 : vector<1x8x128xbf16> to vector<8x128xbf16>
    %477 = vector.shape_cast %473 : vector<8x128xbf16> to vector<1x8x128xbf16>
    tpu.vector_store %arg7[%474, %c0_109, %c0_110], %477 {strides = array<i32>} : memref<8x8x128xbf16, #tpu.memory_space<vmem>>, vector<1x8x128xbf16>,
    %478 = arith.truncf %472 : vector<8x128xf32> to vector<8x128xbf16>
    %479 = arith.index_cast %404 : i32 to index
    %c0_111 = arith.constant 0 : index
    %c0_112 = arith.constant 0 : index
    %480 = vector.load %arg8[%479, %c0_111, %c0_112] : memref<8x8x128xbf16, #tpu.memory_space<vmem>>, vector<1x8x128xbf16>
    %481 = vector.shape_cast %480 : vector<1x8x128xbf16> to vector<8x128xbf16>
    %482 = vector.shape_cast %478 : vector<8x128xbf16> to vector<1x8x128xbf16>
    tpu.vector_store %arg8[%479, %c0_111, %c0_112], %482 {strides = array<i32>} : memref<8x8x128xbf16, #tpu.memory_space<vmem>>, vector<1x8x128xbf16>,
    %c6_i32 = arith.constant 6 : i32
    %c7_i32_113 = arith.constant 7 : i32
    %483 = arith.subi %c7_i32_113, %c6_i32 : i32
    %484 = arith.index_cast %c6_i32 : i32 to index
    %c0_114 = arith.constant 0 : index
    %c0_115 = arith.constant 0 : index
    %485 = vector.load %arg1[%484, %c0_114, %c0_115] : memref<8x8x384xbf16, #tpu.memory_space<vmem>>, vector<1x8x384xbf16>
    %486 = vector.shape_cast %485 : vector<1x8x384xbf16> to vector<8x384xbf16>
    %487 = arith.extf %486 : vector<8x384xbf16> to vector<8x384xf32>
    %488 = arith.index_cast %483 : i32 to index
    %c0_116 = arith.constant 0 : index
    %c0_117 = arith.constant 0 : index
    %489 = vector.load %arg2[%488, %c0_116, %c0_117] : memref<8x8x384xbf16, #tpu.memory_space<vmem>>, vector<1x8x384xbf16>
    %490 = vector.shape_cast %489 : vector<1x8x384xbf16> to vector<8x384xbf16>
    %491 = arith.extf %490 : vector<8x384xbf16> to vector<8x384xf32>
    %492 = arith.truncf %446 : vector<8x128xf32> to vector<8x128xbf16>
    %cst_118 = arith.constant dense<0.000000e+00> : vector<8x384xf32>
    %493 = tpu.matmul %492, %3, %cst_118 {dimension_numbers = #tpu.dot_dimension_numbers<[1], [0], [0], [1], [0, 0, 1, 1], [], []>} : vector<8x128xbf16>, vector<128x384xbf16>, vector<8x384xf32> -> vector<8x384xf32>
    %494 = vector.broadcast %5 : vector<1x384xf32> to vector<8x384xf32>
    %495 = arith.addf %493, %494 : vector<8x384xf32>
    %496 = arith.truncf %472 : vector<8x128xf32> to vector<8x128xbf16>
    %cst_119 = arith.constant dense<0.000000e+00> : vector<8x384xf32>
    %497 = tpu.matmul %496, %4, %cst_119 {dimension_numbers = #tpu.dot_dimension_numbers<[1], [0], [0], [1], [0, 0, 1, 1], [], []>} : vector<8x128xbf16>, vector<128x384xbf16>, vector<8x384xf32> -> vector<8x384xf32>
    %498 = vector.broadcast %6 : vector<1x384xf32> to vector<8x384xf32>
    %499 = arith.addf %497, %498 : vector<8x384xf32>
    %500 = vector.extract_strided_slice %487 {offsets = [0, 0], sizes = [8, 128], strides = [1, 1]} : vector<8x384xf32> to vector<8x128xf32>
    %501 = vector.extract_strided_slice %495 {offsets = [0, 0], sizes = [8, 128], strides = [1, 1]} : vector<8x384xf32> to vector<8x128xf32>
    %502 = arith.addf %500, %501 : vector<8x128xf32>
    %503 = arith.negf %502 : vector<8x128xf32>
    %504 = math.exp %503 : vector<8x128xf32>
    %cst_120 = arith.constant 1.000000e+00 : f32
    %505 = vector.broadcast %cst_120 : f32 to vector<8x128xf32>
    %506 = arith.addf %505, %504 : vector<8x128xf32>
    %507 = arith.divf %505, %506 : vector<8x128xf32>
    %508 = vector.extract_strided_slice %487 {offsets = [0, 128], sizes = [8, 128], strides = [1, 1]} : vector<8x384xf32> to vector<8x128xf32>
    %509 = vector.extract_strided_slice %495 {offsets = [0, 128], sizes = [8, 128], strides = [1, 1]} : vector<8x384xf32> to vector<8x128xf32>
    %510 = arith.addf %508, %509 : vector<8x128xf32>
    %511 = arith.negf %510 : vector<8x128xf32>
    %512 = math.exp %511 : vector<8x128xf32>
    %cst_121 = arith.constant 1.000000e+00 : f32
    %513 = vector.broadcast %cst_121 : f32 to vector<8x128xf32>
    %514 = arith.addf %513, %512 : vector<8x128xf32>
    %515 = arith.divf %513, %514 : vector<8x128xf32>
    %516 = vector.extract_strided_slice %487 {offsets = [0, 256], sizes = [8, 128], strides = [1, 1]} : vector<8x384xf32> to vector<8x128xf32>
    %517 = vector.extract_strided_slice %495 {offsets = [0, 256], sizes = [8, 128], strides = [1, 1]} : vector<8x384xf32> to vector<8x128xf32>
    %518 = arith.mulf %507, %517 : vector<8x128xf32>
    %519 = arith.addf %516, %518 : vector<8x128xf32>
    %520 = math.tanh %519 : vector<8x128xf32>
    %cst_122 = arith.constant 1.000000e+00 : f32
    %521 = vector.broadcast %cst_122 : f32 to vector<8x128xf32>
    %522 = arith.subf %521, %515 : vector<8x128xf32>
    %523 = arith.mulf %522, %520 : vector<8x128xf32>
    %524 = arith.mulf %515, %446 : vector<8x128xf32>
    %525 = arith.addf %523, %524 : vector<8x128xf32>
    %526 = vector.extract_strided_slice %491 {offsets = [0, 0], sizes = [8, 128], strides = [1, 1]} : vector<8x384xf32> to vector<8x128xf32>
    %527 = vector.extract_strided_slice %499 {offsets = [0, 0], sizes = [8, 128], strides = [1, 1]} : vector<8x384xf32> to vector<8x128xf32>
    %528 = arith.addf %526, %527 : vector<8x128xf32>
    %529 = arith.negf %528 : vector<8x128xf32>
    %530 = math.exp %529 : vector<8x128xf32>
    %cst_123 = arith.constant 1.000000e+00 : f32
    %531 = vector.broadcast %cst_123 : f32 to vector<8x128xf32>
    %532 = arith.addf %531, %530 : vector<8x128xf32>
    %533 = arith.divf %531, %532 : vector<8x128xf32>
    %534 = vector.extract_strided_slice %491 {offsets = [0, 128], sizes = [8, 128], strides = [1, 1]} : vector<8x384xf32> to vector<8x128xf32>
    %535 = vector.extract_strided_slice %499 {offsets = [0, 128], sizes = [8, 128], strides = [1, 1]} : vector<8x384xf32> to vector<8x128xf32>
    %536 = arith.addf %534, %535 : vector<8x128xf32>
    %537 = arith.negf %536 : vector<8x128xf32>
    %538 = math.exp %537 : vector<8x128xf32>
    %cst_124 = arith.constant 1.000000e+00 : f32
    %539 = vector.broadcast %cst_124 : f32 to vector<8x128xf32>
    %540 = arith.addf %539, %538 : vector<8x128xf32>
    %541 = arith.divf %539, %540 : vector<8x128xf32>
    %542 = vector.extract_strided_slice %491 {offsets = [0, 256], sizes = [8, 128], strides = [1, 1]} : vector<8x384xf32> to vector<8x128xf32>
    %543 = vector.extract_strided_slice %499 {offsets = [0, 256], sizes = [8, 128], strides = [1, 1]} : vector<8x384xf32> to vector<8x128xf32>
    %544 = arith.mulf %533, %543 : vector<8x128xf32>
    %545 = arith.addf %542, %544 : vector<8x128xf32>
    %546 = math.tanh %545 : vector<8x128xf32>
    %cst_125 = arith.constant 1.000000e+00 : f32
    %547 = vector.broadcast %cst_125 : f32 to vector<8x128xf32>
    %548 = arith.subf %547, %541 : vector<8x128xf32>
    %549 = arith.mulf %548, %546 : vector<8x128xf32>
    %550 = arith.mulf %541, %472 : vector<8x128xf32>
    %551 = arith.addf %549, %550 : vector<8x128xf32>
    %552 = arith.truncf %525 : vector<8x128xf32> to vector<8x128xbf16>
    %553 = arith.index_cast %c6_i32 : i32 to index
    %c0_126 = arith.constant 0 : index
    %c0_127 = arith.constant 0 : index
    %554 = vector.load %arg7[%553, %c0_126, %c0_127] : memref<8x8x128xbf16, #tpu.memory_space<vmem>>, vector<1x8x128xbf16>
    %555 = vector.shape_cast %554 : vector<1x8x128xbf16> to vector<8x128xbf16>
    %556 = vector.shape_cast %552 : vector<8x128xbf16> to vector<1x8x128xbf16>
    tpu.vector_store %arg7[%553, %c0_126, %c0_127], %556 {strides = array<i32>} : memref<8x8x128xbf16, #tpu.memory_space<vmem>>, vector<1x8x128xbf16>,
    %557 = arith.truncf %551 : vector<8x128xf32> to vector<8x128xbf16>
    %558 = arith.index_cast %483 : i32 to index
    %c0_128 = arith.constant 0 : index
    %c0_129 = arith.constant 0 : index
    %559 = vector.load %arg8[%558, %c0_128, %c0_129] : memref<8x8x128xbf16, #tpu.memory_space<vmem>>, vector<1x8x128xbf16>
    %560 = vector.shape_cast %559 : vector<1x8x128xbf16> to vector<8x128xbf16>
    %561 = vector.shape_cast %557 : vector<8x128xbf16> to vector<1x8x128xbf16>
    tpu.vector_store %arg8[%558, %c0_128, %c0_129], %561 {strides = array<i32>} : memref<8x8x128xbf16, #tpu.memory_space<vmem>>, vector<1x8x128xbf16>,
    %c7_i32_130 = arith.constant 7 : i32
    %c7_i32_131 = arith.constant 7 : i32
    %562 = arith.subi %c7_i32_131, %c7_i32_130 : i32
    %563 = arith.index_cast %c7_i32_130 : i32 to index
    %c0_132 = arith.constant 0 : index
    %c0_133 = arith.constant 0 : index
    %564 = vector.load %arg1[%563, %c0_132, %c0_133] : memref<8x8x384xbf16, #tpu.memory_space<vmem>>, vector<1x8x384xbf16>
    %565 = vector.shape_cast %564 : vector<1x8x384xbf16> to vector<8x384xbf16>
    %566 = arith.extf %565 : vector<8x384xbf16> to vector<8x384xf32>
    %567 = arith.index_cast %562 : i32 to index
    %c0_134 = arith.constant 0 : index
    %c0_135 = arith.constant 0 : index
    %568 = vector.load %arg2[%567, %c0_134, %c0_135] : memref<8x8x384xbf16, #tpu.memory_space<vmem>>, vector<1x8x384xbf16>
    %569 = vector.shape_cast %568 : vector<1x8x384xbf16> to vector<8x384xbf16>
    %570 = arith.extf %569 : vector<8x384xbf16> to vector<8x384xf32>
    %571 = arith.truncf %525 : vector<8x128xf32> to vector<8x128xbf16>
    %cst_136 = arith.constant dense<0.000000e+00> : vector<8x384xf32>
    %572 = tpu.matmul %571, %3, %cst_136 {dimension_numbers = #tpu.dot_dimension_numbers<[1], [0], [0], [1], [0, 0, 1, 1], [], []>} : vector<8x128xbf16>, vector<128x384xbf16>, vector<8x384xf32> -> vector<8x384xf32>
    %573 = vector.broadcast %5 : vector<1x384xf32> to vector<8x384xf32>
    %574 = arith.addf %572, %573 : vector<8x384xf32>
    %575 = arith.truncf %551 : vector<8x128xf32> to vector<8x128xbf16>
    %cst_137 = arith.constant dense<0.000000e+00> : vector<8x384xf32>
    %576 = tpu.matmul %575, %4, %cst_137 {dimension_numbers = #tpu.dot_dimension_numbers<[1], [0], [0], [1], [0, 0, 1, 1], [], []>} : vector<8x128xbf16>, vector<128x384xbf16>, vector<8x384xf32> -> vector<8x384xf32>
    %577 = vector.broadcast %6 : vector<1x384xf32> to vector<8x384xf32>
    %578 = arith.addf %576, %577 : vector<8x384xf32>
    %579 = vector.extract_strided_slice %566 {offsets = [0, 0], sizes = [8, 128], strides = [1, 1]} : vector<8x384xf32> to vector<8x128xf32>
    %580 = vector.extract_strided_slice %574 {offsets = [0, 0], sizes = [8, 128], strides = [1, 1]} : vector<8x384xf32> to vector<8x128xf32>
    %581 = arith.addf %579, %580 : vector<8x128xf32>
    %582 = arith.negf %581 : vector<8x128xf32>
    %583 = math.exp %582 : vector<8x128xf32>
    %cst_138 = arith.constant 1.000000e+00 : f32
    %584 = vector.broadcast %cst_138 : f32 to vector<8x128xf32>
    %585 = arith.addf %584, %583 : vector<8x128xf32>
    %586 = arith.divf %584, %585 : vector<8x128xf32>
    %587 = vector.extract_strided_slice %566 {offsets = [0, 128], sizes = [8, 128], strides = [1, 1]} : vector<8x384xf32> to vector<8x128xf32>
    %588 = vector.extract_strided_slice %574 {offsets = [0, 128], sizes = [8, 128], strides = [1, 1]} : vector<8x384xf32> to vector<8x128xf32>
    %589 = arith.addf %587, %588 : vector<8x128xf32>
    %590 = arith.negf %589 : vector<8x128xf32>
    %591 = math.exp %590 : vector<8x128xf32>
    %cst_139 = arith.constant 1.000000e+00 : f32
    %592 = vector.broadcast %cst_139 : f32 to vector<8x128xf32>
    %593 = arith.addf %592, %591 : vector<8x128xf32>
    %594 = arith.divf %592, %593 : vector<8x128xf32>
    %595 = vector.extract_strided_slice %566 {offsets = [0, 256], sizes = [8, 128], strides = [1, 1]} : vector<8x384xf32> to vector<8x128xf32>
    %596 = vector.extract_strided_slice %574 {offsets = [0, 256], sizes = [8, 128], strides = [1, 1]} : vector<8x384xf32> to vector<8x128xf32>
    %597 = arith.mulf %586, %596 : vector<8x128xf32>
    %598 = arith.addf %595, %597 : vector<8x128xf32>
    %599 = math.tanh %598 : vector<8x128xf32>
    %cst_140 = arith.constant 1.000000e+00 : f32
    %600 = vector.broadcast %cst_140 : f32 to vector<8x128xf32>
    %601 = arith.subf %600, %594 : vector<8x128xf32>
    %602 = arith.mulf %601, %599 : vector<8x128xf32>
    %603 = arith.mulf %594, %525 : vector<8x128xf32>
    %604 = arith.addf %602, %603 : vector<8x128xf32>
    %605 = vector.extract_strided_slice %570 {offsets = [0, 0], sizes = [8, 128], strides = [1, 1]} : vector<8x384xf32> to vector<8x128xf32>
    %606 = vector.extract_strided_slice %578 {offsets = [0, 0], sizes = [8, 128], strides = [1, 1]} : vector<8x384xf32> to vector<8x128xf32>
    %607 = arith.addf %605, %606 : vector<8x128xf32>
    %608 = arith.negf %607 : vector<8x128xf32>
    %609 = math.exp %608 : vector<8x128xf32>
    %cst_141 = arith.constant 1.000000e+00 : f32
    %610 = vector.broadcast %cst_141 : f32 to vector<8x128xf32>
    %611 = arith.addf %610, %609 : vector<8x128xf32>
    %612 = arith.divf %610, %611 : vector<8x128xf32>
    %613 = vector.extract_strided_slice %570 {offsets = [0, 128], sizes = [8, 128], strides = [1, 1]} : vector<8x384xf32> to vector<8x128xf32>
    %614 = vector.extract_strided_slice %578 {offsets = [0, 128], sizes = [8, 128], strides = [1, 1]} : vector<8x384xf32> to vector<8x128xf32>
    %615 = arith.addf %613, %614 : vector<8x128xf32>
    %616 = arith.negf %615 : vector<8x128xf32>
    %617 = math.exp %616 : vector<8x128xf32>
    %cst_142 = arith.constant 1.000000e+00 : f32
    %618 = vector.broadcast %cst_142 : f32 to vector<8x128xf32>
    %619 = arith.addf %618, %617 : vector<8x128xf32>
    %620 = arith.divf %618, %619 : vector<8x128xf32>
    %621 = vector.extract_strided_slice %570 {offsets = [0, 256], sizes = [8, 128], strides = [1, 1]} : vector<8x384xf32> to vector<8x128xf32>
    %622 = vector.extract_strided_slice %578 {offsets = [0, 256], sizes = [8, 128], strides = [1, 1]} : vector<8x384xf32> to vector<8x128xf32>
    %623 = arith.mulf %612, %622 : vector<8x128xf32>
    %624 = arith.addf %621, %623 : vector<8x128xf32>
    %625 = math.tanh %624 : vector<8x128xf32>
    %cst_143 = arith.constant 1.000000e+00 : f32
    %626 = vector.broadcast %cst_143 : f32 to vector<8x128xf32>
    %627 = arith.subf %626, %620 : vector<8x128xf32>
    %628 = arith.mulf %627, %625 : vector<8x128xf32>
    %629 = arith.mulf %620, %551 : vector<8x128xf32>
    %630 = arith.addf %628, %629 : vector<8x128xf32>
    %631 = arith.truncf %604 : vector<8x128xf32> to vector<8x128xbf16>
    %632 = arith.index_cast %c7_i32_130 : i32 to index
    %c0_144 = arith.constant 0 : index
    %c0_145 = arith.constant 0 : index
    %633 = vector.load %arg7[%632, %c0_144, %c0_145] : memref<8x8x128xbf16, #tpu.memory_space<vmem>>, vector<1x8x128xbf16>
    %634 = vector.shape_cast %633 : vector<1x8x128xbf16> to vector<8x128xbf16>
    %635 = vector.shape_cast %631 : vector<8x128xbf16> to vector<1x8x128xbf16>
    tpu.vector_store %arg7[%632, %c0_144, %c0_145], %635 {strides = array<i32>} : memref<8x8x128xbf16, #tpu.memory_space<vmem>>, vector<1x8x128xbf16>,
    %636 = arith.truncf %630 : vector<8x128xf32> to vector<8x128xbf16>
    %637 = arith.index_cast %562 : i32 to index
    %c0_146 = arith.constant 0 : index
    %c0_147 = arith.constant 0 : index
    %638 = vector.load %arg8[%637, %c0_146, %c0_147] : memref<8x8x128xbf16, #tpu.memory_space<vmem>>, vector<1x8x128xbf16>
    %639 = vector.shape_cast %638 : vector<1x8x128xbf16> to vector<8x128xbf16>
    %640 = vector.shape_cast %636 : vector<8x128xbf16> to vector<1x8x128xbf16>
    tpu.vector_store %arg8[%637, %c0_146, %c0_147], %640 {strides = array<i32>} : memref<8x8x128xbf16, #tpu.memory_space<vmem>>, vector<1x8x128xbf16>,
    %c8_i32 = arith.constant 8 : i32
    %c0_148 = arith.constant 0 : index
    %c0_149 = arith.constant 0 : index
    %641 = vector.load %arg9[%c0_148, %c0_149] : memref<8x128xf32, #tpu.memory_space<vmem>>, vector<8x128xf32>
    tpu.vector_store %arg9[%c0_148, %c0_149], %604 {strides = array<i32>} : memref<8x128xf32, #tpu.memory_space<vmem>>, vector<8x128xf32>,
    %c0_150 = arith.constant 0 : index
    %c0_151 = arith.constant 0 : index
    %642 = vector.load %arg10[%c0_150, %c0_151] : memref<8x128xf32, #tpu.memory_space<vmem>>, vector<8x128xf32>
    tpu.vector_store %arg10[%c0_150, %c0_151], %630 {strides = array<i32>} : memref<8x128xf32, #tpu.memory_space<vmem>>, vector<8x128xf32>,
    return
  }
  func.func @transform_0(%arg0: i32) -> (i32, i32, i32) {
    %c0_i32 = arith.constant 0 : i32
    %c0_i32_0 = arith.constant 0 : i32
    %c0_i32_1 = arith.constant 0 : i32
    return %arg0, %c0_i32, %c0_i32_0 : i32, i32, i32
  }
  func.func @transform_1(%arg0: i32) -> (i32, i32, i32) {
    %c0_i32 = arith.constant 0 : i32
    %0 = arith.subi %c0_i32, %arg0 : i32
    %c0_i32_0 = arith.constant 0 : i32
    %c1_i32 = arith.constant 1 : i32
    %c0_i32_1 = arith.constant 0 : i32
    return %0, %c0_i32_0, %c1_i32 : i32, i32, i32
  }
  func.func @transform_2(%arg0: i32) -> (i32, i32) {
    %c0_i32 = arith.constant 0 : i32
    %c0_i32_0 = arith.constant 0 : i32
    %c0_i32_1 = arith.constant 0 : i32
    return %c0_i32, %c0_i32_0 : i32, i32
  }
  func.func @transform_3(%arg0: i32) -> (i32, i32) {
    %c0_i32 = arith.constant 0 : i32
    %c0_i32_0 = arith.constant 0 : i32
    %c0_i32_1 = arith.constant 0 : i32
    return %c0_i32, %c0_i32_0 : i32, i32
  }
  func.func @transform_4(%arg0: i32) -> (i32, i32) {
    %c0_i32 = arith.constant 0 : i32
    %c0_i32_0 = arith.constant 0 : i32
    %c0_i32_1 = arith.constant 0 : i32
    return %c0_i32, %c0_i32_0 : i32, i32
  }
  func.func @transform_5(%arg0: i32) -> (i32, i32) {
    %c0_i32 = arith.constant 0 : i32
    %c0_i32_0 = arith.constant 0 : i32
    %c0_i32_1 = arith.constant 0 : i32
    return %c0_i32, %c0_i32_0 : i32, i32
  }
  func.func @transform_6(%arg0: i32) -> (i32, i32, i32) {
    %c0_i32 = arith.constant 0 : i32
    %c0_i32_0 = arith.constant 0 : i32
    %c0_i32_1 = arith.constant 0 : i32
    return %arg0, %c0_i32, %c0_i32_0 : i32, i32, i32
  }
  func.func @transform_7(%arg0: i32) -> (i32, i32, i32) {
    %c0_i32 = arith.constant 0 : i32
    %0 = arith.subi %c0_i32, %arg0 : i32
    %c0_i32_0 = arith.constant 0 : i32
    %c0_i32_1 = arith.constant 0 : i32
    %c0_i32_2 = arith.constant 0 : i32
    return %0, %c0_i32_0, %c0_i32_1 : i32, i32, i32
  }
}

module attributes {stable_mosaic.version = 11 : i64} {
  func.func @_dual_linear_kernel(%arg0: i32, %arg1: i32, %arg2: memref<16x128xbf16, #tpu.memory_space<vmem>>, %arg3: memref<128x64xbf16, #tpu.memory_space<vmem>>, %arg4: memref<16x128xbf16, #tpu.memory_space<vmem>>, %arg5: memref<128x64xbf16, #tpu.memory_space<vmem>>, %arg6: memref<1x64xf32, #tpu.memory_space<vmem>>, %arg7: memref<16x64xf32, #tpu.memory_space<vmem>>) attributes {dimension_semantics = [#tpu.dimension_semantics<parallel>, #tpu.dimension_semantics<parallel>], iteration_bounds = array<i64: 1, 1>, scalar_prefetch = 0 : i64, scratch_operands = 0 : i64, tpu.core_type = #tpu.core_type<tc>, window_params = [{transform_indices = @transform_0, window_bounds = array<i64: 16, 128>}, {transform_indices = @transform_1, window_bounds = array<i64: 128, 64>}, {transform_indices = @transform_2, window_bounds = array<i64: 16, 128>}, {transform_indices = @transform_3, window_bounds = array<i64: 128, 64>}, {transform_indices = @transform_4, window_bounds = array<i64: 1, 64>}, {transform_indices = @transform_5, window_bounds = array<i64: 16, 64>}]} {
    %c0 = arith.constant 0 : index
    %c0_0 = arith.constant 0 : index
    %0 = vector.load %arg3[%c0, %c0_0] : memref<128x64xbf16, #tpu.memory_space<vmem>>, vector<128x64xbf16>
    %c0_1 = arith.constant 0 : index
    %c0_2 = arith.constant 0 : index
    %1 = vector.load %arg5[%c0_1, %c0_2] : memref<128x64xbf16, #tpu.memory_space<vmem>>, vector<128x64xbf16>
    %c0_3 = arith.constant 0 : index
    %c0_4 = arith.constant 0 : index
    %2 = vector.load %arg2[%c0_3, %c0_4] : memref<16x128xbf16, #tpu.memory_space<vmem>>, vector<16x128xbf16>
    %cst = arith.constant dense<0.000000e+00> : vector<16x64xf32>
    %3 = tpu.matmul %2, %0, %cst {dimension_numbers = #tpu.dot_dimension_numbers<[1], [0], [0], [1], [0, 0, 1, 1], [], []>} : vector<16x128xbf16>, vector<128x64xbf16>, vector<16x64xf32> -> vector<16x64xf32>
    %c0_5 = arith.constant 0 : index
    %c0_6 = arith.constant 0 : index
    %4 = vector.load %arg4[%c0_5, %c0_6] : memref<16x128xbf16, #tpu.memory_space<vmem>>, vector<16x128xbf16>
    %cst_7 = arith.constant dense<0.000000e+00> : vector<16x64xf32>
    %5 = tpu.matmul %4, %1, %cst_7 {dimension_numbers = #tpu.dot_dimension_numbers<[1], [0], [0], [1], [0, 0, 1, 1], [], []>} : vector<16x128xbf16>, vector<128x64xbf16>, vector<16x64xf32> -> vector<16x64xf32>
    %6 = arith.addf %3, %5 : vector<16x64xf32>
    %c0_8 = arith.constant 0 : index
    %c0_9 = arith.constant 0 : index
    %7 = vector.load %arg6[%c0_8, %c0_9] : memref<1x64xf32, #tpu.memory_space<vmem>>, vector<1x64xf32>
    %8 = vector.broadcast %7 : vector<1x64xf32> to vector<16x64xf32>
    %9 = arith.addf %6, %8 : vector<16x64xf32>
    %c0_10 = arith.constant 0 : index
    %c0_11 = arith.constant 0 : index
    %10 = vector.load %arg7[%c0_10, %c0_11] : memref<16x64xf32, #tpu.memory_space<vmem>>, vector<16x64xf32>
    tpu.vector_store %arg7[%c0_10, %c0_11], %9 {strides = array<i32>} : memref<16x64xf32, #tpu.memory_space<vmem>>, vector<16x64xf32>,
    return
  }
  func.func @transform_0(%arg0: i32, %arg1: i32) -> (i32, i32) {
    %c0_i32 = arith.constant 0 : i32
    %c0_i32_0 = arith.constant 0 : i32
    return %arg0, %c0_i32 : i32, i32
  }
  func.func @transform_1(%arg0: i32, %arg1: i32) -> (i32, i32) {
    %c0_i32 = arith.constant 0 : i32
    %c0_i32_0 = arith.constant 0 : i32
    return %c0_i32, %arg1 : i32, i32
  }
  func.func @transform_2(%arg0: i32, %arg1: i32) -> (i32, i32) {
    %c0_i32 = arith.constant 0 : i32
    %c0_i32_0 = arith.constant 0 : i32
    return %arg0, %c0_i32 : i32, i32
  }
  func.func @transform_3(%arg0: i32, %arg1: i32) -> (i32, i32) {
    %c0_i32 = arith.constant 0 : i32
    %c0_i32_0 = arith.constant 0 : i32
    return %c0_i32, %arg1 : i32, i32
  }
  func.func @transform_4(%arg0: i32, %arg1: i32) -> (i32, i32) {
    %c0_i32 = arith.constant 0 : i32
    %c0_i32_0 = arith.constant 0 : i32
    return %c0_i32, %arg1 : i32, i32
  }
  func.func @transform_5(%arg0: i32, %arg1: i32) -> (i32, i32) {
    %c0_i32 = arith.constant 0 : i32
    return %arg0, %arg1 : i32, i32
  }
}

module attributes {stable_mosaic.version = 11 : i64} {
  func.func @kernel(%arg0: i32, %arg1: memref<16xi32, #tpu.memory_space<smem>>, %arg2: memref<50x64xf32, #tpu.memory_space<any>>, %arg3: memref<16x64xf32, #tpu.memory_space<vmem>>, %arg4: memref<16x64xf32, #tpu.memory_space<vmem>>, %arg5: memref<16x!tpu.dma_semaphore, #tpu.memory_space<semaphore_mem>>) attributes {dimension_semantics = [#tpu.dimension_semantics<parallel>], iteration_bounds = array<i64: 1>, scalar_prefetch = 1 : i64, scratch_operands = 2 : i64, tpu.core_type = #tpu.core_type<tc>, window_params = [{}, {transform_indices = @transform_1, window_bounds = array<i64: 16, 64>}]} {
    %c16_i32 = arith.constant 16 : i32
    %0 = arith.muli %arg0, %c16_i32 : i32
    %c0_i32 = arith.constant 0 : i32
    %1 = arith.addi %0, %c0_i32 : i32
    %2 = arith.index_cast %1 : i32 to index
    %3 = memref.load %arg1[%2] : memref<16xi32, #tpu.memory_space<smem>>
    %c0_i32_0 = arith.constant 0 : i32
    %c0_i32_1 = arith.constant 0 : i32
    %c0_i32_2 = arith.constant 0 : i32
    %4 = tpu.memref_slice %arg2[%3, %c0_i32_2] : memref<50x64xf32, #tpu.memory_space<any>> -> memref<1x64xf32, #tpu.memory_space<any>>
    %5 = tpu.memref_squeeze %4 : memref<1x64xf32, #tpu.memory_space<any>> -> memref<64xf32, #tpu.memory_space<any>>
    %c0_i32_3 = arith.constant 0 : i32
    %6 = tpu.memref_slice %arg4[%c0_i32_0, %c0_i32_3] : memref<16x64xf32, #tpu.memory_space<vmem>> -> memref<1x64xf32, #tpu.memory_space<vmem>>
    %7 = tpu.memref_squeeze %6 : memref<1x64xf32, #tpu.memory_space<vmem>> -> memref<64xf32, #tpu.memory_space<vmem>>
    %8 = tpu.memref_slice %arg5[%c0_i32_1] : memref<16x!tpu.dma_semaphore, #tpu.memory_space<semaphore_mem>> -> memref<1x!tpu.dma_semaphore, #tpu.memory_space<semaphore_mem>>
    %9 = tpu.memref_squeeze %8 : memref<1x!tpu.dma_semaphore, #tpu.memory_space<semaphore_mem>> -> memref<!tpu.dma_semaphore, #tpu.memory_space<semaphore_mem>>
    tpu.enqueue_dma source(%5 : memref<64xf32, #tpu.memory_space<any>>) target(%7 : memref<64xf32, #tpu.memory_space<vmem>>) target_semaphore(%9 : memref<!tpu.dma_semaphore, #tpu.memory_space<semaphore_mem>>)
    %c1_i32 = arith.constant 1 : i32
    %10 = arith.addi %0, %c1_i32 : i32
    %11 = arith.index_cast %10 : i32 to index
    %12 = memref.load %arg1[%11] : memref<16xi32, #tpu.memory_space<smem>>
    %c1_i32_4 = arith.constant 1 : i32
    %c1_i32_5 = arith.constant 1 : i32
    %c0_i32_6 = arith.constant 0 : i32
    %13 = tpu.memref_slice %arg2[%12, %c0_i32_6] : memref<50x64xf32, #tpu.memory_space<any>> -> memref<1x64xf32, #tpu.memory_space<any>>
    %14 = tpu.memref_squeeze %13 : memref<1x64xf32, #tpu.memory_space<any>> -> memref<64xf32, #tpu.memory_space<any>>
    %c0_i32_7 = arith.constant 0 : i32
    %15 = tpu.memref_slice %arg4[%c1_i32_4, %c0_i32_7] : memref<16x64xf32, #tpu.memory_space<vmem>> -> memref<1x64xf32, #tpu.memory_space<vmem>>
    %16 = tpu.memref_squeeze %15 : memref<1x64xf32, #tpu.memory_space<vmem>> -> memref<64xf32, #tpu.memory_space<vmem>>
    %17 = tpu.memref_slice %arg5[%c1_i32_5] : memref<16x!tpu.dma_semaphore, #tpu.memory_space<semaphore_mem>> -> memref<1x!tpu.dma_semaphore, #tpu.memory_space<semaphore_mem>>
    %18 = tpu.memref_squeeze %17 : memref<1x!tpu.dma_semaphore, #tpu.memory_space<semaphore_mem>> -> memref<!tpu.dma_semaphore, #tpu.memory_space<semaphore_mem>>
    tpu.enqueue_dma source(%14 : memref<64xf32, #tpu.memory_space<any>>) target(%16 : memref<64xf32, #tpu.memory_space<vmem>>) target_semaphore(%18 : memref<!tpu.dma_semaphore, #tpu.memory_space<semaphore_mem>>)
    %c2_i32 = arith.constant 2 : i32
    %19 = arith.addi %0, %c2_i32 : i32
    %20 = arith.index_cast %19 : i32 to index
    %21 = memref.load %arg1[%20] : memref<16xi32, #tpu.memory_space<smem>>
    %c2_i32_8 = arith.constant 2 : i32
    %c2_i32_9 = arith.constant 2 : i32
    %c0_i32_10 = arith.constant 0 : i32
    %22 = tpu.memref_slice %arg2[%21, %c0_i32_10] : memref<50x64xf32, #tpu.memory_space<any>> -> memref<1x64xf32, #tpu.memory_space<any>>
    %23 = tpu.memref_squeeze %22 : memref<1x64xf32, #tpu.memory_space<any>> -> memref<64xf32, #tpu.memory_space<any>>
    %c0_i32_11 = arith.constant 0 : i32
    %24 = tpu.memref_slice %arg4[%c2_i32_8, %c0_i32_11] : memref<16x64xf32, #tpu.memory_space<vmem>> -> memref<1x64xf32, #tpu.memory_space<vmem>>
    %25 = tpu.memref_squeeze %24 : memref<1x64xf32, #tpu.memory_space<vmem>> -> memref<64xf32, #tpu.memory_space<vmem>>
    %26 = tpu.memref_slice %arg5[%c2_i32_9] : memref<16x!tpu.dma_semaphore, #tpu.memory_space<semaphore_mem>> -> memref<1x!tpu.dma_semaphore, #tpu.memory_space<semaphore_mem>>
    %27 = tpu.memref_squeeze %26 : memref<1x!tpu.dma_semaphore, #tpu.memory_space<semaphore_mem>> -> memref<!tpu.dma_semaphore, #tpu.memory_space<semaphore_mem>>
    tpu.enqueue_dma source(%23 : memref<64xf32, #tpu.memory_space<any>>) target(%25 : memref<64xf32, #tpu.memory_space<vmem>>) target_semaphore(%27 : memref<!tpu.dma_semaphore, #tpu.memory_space<semaphore_mem>>)
    %c3_i32 = arith.constant 3 : i32
    %28 = arith.addi %0, %c3_i32 : i32
    %29 = arith.index_cast %28 : i32 to index
    %30 = memref.load %arg1[%29] : memref<16xi32, #tpu.memory_space<smem>>
    %c3_i32_12 = arith.constant 3 : i32
    %c3_i32_13 = arith.constant 3 : i32
    %c0_i32_14 = arith.constant 0 : i32
    %31 = tpu.memref_slice %arg2[%30, %c0_i32_14] : memref<50x64xf32, #tpu.memory_space<any>> -> memref<1x64xf32, #tpu.memory_space<any>>
    %32 = tpu.memref_squeeze %31 : memref<1x64xf32, #tpu.memory_space<any>> -> memref<64xf32, #tpu.memory_space<any>>
    %c0_i32_15 = arith.constant 0 : i32
    %33 = tpu.memref_slice %arg4[%c3_i32_12, %c0_i32_15] : memref<16x64xf32, #tpu.memory_space<vmem>> -> memref<1x64xf32, #tpu.memory_space<vmem>>
    %34 = tpu.memref_squeeze %33 : memref<1x64xf32, #tpu.memory_space<vmem>> -> memref<64xf32, #tpu.memory_space<vmem>>
    %35 = tpu.memref_slice %arg5[%c3_i32_13] : memref<16x!tpu.dma_semaphore, #tpu.memory_space<semaphore_mem>> -> memref<1x!tpu.dma_semaphore, #tpu.memory_space<semaphore_mem>>
    %36 = tpu.memref_squeeze %35 : memref<1x!tpu.dma_semaphore, #tpu.memory_space<semaphore_mem>> -> memref<!tpu.dma_semaphore, #tpu.memory_space<semaphore_mem>>
    tpu.enqueue_dma source(%32 : memref<64xf32, #tpu.memory_space<any>>) target(%34 : memref<64xf32, #tpu.memory_space<vmem>>) target_semaphore(%36 : memref<!tpu.dma_semaphore, #tpu.memory_space<semaphore_mem>>)
    %c4_i32 = arith.constant 4 : i32
    %37 = arith.addi %0, %c4_i32 : i32
    %38 = arith.index_cast %37 : i32 to index
    %39 = memref.load %arg1[%38] : memref<16xi32, #tpu.memory_space<smem>>
    %c4_i32_16 = arith.constant 4 : i32
    %c4_i32_17 = arith.constant 4 : i32
    %c0_i32_18 = arith.constant 0 : i32
    %40 = tpu.memref_slice %arg2[%39, %c0_i32_18] : memref<50x64xf32, #tpu.memory_space<any>> -> memref<1x64xf32, #tpu.memory_space<any>>
    %41 = tpu.memref_squeeze %40 : memref<1x64xf32, #tpu.memory_space<any>> -> memref<64xf32, #tpu.memory_space<any>>
    %c0_i32_19 = arith.constant 0 : i32
    %42 = tpu.memref_slice %arg4[%c4_i32_16, %c0_i32_19] : memref<16x64xf32, #tpu.memory_space<vmem>> -> memref<1x64xf32, #tpu.memory_space<vmem>>
    %43 = tpu.memref_squeeze %42 : memref<1x64xf32, #tpu.memory_space<vmem>> -> memref<64xf32, #tpu.memory_space<vmem>>
    %44 = tpu.memref_slice %arg5[%c4_i32_17] : memref<16x!tpu.dma_semaphore, #tpu.memory_space<semaphore_mem>> -> memref<1x!tpu.dma_semaphore, #tpu.memory_space<semaphore_mem>>
    %45 = tpu.memref_squeeze %44 : memref<1x!tpu.dma_semaphore, #tpu.memory_space<semaphore_mem>> -> memref<!tpu.dma_semaphore, #tpu.memory_space<semaphore_mem>>
    tpu.enqueue_dma source(%41 : memref<64xf32, #tpu.memory_space<any>>) target(%43 : memref<64xf32, #tpu.memory_space<vmem>>) target_semaphore(%45 : memref<!tpu.dma_semaphore, #tpu.memory_space<semaphore_mem>>)
    %c5_i32 = arith.constant 5 : i32
    %46 = arith.addi %0, %c5_i32 : i32
    %47 = arith.index_cast %46 : i32 to index
    %48 = memref.load %arg1[%47] : memref<16xi32, #tpu.memory_space<smem>>
    %c5_i32_20 = arith.constant 5 : i32
    %c5_i32_21 = arith.constant 5 : i32
    %c0_i32_22 = arith.constant 0 : i32
    %49 = tpu.memref_slice %arg2[%48, %c0_i32_22] : memref<50x64xf32, #tpu.memory_space<any>> -> memref<1x64xf32, #tpu.memory_space<any>>
    %50 = tpu.memref_squeeze %49 : memref<1x64xf32, #tpu.memory_space<any>> -> memref<64xf32, #tpu.memory_space<any>>
    %c0_i32_23 = arith.constant 0 : i32
    %51 = tpu.memref_slice %arg4[%c5_i32_20, %c0_i32_23] : memref<16x64xf32, #tpu.memory_space<vmem>> -> memref<1x64xf32, #tpu.memory_space<vmem>>
    %52 = tpu.memref_squeeze %51 : memref<1x64xf32, #tpu.memory_space<vmem>> -> memref<64xf32, #tpu.memory_space<vmem>>
    %53 = tpu.memref_slice %arg5[%c5_i32_21] : memref<16x!tpu.dma_semaphore, #tpu.memory_space<semaphore_mem>> -> memref<1x!tpu.dma_semaphore, #tpu.memory_space<semaphore_mem>>
    %54 = tpu.memref_squeeze %53 : memref<1x!tpu.dma_semaphore, #tpu.memory_space<semaphore_mem>> -> memref<!tpu.dma_semaphore, #tpu.memory_space<semaphore_mem>>
    tpu.enqueue_dma source(%50 : memref<64xf32, #tpu.memory_space<any>>) target(%52 : memref<64xf32, #tpu.memory_space<vmem>>) target_semaphore(%54 : memref<!tpu.dma_semaphore, #tpu.memory_space<semaphore_mem>>)
    %c6_i32 = arith.constant 6 : i32
    %55 = arith.addi %0, %c6_i32 : i32
    %56 = arith.index_cast %55 : i32 to index
    %57 = memref.load %arg1[%56] : memref<16xi32, #tpu.memory_space<smem>>
    %c6_i32_24 = arith.constant 6 : i32
    %c6_i32_25 = arith.constant 6 : i32
    %c0_i32_26 = arith.constant 0 : i32
    %58 = tpu.memref_slice %arg2[%57, %c0_i32_26] : memref<50x64xf32, #tpu.memory_space<any>> -> memref<1x64xf32, #tpu.memory_space<any>>
    %59 = tpu.memref_squeeze %58 : memref<1x64xf32, #tpu.memory_space<any>> -> memref<64xf32, #tpu.memory_space<any>>
    %c0_i32_27 = arith.constant 0 : i32
    %60 = tpu.memref_slice %arg4[%c6_i32_24, %c0_i32_27] : memref<16x64xf32, #tpu.memory_space<vmem>> -> memref<1x64xf32, #tpu.memory_space<vmem>>
    %61 = tpu.memref_squeeze %60 : memref<1x64xf32, #tpu.memory_space<vmem>> -> memref<64xf32, #tpu.memory_space<vmem>>
    %62 = tpu.memref_slice %arg5[%c6_i32_25] : memref<16x!tpu.dma_semaphore, #tpu.memory_space<semaphore_mem>> -> memref<1x!tpu.dma_semaphore, #tpu.memory_space<semaphore_mem>>
    %63 = tpu.memref_squeeze %62 : memref<1x!tpu.dma_semaphore, #tpu.memory_space<semaphore_mem>> -> memref<!tpu.dma_semaphore, #tpu.memory_space<semaphore_mem>>
    tpu.enqueue_dma source(%59 : memref<64xf32, #tpu.memory_space<any>>) target(%61 : memref<64xf32, #tpu.memory_space<vmem>>) target_semaphore(%63 : memref<!tpu.dma_semaphore, #tpu.memory_space<semaphore_mem>>)
    %c7_i32 = arith.constant 7 : i32
    %64 = arith.addi %0, %c7_i32 : i32
    %65 = arith.index_cast %64 : i32 to index
    %66 = memref.load %arg1[%65] : memref<16xi32, #tpu.memory_space<smem>>
    %c7_i32_28 = arith.constant 7 : i32
    %c7_i32_29 = arith.constant 7 : i32
    %c0_i32_30 = arith.constant 0 : i32
    %67 = tpu.memref_slice %arg2[%66, %c0_i32_30] : memref<50x64xf32, #tpu.memory_space<any>> -> memref<1x64xf32, #tpu.memory_space<any>>
    %68 = tpu.memref_squeeze %67 : memref<1x64xf32, #tpu.memory_space<any>> -> memref<64xf32, #tpu.memory_space<any>>
    %c0_i32_31 = arith.constant 0 : i32
    %69 = tpu.memref_slice %arg4[%c7_i32_28, %c0_i32_31] : memref<16x64xf32, #tpu.memory_space<vmem>> -> memref<1x64xf32, #tpu.memory_space<vmem>>
    %70 = tpu.memref_squeeze %69 : memref<1x64xf32, #tpu.memory_space<vmem>> -> memref<64xf32, #tpu.memory_space<vmem>>
    %71 = tpu.memref_slice %arg5[%c7_i32_29] : memref<16x!tpu.dma_semaphore, #tpu.memory_space<semaphore_mem>> -> memref<1x!tpu.dma_semaphore, #tpu.memory_space<semaphore_mem>>
    %72 = tpu.memref_squeeze %71 : memref<1x!tpu.dma_semaphore, #tpu.memory_space<semaphore_mem>> -> memref<!tpu.dma_semaphore, #tpu.memory_space<semaphore_mem>>
    tpu.enqueue_dma source(%68 : memref<64xf32, #tpu.memory_space<any>>) target(%70 : memref<64xf32, #tpu.memory_space<vmem>>) target_semaphore(%72 : memref<!tpu.dma_semaphore, #tpu.memory_space<semaphore_mem>>)
    %c8_i32 = arith.constant 8 : i32
    %73 = arith.addi %0, %c8_i32 : i32
    %74 = arith.index_cast %73 : i32 to index
    %75 = memref.load %arg1[%74] : memref<16xi32, #tpu.memory_space<smem>>
    %c8_i32_32 = arith.constant 8 : i32
    %c8_i32_33 = arith.constant 8 : i32
    %c0_i32_34 = arith.constant 0 : i32
    %76 = tpu.memref_slice %arg2[%75, %c0_i32_34] : memref<50x64xf32, #tpu.memory_space<any>> -> memref<1x64xf32, #tpu.memory_space<any>>
    %77 = tpu.memref_squeeze %76 : memref<1x64xf32, #tpu.memory_space<any>> -> memref<64xf32, #tpu.memory_space<any>>
    %c0_i32_35 = arith.constant 0 : i32
    %78 = tpu.memref_slice %arg4[%c8_i32_32, %c0_i32_35] : memref<16x64xf32, #tpu.memory_space<vmem>> -> memref<1x64xf32, #tpu.memory_space<vmem>>
    %79 = tpu.memref_squeeze %78 : memref<1x64xf32, #tpu.memory_space<vmem>> -> memref<64xf32, #tpu.memory_space<vmem>>
    %80 = tpu.memref_slice %arg5[%c8_i32_33] : memref<16x!tpu.dma_semaphore, #tpu.memory_space<semaphore_mem>> -> memref<1x!tpu.dma_semaphore, #tpu.memory_space<semaphore_mem>>
    %81 = tpu.memref_squeeze %80 : memref<1x!tpu.dma_semaphore, #tpu.memory_space<semaphore_mem>> -> memref<!tpu.dma_semaphore, #tpu.memory_space<semaphore_mem>>
    tpu.enqueue_dma source(%77 : memref<64xf32, #tpu.memory_space<any>>) target(%79 : memref<64xf32, #tpu.memory_space<vmem>>) target_semaphore(%81 : memref<!tpu.dma_semaphore, #tpu.memory_space<semaphore_mem>>)
    %c9_i32 = arith.constant 9 : i32
    %82 = arith.addi %0, %c9_i32 : i32
    %83 = arith.index_cast %82 : i32 to index
    %84 = memref.load %arg1[%83] : memref<16xi32, #tpu.memory_space<smem>>
    %c9_i32_36 = arith.constant 9 : i32
    %c9_i32_37 = arith.constant 9 : i32
    %c0_i32_38 = arith.constant 0 : i32
    %85 = tpu.memref_slice %arg2[%84, %c0_i32_38] : memref<50x64xf32, #tpu.memory_space<any>> -> memref<1x64xf32, #tpu.memory_space<any>>
    %86 = tpu.memref_squeeze %85 : memref<1x64xf32, #tpu.memory_space<any>> -> memref<64xf32, #tpu.memory_space<any>>
    %c0_i32_39 = arith.constant 0 : i32
    %87 = tpu.memref_slice %arg4[%c9_i32_36, %c0_i32_39] : memref<16x64xf32, #tpu.memory_space<vmem>> -> memref<1x64xf32, #tpu.memory_space<vmem>>
    %88 = tpu.memref_squeeze %87 : memref<1x64xf32, #tpu.memory_space<vmem>> -> memref<64xf32, #tpu.memory_space<vmem>>
    %89 = tpu.memref_slice %arg5[%c9_i32_37] : memref<16x!tpu.dma_semaphore, #tpu.memory_space<semaphore_mem>> -> memref<1x!tpu.dma_semaphore, #tpu.memory_space<semaphore_mem>>
    %90 = tpu.memref_squeeze %89 : memref<1x!tpu.dma_semaphore, #tpu.memory_space<semaphore_mem>> -> memref<!tpu.dma_semaphore, #tpu.memory_space<semaphore_mem>>
    tpu.enqueue_dma source(%86 : memref<64xf32, #tpu.memory_space<any>>) target(%88 : memref<64xf32, #tpu.memory_space<vmem>>) target_semaphore(%90 : memref<!tpu.dma_semaphore, #tpu.memory_space<semaphore_mem>>)
    %c10_i32 = arith.constant 10 : i32
    %91 = arith.addi %0, %c10_i32 : i32
    %92 = arith.index_cast %91 : i32 to index
    %93 = memref.load %arg1[%92] : memref<16xi32, #tpu.memory_space<smem>>
    %c10_i32_40 = arith.constant 10 : i32
    %c10_i32_41 = arith.constant 10 : i32
    %c0_i32_42 = arith.constant 0 : i32
    %94 = tpu.memref_slice %arg2[%93, %c0_i32_42] : memref<50x64xf32, #tpu.memory_space<any>> -> memref<1x64xf32, #tpu.memory_space<any>>
    %95 = tpu.memref_squeeze %94 : memref<1x64xf32, #tpu.memory_space<any>> -> memref<64xf32, #tpu.memory_space<any>>
    %c0_i32_43 = arith.constant 0 : i32
    %96 = tpu.memref_slice %arg4[%c10_i32_40, %c0_i32_43] : memref<16x64xf32, #tpu.memory_space<vmem>> -> memref<1x64xf32, #tpu.memory_space<vmem>>
    %97 = tpu.memref_squeeze %96 : memref<1x64xf32, #tpu.memory_space<vmem>> -> memref<64xf32, #tpu.memory_space<vmem>>
    %98 = tpu.memref_slice %arg5[%c10_i32_41] : memref<16x!tpu.dma_semaphore, #tpu.memory_space<semaphore_mem>> -> memref<1x!tpu.dma_semaphore, #tpu.memory_space<semaphore_mem>>
    %99 = tpu.memref_squeeze %98 : memref<1x!tpu.dma_semaphore, #tpu.memory_space<semaphore_mem>> -> memref<!tpu.dma_semaphore, #tpu.memory_space<semaphore_mem>>
    tpu.enqueue_dma source(%95 : memref<64xf32, #tpu.memory_space<any>>) target(%97 : memref<64xf32, #tpu.memory_space<vmem>>) target_semaphore(%99 : memref<!tpu.dma_semaphore, #tpu.memory_space<semaphore_mem>>)
    %c11_i32 = arith.constant 11 : i32
    %100 = arith.addi %0, %c11_i32 : i32
    %101 = arith.index_cast %100 : i32 to index
    %102 = memref.load %arg1[%101] : memref<16xi32, #tpu.memory_space<smem>>
    %c11_i32_44 = arith.constant 11 : i32
    %c11_i32_45 = arith.constant 11 : i32
    %c0_i32_46 = arith.constant 0 : i32
    %103 = tpu.memref_slice %arg2[%102, %c0_i32_46] : memref<50x64xf32, #tpu.memory_space<any>> -> memref<1x64xf32, #tpu.memory_space<any>>
    %104 = tpu.memref_squeeze %103 : memref<1x64xf32, #tpu.memory_space<any>> -> memref<64xf32, #tpu.memory_space<any>>
    %c0_i32_47 = arith.constant 0 : i32
    %105 = tpu.memref_slice %arg4[%c11_i32_44, %c0_i32_47] : memref<16x64xf32, #tpu.memory_space<vmem>> -> memref<1x64xf32, #tpu.memory_space<vmem>>
    %106 = tpu.memref_squeeze %105 : memref<1x64xf32, #tpu.memory_space<vmem>> -> memref<64xf32, #tpu.memory_space<vmem>>
    %107 = tpu.memref_slice %arg5[%c11_i32_45] : memref<16x!tpu.dma_semaphore, #tpu.memory_space<semaphore_mem>> -> memref<1x!tpu.dma_semaphore, #tpu.memory_space<semaphore_mem>>
    %108 = tpu.memref_squeeze %107 : memref<1x!tpu.dma_semaphore, #tpu.memory_space<semaphore_mem>> -> memref<!tpu.dma_semaphore, #tpu.memory_space<semaphore_mem>>
    tpu.enqueue_dma source(%104 : memref<64xf32, #tpu.memory_space<any>>) target(%106 : memref<64xf32, #tpu.memory_space<vmem>>) target_semaphore(%108 : memref<!tpu.dma_semaphore, #tpu.memory_space<semaphore_mem>>)
    %c12_i32 = arith.constant 12 : i32
    %109 = arith.addi %0, %c12_i32 : i32
    %110 = arith.index_cast %109 : i32 to index
    %111 = memref.load %arg1[%110] : memref<16xi32, #tpu.memory_space<smem>>
    %c12_i32_48 = arith.constant 12 : i32
    %c12_i32_49 = arith.constant 12 : i32
    %c0_i32_50 = arith.constant 0 : i32
    %112 = tpu.memref_slice %arg2[%111, %c0_i32_50] : memref<50x64xf32, #tpu.memory_space<any>> -> memref<1x64xf32, #tpu.memory_space<any>>
    %113 = tpu.memref_squeeze %112 : memref<1x64xf32, #tpu.memory_space<any>> -> memref<64xf32, #tpu.memory_space<any>>
    %c0_i32_51 = arith.constant 0 : i32
    %114 = tpu.memref_slice %arg4[%c12_i32_48, %c0_i32_51] : memref<16x64xf32, #tpu.memory_space<vmem>> -> memref<1x64xf32, #tpu.memory_space<vmem>>
    %115 = tpu.memref_squeeze %114 : memref<1x64xf32, #tpu.memory_space<vmem>> -> memref<64xf32, #tpu.memory_space<vmem>>
    %116 = tpu.memref_slice %arg5[%c12_i32_49] : memref<16x!tpu.dma_semaphore, #tpu.memory_space<semaphore_mem>> -> memref<1x!tpu.dma_semaphore, #tpu.memory_space<semaphore_mem>>
    %117 = tpu.memref_squeeze %116 : memref<1x!tpu.dma_semaphore, #tpu.memory_space<semaphore_mem>> -> memref<!tpu.dma_semaphore, #tpu.memory_space<semaphore_mem>>
    tpu.enqueue_dma source(%113 : memref<64xf32, #tpu.memory_space<any>>) target(%115 : memref<64xf32, #tpu.memory_space<vmem>>) target_semaphore(%117 : memref<!tpu.dma_semaphore, #tpu.memory_space<semaphore_mem>>)
    %c13_i32 = arith.constant 13 : i32
    %118 = arith.addi %0, %c13_i32 : i32
    %119 = arith.index_cast %118 : i32 to index
    %120 = memref.load %arg1[%119] : memref<16xi32, #tpu.memory_space<smem>>
    %c13_i32_52 = arith.constant 13 : i32
    %c13_i32_53 = arith.constant 13 : i32
    %c0_i32_54 = arith.constant 0 : i32
    %121 = tpu.memref_slice %arg2[%120, %c0_i32_54] : memref<50x64xf32, #tpu.memory_space<any>> -> memref<1x64xf32, #tpu.memory_space<any>>
    %122 = tpu.memref_squeeze %121 : memref<1x64xf32, #tpu.memory_space<any>> -> memref<64xf32, #tpu.memory_space<any>>
    %c0_i32_55 = arith.constant 0 : i32
    %123 = tpu.memref_slice %arg4[%c13_i32_52, %c0_i32_55] : memref<16x64xf32, #tpu.memory_space<vmem>> -> memref<1x64xf32, #tpu.memory_space<vmem>>
    %124 = tpu.memref_squeeze %123 : memref<1x64xf32, #tpu.memory_space<vmem>> -> memref<64xf32, #tpu.memory_space<vmem>>
    %125 = tpu.memref_slice %arg5[%c13_i32_53] : memref<16x!tpu.dma_semaphore, #tpu.memory_space<semaphore_mem>> -> memref<1x!tpu.dma_semaphore, #tpu.memory_space<semaphore_mem>>
    %126 = tpu.memref_squeeze %125 : memref<1x!tpu.dma_semaphore, #tpu.memory_space<semaphore_mem>> -> memref<!tpu.dma_semaphore, #tpu.memory_space<semaphore_mem>>
    tpu.enqueue_dma source(%122 : memref<64xf32, #tpu.memory_space<any>>) target(%124 : memref<64xf32, #tpu.memory_space<vmem>>) target_semaphore(%126 : memref<!tpu.dma_semaphore, #tpu.memory_space<semaphore_mem>>)
    %c14_i32 = arith.constant 14 : i32
    %127 = arith.addi %0, %c14_i32 : i32
    %128 = arith.index_cast %127 : i32 to index
    %129 = memref.load %arg1[%128] : memref<16xi32, #tpu.memory_space<smem>>
    %c14_i32_56 = arith.constant 14 : i32
    %c14_i32_57 = arith.constant 14 : i32
    %c0_i32_58 = arith.constant 0 : i32
    %130 = tpu.memref_slice %arg2[%129, %c0_i32_58] : memref<50x64xf32, #tpu.memory_space<any>> -> memref<1x64xf32, #tpu.memory_space<any>>
    %131 = tpu.memref_squeeze %130 : memref<1x64xf32, #tpu.memory_space<any>> -> memref<64xf32, #tpu.memory_space<any>>
    %c0_i32_59 = arith.constant 0 : i32
    %132 = tpu.memref_slice %arg4[%c14_i32_56, %c0_i32_59] : memref<16x64xf32, #tpu.memory_space<vmem>> -> memref<1x64xf32, #tpu.memory_space<vmem>>
    %133 = tpu.memref_squeeze %132 : memref<1x64xf32, #tpu.memory_space<vmem>> -> memref<64xf32, #tpu.memory_space<vmem>>
    %134 = tpu.memref_slice %arg5[%c14_i32_57] : memref<16x!tpu.dma_semaphore, #tpu.memory_space<semaphore_mem>> -> memref<1x!tpu.dma_semaphore, #tpu.memory_space<semaphore_mem>>
    %135 = tpu.memref_squeeze %134 : memref<1x!tpu.dma_semaphore, #tpu.memory_space<semaphore_mem>> -> memref<!tpu.dma_semaphore, #tpu.memory_space<semaphore_mem>>
    tpu.enqueue_dma source(%131 : memref<64xf32, #tpu.memory_space<any>>) target(%133 : memref<64xf32, #tpu.memory_space<vmem>>) target_semaphore(%135 : memref<!tpu.dma_semaphore, #tpu.memory_space<semaphore_mem>>)
    %c15_i32 = arith.constant 15 : i32
    %136 = arith.addi %0, %c15_i32 : i32
    %137 = arith.index_cast %136 : i32 to index
    %138 = memref.load %arg1[%137] : memref<16xi32, #tpu.memory_space<smem>>
    %c15_i32_60 = arith.constant 15 : i32
    %c15_i32_61 = arith.constant 15 : i32
    %c0_i32_62 = arith.constant 0 : i32
    %139 = tpu.memref_slice %arg2[%138, %c0_i32_62] : memref<50x64xf32, #tpu.memory_space<any>> -> memref<1x64xf32, #tpu.memory_space<any>>
    %140 = tpu.memref_squeeze %139 : memref<1x64xf32, #tpu.memory_space<any>> -> memref<64xf32, #tpu.memory_space<any>>
    %c0_i32_63 = arith.constant 0 : i32
    %141 = tpu.memref_slice %arg4[%c15_i32_60, %c0_i32_63] : memref<16x64xf32, #tpu.memory_space<vmem>> -> memref<1x64xf32, #tpu.memory_space<vmem>>
    %142 = tpu.memref_squeeze %141 : memref<1x64xf32, #tpu.memory_space<vmem>> -> memref<64xf32, #tpu.memory_space<vmem>>
    %143 = tpu.memref_slice %arg5[%c15_i32_61] : memref<16x!tpu.dma_semaphore, #tpu.memory_space<semaphore_mem>> -> memref<1x!tpu.dma_semaphore, #tpu.memory_space<semaphore_mem>>
    %144 = tpu.memref_squeeze %143 : memref<1x!tpu.dma_semaphore, #tpu.memory_space<semaphore_mem>> -> memref<!tpu.dma_semaphore, #tpu.memory_space<semaphore_mem>>
    tpu.enqueue_dma source(%140 : memref<64xf32, #tpu.memory_space<any>>) target(%142 : memref<64xf32, #tpu.memory_space<vmem>>) target_semaphore(%144 : memref<!tpu.dma_semaphore, #tpu.memory_space<semaphore_mem>>)
    %c0_i32_64 = arith.constant 0 : i32
    %c0_i32_65 = arith.constant 0 : i32
    %c0_i32_66 = arith.constant 0 : i32
    %145 = tpu.memref_slice %arg2[%3, %c0_i32_66] : memref<50x64xf32, #tpu.memory_space<any>> -> memref<1x64xf32, #tpu.memory_space<any>>
    %146 = tpu.memref_squeeze %145 : memref<1x64xf32, #tpu.memory_space<any>> -> memref<64xf32, #tpu.memory_space<any>>
    %c0_i32_67 = arith.constant 0 : i32
    %147 = tpu.memref_slice %arg4[%c0_i32_64, %c0_i32_67] : memref<16x64xf32, #tpu.memory_space<vmem>> -> memref<1x64xf32, #tpu.memory_space<vmem>>
    %148 = tpu.memref_squeeze %147 : memref<1x64xf32, #tpu.memory_space<vmem>> -> memref<64xf32, #tpu.memory_space<vmem>>
    %149 = tpu.memref_slice %arg5[%c0_i32_65] : memref<16x!tpu.dma_semaphore, #tpu.memory_space<semaphore_mem>> -> memref<1x!tpu.dma_semaphore, #tpu.memory_space<semaphore_mem>>
    %150 = tpu.memref_squeeze %149 : memref<1x!tpu.dma_semaphore, #tpu.memory_space<semaphore_mem>> -> memref<!tpu.dma_semaphore, #tpu.memory_space<semaphore_mem>>
    tpu.wait_dma2 semaphore(%150 : memref<!tpu.dma_semaphore, #tpu.memory_space<semaphore_mem>>) src(%146 : memref<64xf32, #tpu.memory_space<any>>) dst(%148 : memref<64xf32, #tpu.memory_space<vmem>>)
    %c1_i32_68 = arith.constant 1 : i32
    %c1_i32_69 = arith.constant 1 : i32
    %c0_i32_70 = arith.constant 0 : i32
    %151 = tpu.memref_slice %arg2[%12, %c0_i32_70] : memref<50x64xf32, #tpu.memory_space<any>> -> memref<1x64xf32, #tpu.memory_space<any>>
    %152 = tpu.memref_squeeze %151 : memref<1x64xf32, #tpu.memory_space<any>> -> memref<64xf32, #tpu.memory_space<any>>
    %c0_i32_71 = arith.constant 0 : i32
    %153 = tpu.memref_slice %arg4[%c1_i32_68, %c0_i32_71] : memref<16x64xf32, #tpu.memory_space<vmem>> -> memref<1x64xf32, #tpu.memory_space<vmem>>
    %154 = tpu.memref_squeeze %153 : memref<1x64xf32, #tpu.memory_space<vmem>> -> memref<64xf32, #tpu.memory_space<vmem>>
    %155 = tpu.memref_slice %arg5[%c1_i32_69] : memref<16x!tpu.dma_semaphore, #tpu.memory_space<semaphore_mem>> -> memref<1x!tpu.dma_semaphore, #tpu.memory_space<semaphore_mem>>
    %156 = tpu.memref_squeeze %155 : memref<1x!tpu.dma_semaphore, #tpu.memory_space<semaphore_mem>> -> memref<!tpu.dma_semaphore, #tpu.memory_space<semaphore_mem>>
    tpu.wait_dma2 semaphore(%156 : memref<!tpu.dma_semaphore, #tpu.memory_space<semaphore_mem>>) src(%152 : memref<64xf32, #tpu.memory_space<any>>) dst(%154 : memref<64xf32, #tpu.memory_space<vmem>>)
    %c2_i32_72 = arith.constant 2 : i32
    %c2_i32_73 = arith.constant 2 : i32
    %c0_i32_74 = arith.constant 0 : i32
    %157 = tpu.memref_slice %arg2[%21, %c0_i32_74] : memref<50x64xf32, #tpu.memory_space<any>> -> memref<1x64xf32, #tpu.memory_space<any>>
    %158 = tpu.memref_squeeze %157 : memref<1x64xf32, #tpu.memory_space<any>> -> memref<64xf32, #tpu.memory_space<any>>
    %c0_i32_75 = arith.constant 0 : i32
    %159 = tpu.memref_slice %arg4[%c2_i32_72, %c0_i32_75] : memref<16x64xf32, #tpu.memory_space<vmem>> -> memref<1x64xf32, #tpu.memory_space<vmem>>
    %160 = tpu.memref_squeeze %159 : memref<1x64xf32, #tpu.memory_space<vmem>> -> memref<64xf32, #tpu.memory_space<vmem>>
    %161 = tpu.memref_slice %arg5[%c2_i32_73] : memref<16x!tpu.dma_semaphore, #tpu.memory_space<semaphore_mem>> -> memref<1x!tpu.dma_semaphore, #tpu.memory_space<semaphore_mem>>
    %162 = tpu.memref_squeeze %161 : memref<1x!tpu.dma_semaphore, #tpu.memory_space<semaphore_mem>> -> memref<!tpu.dma_semaphore, #tpu.memory_space<semaphore_mem>>
    tpu.wait_dma2 semaphore(%162 : memref<!tpu.dma_semaphore, #tpu.memory_space<semaphore_mem>>) src(%158 : memref<64xf32, #tpu.memory_space<any>>) dst(%160 : memref<64xf32, #tpu.memory_space<vmem>>)
    %c3_i32_76 = arith.constant 3 : i32
    %c3_i32_77 = arith.constant 3 : i32
    %c0_i32_78 = arith.constant 0 : i32
    %163 = tpu.memref_slice %arg2[%30, %c0_i32_78] : memref<50x64xf32, #tpu.memory_space<any>> -> memref<1x64xf32, #tpu.memory_space<any>>
    %164 = tpu.memref_squeeze %163 : memref<1x64xf32, #tpu.memory_space<any>> -> memref<64xf32, #tpu.memory_space<any>>
    %c0_i32_79 = arith.constant 0 : i32
    %165 = tpu.memref_slice %arg4[%c3_i32_76, %c0_i32_79] : memref<16x64xf32, #tpu.memory_space<vmem>> -> memref<1x64xf32, #tpu.memory_space<vmem>>
    %166 = tpu.memref_squeeze %165 : memref<1x64xf32, #tpu.memory_space<vmem>> -> memref<64xf32, #tpu.memory_space<vmem>>
    %167 = tpu.memref_slice %arg5[%c3_i32_77] : memref<16x!tpu.dma_semaphore, #tpu.memory_space<semaphore_mem>> -> memref<1x!tpu.dma_semaphore, #tpu.memory_space<semaphore_mem>>
    %168 = tpu.memref_squeeze %167 : memref<1x!tpu.dma_semaphore, #tpu.memory_space<semaphore_mem>> -> memref<!tpu.dma_semaphore, #tpu.memory_space<semaphore_mem>>
    tpu.wait_dma2 semaphore(%168 : memref<!tpu.dma_semaphore, #tpu.memory_space<semaphore_mem>>) src(%164 : memref<64xf32, #tpu.memory_space<any>>) dst(%166 : memref<64xf32, #tpu.memory_space<vmem>>)
    %c4_i32_80 = arith.constant 4 : i32
    %c4_i32_81 = arith.constant 4 : i32
    %c0_i32_82 = arith.constant 0 : i32
    %169 = tpu.memref_slice %arg2[%39, %c0_i32_82] : memref<50x64xf32, #tpu.memory_space<any>> -> memref<1x64xf32, #tpu.memory_space<any>>
    %170 = tpu.memref_squeeze %169 : memref<1x64xf32, #tpu.memory_space<any>> -> memref<64xf32, #tpu.memory_space<any>>
    %c0_i32_83 = arith.constant 0 : i32
    %171 = tpu.memref_slice %arg4[%c4_i32_80, %c0_i32_83] : memref<16x64xf32, #tpu.memory_space<vmem>> -> memref<1x64xf32, #tpu.memory_space<vmem>>
    %172 = tpu.memref_squeeze %171 : memref<1x64xf32, #tpu.memory_space<vmem>> -> memref<64xf32, #tpu.memory_space<vmem>>
    %173 = tpu.memref_slice %arg5[%c4_i32_81] : memref<16x!tpu.dma_semaphore, #tpu.memory_space<semaphore_mem>> -> memref<1x!tpu.dma_semaphore, #tpu.memory_space<semaphore_mem>>
    %174 = tpu.memref_squeeze %173 : memref<1x!tpu.dma_semaphore, #tpu.memory_space<semaphore_mem>> -> memref<!tpu.dma_semaphore, #tpu.memory_space<semaphore_mem>>
    tpu.wait_dma2 semaphore(%174 : memref<!tpu.dma_semaphore, #tpu.memory_space<semaphore_mem>>) src(%170 : memref<64xf32, #tpu.memory_space<any>>) dst(%172 : memref<64xf32, #tpu.memory_space<vmem>>)
    %c5_i32_84 = arith.constant 5 : i32
    %c5_i32_85 = arith.constant 5 : i32
    %c0_i32_86 = arith.constant 0 : i32
    %175 = tpu.memref_slice %arg2[%48, %c0_i32_86] : memref<50x64xf32, #tpu.memory_space<any>> -> memref<1x64xf32, #tpu.memory_space<any>>
    %176 = tpu.memref_squeeze %175 : memref<1x64xf32, #tpu.memory_space<any>> -> memref<64xf32, #tpu.memory_space<any>>
    %c0_i32_87 = arith.constant 0 : i32
    %177 = tpu.memref_slice %arg4[%c5_i32_84, %c0_i32_87] : memref<16x64xf32, #tpu.memory_space<vmem>> -> memref<1x64xf32, #tpu.memory_space<vmem>>
    %178 = tpu.memref_squeeze %177 : memref<1x64xf32, #tpu.memory_space<vmem>> -> memref<64xf32, #tpu.memory_space<vmem>>
    %179 = tpu.memref_slice %arg5[%c5_i32_85] : memref<16x!tpu.dma_semaphore, #tpu.memory_space<semaphore_mem>> -> memref<1x!tpu.dma_semaphore, #tpu.memory_space<semaphore_mem>>
    %180 = tpu.memref_squeeze %179 : memref<1x!tpu.dma_semaphore, #tpu.memory_space<semaphore_mem>> -> memref<!tpu.dma_semaphore, #tpu.memory_space<semaphore_mem>>
    tpu.wait_dma2 semaphore(%180 : memref<!tpu.dma_semaphore, #tpu.memory_space<semaphore_mem>>) src(%176 : memref<64xf32, #tpu.memory_space<any>>) dst(%178 : memref<64xf32, #tpu.memory_space<vmem>>)
    %c6_i32_88 = arith.constant 6 : i32
    %c6_i32_89 = arith.constant 6 : i32
    %c0_i32_90 = arith.constant 0 : i32
    %181 = tpu.memref_slice %arg2[%57, %c0_i32_90] : memref<50x64xf32, #tpu.memory_space<any>> -> memref<1x64xf32, #tpu.memory_space<any>>
    %182 = tpu.memref_squeeze %181 : memref<1x64xf32, #tpu.memory_space<any>> -> memref<64xf32, #tpu.memory_space<any>>
    %c0_i32_91 = arith.constant 0 : i32
    %183 = tpu.memref_slice %arg4[%c6_i32_88, %c0_i32_91] : memref<16x64xf32, #tpu.memory_space<vmem>> -> memref<1x64xf32, #tpu.memory_space<vmem>>
    %184 = tpu.memref_squeeze %183 : memref<1x64xf32, #tpu.memory_space<vmem>> -> memref<64xf32, #tpu.memory_space<vmem>>
    %185 = tpu.memref_slice %arg5[%c6_i32_89] : memref<16x!tpu.dma_semaphore, #tpu.memory_space<semaphore_mem>> -> memref<1x!tpu.dma_semaphore, #tpu.memory_space<semaphore_mem>>
    %186 = tpu.memref_squeeze %185 : memref<1x!tpu.dma_semaphore, #tpu.memory_space<semaphore_mem>> -> memref<!tpu.dma_semaphore, #tpu.memory_space<semaphore_mem>>
    tpu.wait_dma2 semaphore(%186 : memref<!tpu.dma_semaphore, #tpu.memory_space<semaphore_mem>>) src(%182 : memref<64xf32, #tpu.memory_space<any>>) dst(%184 : memref<64xf32, #tpu.memory_space<vmem>>)
    %c7_i32_92 = arith.constant 7 : i32
    %c7_i32_93 = arith.constant 7 : i32
    %c0_i32_94 = arith.constant 0 : i32
    %187 = tpu.memref_slice %arg2[%66, %c0_i32_94] : memref<50x64xf32, #tpu.memory_space<any>> -> memref<1x64xf32, #tpu.memory_space<any>>
    %188 = tpu.memref_squeeze %187 : memref<1x64xf32, #tpu.memory_space<any>> -> memref<64xf32, #tpu.memory_space<any>>
    %c0_i32_95 = arith.constant 0 : i32
    %189 = tpu.memref_slice %arg4[%c7_i32_92, %c0_i32_95] : memref<16x64xf32, #tpu.memory_space<vmem>> -> memref<1x64xf32, #tpu.memory_space<vmem>>
    %190 = tpu.memref_squeeze %189 : memref<1x64xf32, #tpu.memory_space<vmem>> -> memref<64xf32, #tpu.memory_space<vmem>>
    %191 = tpu.memref_slice %arg5[%c7_i32_93] : memref<16x!tpu.dma_semaphore, #tpu.memory_space<semaphore_mem>> -> memref<1x!tpu.dma_semaphore, #tpu.memory_space<semaphore_mem>>
    %192 = tpu.memref_squeeze %191 : memref<1x!tpu.dma_semaphore, #tpu.memory_space<semaphore_mem>> -> memref<!tpu.dma_semaphore, #tpu.memory_space<semaphore_mem>>
    tpu.wait_dma2 semaphore(%192 : memref<!tpu.dma_semaphore, #tpu.memory_space<semaphore_mem>>) src(%188 : memref<64xf32, #tpu.memory_space<any>>) dst(%190 : memref<64xf32, #tpu.memory_space<vmem>>)
    %c8_i32_96 = arith.constant 8 : i32
    %c8_i32_97 = arith.constant 8 : i32
    %c0_i32_98 = arith.constant 0 : i32
    %193 = tpu.memref_slice %arg2[%75, %c0_i32_98] : memref<50x64xf32, #tpu.memory_space<any>> -> memref<1x64xf32, #tpu.memory_space<any>>
    %194 = tpu.memref_squeeze %193 : memref<1x64xf32, #tpu.memory_space<any>> -> memref<64xf32, #tpu.memory_space<any>>
    %c0_i32_99 = arith.constant 0 : i32
    %195 = tpu.memref_slice %arg4[%c8_i32_96, %c0_i32_99] : memref<16x64xf32, #tpu.memory_space<vmem>> -> memref<1x64xf32, #tpu.memory_space<vmem>>
    %196 = tpu.memref_squeeze %195 : memref<1x64xf32, #tpu.memory_space<vmem>> -> memref<64xf32, #tpu.memory_space<vmem>>
    %197 = tpu.memref_slice %arg5[%c8_i32_97] : memref<16x!tpu.dma_semaphore, #tpu.memory_space<semaphore_mem>> -> memref<1x!tpu.dma_semaphore, #tpu.memory_space<semaphore_mem>>
    %198 = tpu.memref_squeeze %197 : memref<1x!tpu.dma_semaphore, #tpu.memory_space<semaphore_mem>> -> memref<!tpu.dma_semaphore, #tpu.memory_space<semaphore_mem>>
    tpu.wait_dma2 semaphore(%198 : memref<!tpu.dma_semaphore, #tpu.memory_space<semaphore_mem>>) src(%194 : memref<64xf32, #tpu.memory_space<any>>) dst(%196 : memref<64xf32, #tpu.memory_space<vmem>>)
    %c9_i32_100 = arith.constant 9 : i32
    %c9_i32_101 = arith.constant 9 : i32
    %c0_i32_102 = arith.constant 0 : i32
    %199 = tpu.memref_slice %arg2[%84, %c0_i32_102] : memref<50x64xf32, #tpu.memory_space<any>> -> memref<1x64xf32, #tpu.memory_space<any>>
    %200 = tpu.memref_squeeze %199 : memref<1x64xf32, #tpu.memory_space<any>> -> memref<64xf32, #tpu.memory_space<any>>
    %c0_i32_103 = arith.constant 0 : i32
    %201 = tpu.memref_slice %arg4[%c9_i32_100, %c0_i32_103] : memref<16x64xf32, #tpu.memory_space<vmem>> -> memref<1x64xf32, #tpu.memory_space<vmem>>
    %202 = tpu.memref_squeeze %201 : memref<1x64xf32, #tpu.memory_space<vmem>> -> memref<64xf32, #tpu.memory_space<vmem>>
    %203 = tpu.memref_slice %arg5[%c9_i32_101] : memref<16x!tpu.dma_semaphore, #tpu.memory_space<semaphore_mem>> -> memref<1x!tpu.dma_semaphore, #tpu.memory_space<semaphore_mem>>
    %204 = tpu.memref_squeeze %203 : memref<1x!tpu.dma_semaphore, #tpu.memory_space<semaphore_mem>> -> memref<!tpu.dma_semaphore, #tpu.memory_space<semaphore_mem>>
    tpu.wait_dma2 semaphore(%204 : memref<!tpu.dma_semaphore, #tpu.memory_space<semaphore_mem>>) src(%200 : memref<64xf32, #tpu.memory_space<any>>) dst(%202 : memref<64xf32, #tpu.memory_space<vmem>>)
    %c10_i32_104 = arith.constant 10 : i32
    %c10_i32_105 = arith.constant 10 : i32
    %c0_i32_106 = arith.constant 0 : i32
    %205 = tpu.memref_slice %arg2[%93, %c0_i32_106] : memref<50x64xf32, #tpu.memory_space<any>> -> memref<1x64xf32, #tpu.memory_space<any>>
    %206 = tpu.memref_squeeze %205 : memref<1x64xf32, #tpu.memory_space<any>> -> memref<64xf32, #tpu.memory_space<any>>
    %c0_i32_107 = arith.constant 0 : i32
    %207 = tpu.memref_slice %arg4[%c10_i32_104, %c0_i32_107] : memref<16x64xf32, #tpu.memory_space<vmem>> -> memref<1x64xf32, #tpu.memory_space<vmem>>
    %208 = tpu.memref_squeeze %207 : memref<1x64xf32, #tpu.memory_space<vmem>> -> memref<64xf32, #tpu.memory_space<vmem>>
    %209 = tpu.memref_slice %arg5[%c10_i32_105] : memref<16x!tpu.dma_semaphore, #tpu.memory_space<semaphore_mem>> -> memref<1x!tpu.dma_semaphore, #tpu.memory_space<semaphore_mem>>
    %210 = tpu.memref_squeeze %209 : memref<1x!tpu.dma_semaphore, #tpu.memory_space<semaphore_mem>> -> memref<!tpu.dma_semaphore, #tpu.memory_space<semaphore_mem>>
    tpu.wait_dma2 semaphore(%210 : memref<!tpu.dma_semaphore, #tpu.memory_space<semaphore_mem>>) src(%206 : memref<64xf32, #tpu.memory_space<any>>) dst(%208 : memref<64xf32, #tpu.memory_space<vmem>>)
    %c11_i32_108 = arith.constant 11 : i32
    %c11_i32_109 = arith.constant 11 : i32
    %c0_i32_110 = arith.constant 0 : i32
    %211 = tpu.memref_slice %arg2[%102, %c0_i32_110] : memref<50x64xf32, #tpu.memory_space<any>> -> memref<1x64xf32, #tpu.memory_space<any>>
    %212 = tpu.memref_squeeze %211 : memref<1x64xf32, #tpu.memory_space<any>> -> memref<64xf32, #tpu.memory_space<any>>
    %c0_i32_111 = arith.constant 0 : i32
    %213 = tpu.memref_slice %arg4[%c11_i32_108, %c0_i32_111] : memref<16x64xf32, #tpu.memory_space<vmem>> -> memref<1x64xf32, #tpu.memory_space<vmem>>
    %214 = tpu.memref_squeeze %213 : memref<1x64xf32, #tpu.memory_space<vmem>> -> memref<64xf32, #tpu.memory_space<vmem>>
    %215 = tpu.memref_slice %arg5[%c11_i32_109] : memref<16x!tpu.dma_semaphore, #tpu.memory_space<semaphore_mem>> -> memref<1x!tpu.dma_semaphore, #tpu.memory_space<semaphore_mem>>
    %216 = tpu.memref_squeeze %215 : memref<1x!tpu.dma_semaphore, #tpu.memory_space<semaphore_mem>> -> memref<!tpu.dma_semaphore, #tpu.memory_space<semaphore_mem>>
    tpu.wait_dma2 semaphore(%216 : memref<!tpu.dma_semaphore, #tpu.memory_space<semaphore_mem>>) src(%212 : memref<64xf32, #tpu.memory_space<any>>) dst(%214 : memref<64xf32, #tpu.memory_space<vmem>>)
    %c12_i32_112 = arith.constant 12 : i32
    %c12_i32_113 = arith.constant 12 : i32
    %c0_i32_114 = arith.constant 0 : i32
    %217 = tpu.memref_slice %arg2[%111, %c0_i32_114] : memref<50x64xf32, #tpu.memory_space<any>> -> memref<1x64xf32, #tpu.memory_space<any>>
    %218 = tpu.memref_squeeze %217 : memref<1x64xf32, #tpu.memory_space<any>> -> memref<64xf32, #tpu.memory_space<any>>
    %c0_i32_115 = arith.constant 0 : i32
    %219 = tpu.memref_slice %arg4[%c12_i32_112, %c0_i32_115] : memref<16x64xf32, #tpu.memory_space<vmem>> -> memref<1x64xf32, #tpu.memory_space<vmem>>
    %220 = tpu.memref_squeeze %219 : memref<1x64xf32, #tpu.memory_space<vmem>> -> memref<64xf32, #tpu.memory_space<vmem>>
    %221 = tpu.memref_slice %arg5[%c12_i32_113] : memref<16x!tpu.dma_semaphore, #tpu.memory_space<semaphore_mem>> -> memref<1x!tpu.dma_semaphore, #tpu.memory_space<semaphore_mem>>
    %222 = tpu.memref_squeeze %221 : memref<1x!tpu.dma_semaphore, #tpu.memory_space<semaphore_mem>> -> memref<!tpu.dma_semaphore, #tpu.memory_space<semaphore_mem>>
    tpu.wait_dma2 semaphore(%222 : memref<!tpu.dma_semaphore, #tpu.memory_space<semaphore_mem>>) src(%218 : memref<64xf32, #tpu.memory_space<any>>) dst(%220 : memref<64xf32, #tpu.memory_space<vmem>>)
    %c13_i32_116 = arith.constant 13 : i32
    %c13_i32_117 = arith.constant 13 : i32
    %c0_i32_118 = arith.constant 0 : i32
    %223 = tpu.memref_slice %arg2[%120, %c0_i32_118] : memref<50x64xf32, #tpu.memory_space<any>> -> memref<1x64xf32, #tpu.memory_space<any>>
    %224 = tpu.memref_squeeze %223 : memref<1x64xf32, #tpu.memory_space<any>> -> memref<64xf32, #tpu.memory_space<any>>
    %c0_i32_119 = arith.constant 0 : i32
    %225 = tpu.memref_slice %arg4[%c13_i32_116, %c0_i32_119] : memref<16x64xf32, #tpu.memory_space<vmem>> -> memref<1x64xf32, #tpu.memory_space<vmem>>
    %226 = tpu.memref_squeeze %225 : memref<1x64xf32, #tpu.memory_space<vmem>> -> memref<64xf32, #tpu.memory_space<vmem>>
    %227 = tpu.memref_slice %arg5[%c13_i32_117] : memref<16x!tpu.dma_semaphore, #tpu.memory_space<semaphore_mem>> -> memref<1x!tpu.dma_semaphore, #tpu.memory_space<semaphore_mem>>
    %228 = tpu.memref_squeeze %227 : memref<1x!tpu.dma_semaphore, #tpu.memory_space<semaphore_mem>> -> memref<!tpu.dma_semaphore, #tpu.memory_space<semaphore_mem>>
    tpu.wait_dma2 semaphore(%228 : memref<!tpu.dma_semaphore, #tpu.memory_space<semaphore_mem>>) src(%224 : memref<64xf32, #tpu.memory_space<any>>) dst(%226 : memref<64xf32, #tpu.memory_space<vmem>>)
    %c14_i32_120 = arith.constant 14 : i32
    %c14_i32_121 = arith.constant 14 : i32
    %c0_i32_122 = arith.constant 0 : i32
    %229 = tpu.memref_slice %arg2[%129, %c0_i32_122] : memref<50x64xf32, #tpu.memory_space<any>> -> memref<1x64xf32, #tpu.memory_space<any>>
    %230 = tpu.memref_squeeze %229 : memref<1x64xf32, #tpu.memory_space<any>> -> memref<64xf32, #tpu.memory_space<any>>
    %c0_i32_123 = arith.constant 0 : i32
    %231 = tpu.memref_slice %arg4[%c14_i32_120, %c0_i32_123] : memref<16x64xf32, #tpu.memory_space<vmem>> -> memref<1x64xf32, #tpu.memory_space<vmem>>
    %232 = tpu.memref_squeeze %231 : memref<1x64xf32, #tpu.memory_space<vmem>> -> memref<64xf32, #tpu.memory_space<vmem>>
    %233 = tpu.memref_slice %arg5[%c14_i32_121] : memref<16x!tpu.dma_semaphore, #tpu.memory_space<semaphore_mem>> -> memref<1x!tpu.dma_semaphore, #tpu.memory_space<semaphore_mem>>
    %234 = tpu.memref_squeeze %233 : memref<1x!tpu.dma_semaphore, #tpu.memory_space<semaphore_mem>> -> memref<!tpu.dma_semaphore, #tpu.memory_space<semaphore_mem>>
    tpu.wait_dma2 semaphore(%234 : memref<!tpu.dma_semaphore, #tpu.memory_space<semaphore_mem>>) src(%230 : memref<64xf32, #tpu.memory_space<any>>) dst(%232 : memref<64xf32, #tpu.memory_space<vmem>>)
    %c15_i32_124 = arith.constant 15 : i32
    %c15_i32_125 = arith.constant 15 : i32
    %c0_i32_126 = arith.constant 0 : i32
    %235 = tpu.memref_slice %arg2[%138, %c0_i32_126] : memref<50x64xf32, #tpu.memory_space<any>> -> memref<1x64xf32, #tpu.memory_space<any>>
    %236 = tpu.memref_squeeze %235 : memref<1x64xf32, #tpu.memory_space<any>> -> memref<64xf32, #tpu.memory_space<any>>
    %c0_i32_127 = arith.constant 0 : i32
    %237 = tpu.memref_slice %arg4[%c15_i32_124, %c0_i32_127] : memref<16x64xf32, #tpu.memory_space<vmem>> -> memref<1x64xf32, #tpu.memory_space<vmem>>
    %238 = tpu.memref_squeeze %237 : memref<1x64xf32, #tpu.memory_space<vmem>> -> memref<64xf32, #tpu.memory_space<vmem>>
    %239 = tpu.memref_slice %arg5[%c15_i32_125] : memref<16x!tpu.dma_semaphore, #tpu.memory_space<semaphore_mem>> -> memref<1x!tpu.dma_semaphore, #tpu.memory_space<semaphore_mem>>
    %240 = tpu.memref_squeeze %239 : memref<1x!tpu.dma_semaphore, #tpu.memory_space<semaphore_mem>> -> memref<!tpu.dma_semaphore, #tpu.memory_space<semaphore_mem>>
    tpu.wait_dma2 semaphore(%240 : memref<!tpu.dma_semaphore, #tpu.memory_space<semaphore_mem>>) src(%236 : memref<64xf32, #tpu.memory_space<any>>) dst(%238 : memref<64xf32, #tpu.memory_space<vmem>>)
    %c0 = arith.constant 0 : index
    %c0_128 = arith.constant 0 : index
    %241 = vector.load %arg4[%c0, %c0_128] : memref<16x64xf32, #tpu.memory_space<vmem>>, vector<16x64xf32>
    %c0_129 = arith.constant 0 : index
    %c0_130 = arith.constant 0 : index
    %242 = vector.load %arg3[%c0_129, %c0_130] : memref<16x64xf32, #tpu.memory_space<vmem>>, vector<16x64xf32>
    tpu.vector_store %arg3[%c0_129, %c0_130], %241 {strides = array<i32>} : memref<16x64xf32, #tpu.memory_space<vmem>>, vector<16x64xf32>,
    return
  }
  func.func @transform_1(%arg0: i32, %arg1: memref<16xi32, #tpu.memory_space<smem>>) -> (i32, i32) {
    %c0_i32 = arith.constant 0 : i32
    %c0_i32_0 = arith.constant 0 : i32
    return %arg0, %c0_i32 : i32, i32
  }
}

</mosaic_0001>

<bundles_post_ra>
// kernel: brain_gpt_forward.5
= control target key start
LH: loop header
LB: loop body
LE: loop exit
PB: predicated region body
PF: predicated region fallthrough
CT: control target
= control target key end

     0   :  { %vm42_vm0 = vcmask 130048   ;;  %vm152_vm1 = vcmask 125952   ;;  %s291_s1 = inlined_call_operand.vmem [shape: bf16[16,16], index: 1, kind: input, shape index: {}]   ;;  %s292_s0 = inlined_call_operand.vmem [shape: f32[64,16], index: 0, kind: input, shape index: {}]   ;;  %s293_s2 = inlined_call_operand.vmem [shape: f32[1,16], index: 2, kind: input, shape index: {}]   ;;  %s294_s3 = inlined_call_operand.vmem [shape: bf16[64,16], index: 3, kind: output, shape index: {}]  }
   0x1   :  { %v204_v0 = vld [vmem:[%s291_s1] sm:$0xff]   ;;  %v18_v2 = vld [vmem:[%s292_s0 + $0x8] sm:$0xff]  ;;  %v19_v6 = vld [vmem:[%s292_s0 + $0x10] sm:$0xff] }
   0x2   :  { %v17_v1 = vld [vmem:[%s292_s0] sm:$0xff]  ;;  %192 = vmatprep.subr.bf16.mxu0 %v204_v0  ;;  %202 = vmatprep.subr.bf16.mxu1 %v204_v0  ;;  %v22_v5 = vld [vmem:[%s292_s0 + $0x28] sm:$0xff]  ;;  %v20_v7 = vld [vmem:[%s292_s0 + $0x18] sm:$0xff] }
   0x3   :  { %v21_v3 = vld [vmem:[%s292_s0 + $0x20] sm:$0xff]  ;;  %v25_v4 = vpack.c.bf16 %v18_v2, %v17_v1  ;;  %193 = vmatpush3.bf16.msra.mxu0 %v204_v0  ;;  %203 = vmatpush3.bf16.msra.mxu1 %v204_v0  ;;  %v26_v9 = vpack.c.bf16 %v20_v7, %v19_v6  ;;  %v23_v10 = vld [vmem:[%s292_s0 + $0x30] sm:$0xff]  ;;  %v24_v11 = vld [vmem:[%s292_s0 + $0x38] sm:$0xff] }
   0x4   :  { %v27_v8 = vpack.c.bf16 %v22_v5, %v21_v3  ;;  %v28_v12 = vpack.c.bf16 %v24_v11, %v23_v10  ;;  %v165_v13 = vld [vmem:[%s293_s2] ss:$0 sm:$0xff] }
   0x5   :  { %194 = vmatprep.mubr.msk.bf16.mxu0 %vm42_vm0, %v25_v4 }
   0x6   :  { %198 = vmatprep.mubr.msk.bf16.mxu1 %vm42_vm0, %v27_v8  ;;  %195 = vmatmul.mubr.msk.bf16.vlgmr.msra.gmra.mxu0 %vm42_vm0, %v26_v9 }
   0x7   :  { %199 = vmatmul.mubr.msk.bf16.vlgmr.msra.gmra.mxu1 %vm42_vm0, %v28_v12 }
  0xc6   :  { %v196_v14 = vpop.f32.mrf.mxu0 }
  0xc7   :  { %v200_v15 = vpop.f32.mrf.mxu1  ;;  %v98_v16 = vadd.f32 %v196_v14, %v165_v13 }
  0xc8   :  { %v114_v17 = vadd.f32 %v200_v15, %v165_v13  ;;  %v89_v18 = vpop.f32.mrf.mxu0 }
  0xc9   :  { %v105_v19 = vpop.f32.mrf.mxu1  ;;  %v181_v20 = vpack.c.bf16 %v98_v16, %v98_v16  ;;  %v90_v22 = vadd.f32 %v165_v13, %v89_v18 }
  0xca   :  { %v185_v21 = vpack.c.bf16 %v114_v17, %v114_v17  ;;  %v106_v23 = vadd.f32 %v165_v13, %v105_v19  ;;  %v197_v24 = vpop.f32.mrf.mxu0 }
  0xcb   :  { %v201_v25 = vpop.f32.mrf.mxu1  ;;  %155 = vst.msk [vmem:[%s294_s3 + $0x8] sm:$0xf] %vm152_vm1, %v181_v20  ;;  %v179_v26 = vpack.c.bf16 %v90_v22, %v90_v22  ;;  %v101_v28 = vadd.f32 %v197_v24, %v165_v13 }
  0xcc   :  { %159 = vst.msk [vmem:[%s294_s3 + $0x18] sm:$0xf] %vm152_vm1, %v185_v21  ;;  %v183_v27 = vpack.c.bf16 %v106_v23, %v106_v23  ;;  %v117_v29 = vadd.f32 %v201_v25, %v165_v13  ;;  %v92_v30 = vpop.f32.mrf.mxu0 }
  0xcd   :  { %v108_v31 = vpop.f32.mrf.mxu1  ;;  %153 = vst.msk [vmem:[%s294_s3] sm:$0xf] %vm152_vm1, %v179_v26  ;;  %v182_v32 = vpack.c.bf16 %v101_v28, %v101_v28  ;;  %v93_v34 = vadd.f32 %v165_v13, %v92_v30 }
  0xce   :  { %157 = vst.msk [vmem:[%s294_s3 + $0x10] sm:$0xf] %vm152_vm1, %v183_v27  ;;  %v186_v33 = vpack.c.bf16 %v117_v29, %v117_v29  ;;  %v109_v35 = vadd.f32 %v165_v13, %v108_v31 }
  0xcf   :  { %156 = vst.msk [vmem:[%s294_s3 + $0xc] sm:$0xf] %vm152_vm1, %v182_v32  ;;  %v180_v36 = vpack.c.bf16 %v93_v34, %v93_v34 }
  0xd0   :  { %160 = vst.msk [vmem:[%s294_s3 + $0x1c] sm:$0xf] %vm152_vm1, %v186_v33  ;;  %v184_v37 = vpack.c.bf16 %v109_v35, %v109_v35 }
  0xd1   :  { %154 = vst.msk [vmem:[%s294_s3 + $0x4] sm:$0xf] %vm152_vm1, %v180_v36 }
  0xd2   :  { %158 = vst.msk [vmem:[%s294_s3 + $0x14] sm:$0xf] %vm152_vm1, %v184_v37 }

// kernel: brain_gpt_forward.6
= control target key start
LH: loop header
LB: loop body
LE: loop exit
PB: predicated region body
PF: predicated region fallthrough
CT: control target
= control target key end

     0   :  { %s780_s12 = smov 0   ;;  %s782_s13 = smov 0   ;;  %s890_s0 = inlined_call_operand.vmem [shape: bf16[64,16], index: 0, kind: input, shape index: {}]   ;;  %s891_s1 = inlined_call_operand.vmem [shape: bf16[16,768], index: 1, kind: input, shape index: {}]   ;;  %s892_s2 = inlined_call_operand.vmem [shape: f32[1,768], index: 2, kind: input, shape index: {}]   ;;  %s893_s3 = inlined_call_operand.vmem [shape: bf16[64,768], index: 3, kind: output, shape index: {}]  }
   0x1   :  { %s784_s14 = smov 0   ;;  %s786_s15 = smov 0  }
   0x2   :  { %s788_s16 = smov 0  }
   0x3 LB: > { %s22_s17 = sadd.s32 1, %s753_s15  ;;  %s624_s18 = sadd.s32 4294967295, %s757_s16   ;;  %s757_s16 = sphi %s788_s16, %s13_s16   ;;  %s753_s15 = sphi %s786_s15, %s898_s15   ;;  %s749_s14 = sphi %s784_s14, %s897_s14   ;;  %s745_s13 = sphi %s782_s13, %s896_s13   ;;  %s741_s12 = sphi %s780_s12, %s895_s12  }
   0x4   : > { %p23_p0 = scmp.ge.s32.totalorder %s22_s17, 3  ;;  %p65_p1 = scmp.ne.s32.totalorder %s745_s13, %s741_s12 }
   0x5   : > { %p66_p2 = scmp.eq.s32.totalorder %s757_s16, 0  ;;  %p123_p4 = scmp.eq.s32.totalorder %s624_s18, 2 }
   0x6   : > { %s900_s17 = smov (%p23_p0, %s22_s17), 0  ;;  %s58_s20 = sadd.s32 1, %s745_s13 }
   0x7   : > { %p67_p3 = por %p66_p2, %p65_p1  ;;  %s55_s19 = ssub.s32 %s753_s15, %s900_s17 }
   0x8   : > { %p56_p5 = scmp.eq.s32.totalorder %s55_s19, 0  ;;  %p815_p6 = por %p123_p4, %p65_p1 }
   0x9   : > { %p628_p7 = scmp.ge.s32.totalorder %s757_s16, 3 }
   0xa   : > { %s820_s22 = scalar_select %p56_p5, %s745_s13, %s58_s20  }
   0xb   : > { %154 = sbr.rel (%p628_p7) target bundleno = 21 (0x15), region = 20 }
  0x10   : > { %157 = sbr.rel (!%p67_p3) target bundleno = 21 (0x15), region = 24  ;;  %s159_s23 = sand.u32 (%p67_p3), 1, %s745_s13  }
  0x11   : > { %s659_s24 = sshll.u32 (%p67_p3), %s753_s15, 3  ;;  %s629_s25 = sshll.u32 (%p67_p3), %s159_s23, 4 }
  0x12   : > { %s164_s28 = scalar_lea.vmem (%p67_p3), %s891_s1, %s659_s24  ;;  %s161_s29 = scalar_lea.vmem (%p67_p3), [#allocation2], %s629_s25 }
  0x13   : > { %v195_v0 = vld [vmem:[%s164_s28] sm:$0xff] (%p67_p3)  ;;  %v197_v1 = vld [vmem:[%s164_s28 + $0x18] sm:$0xff] (%p67_p3) }
  0x14   : > { %196 = vst [vmem:[%s161_s29] sm:$0xff] (%p67_p3), %v195_v0  ;;  %198 = vst [vmem:[%s161_s29 + $0x8] sm:$0xff] (%p67_p3), %v197_v1 }
  0x15 PF: > { %p632_p8 = scmp.ge.s32.totalorder %s757_s16, 1  ;;  %p211_p9 = scmp.lt.s32.totalorder %s757_s16, 4 }
  0x17   : > { %p212_p10 = pnand %p632_p8, %p211_p9 }
  0x18   : > { %s218_s30 = sand.u32 (!%p212_p10), 1, %s741_s12   ;;  %s635_s20 = sshll.u32 (!%p212_p10), %s749_s14, 1 }
  0x19   : > { %215 = sbr.rel (%p212_p10) target bundleno = 257 (0x101), region = 66  ;;  %s633_s4 = sshll.u32 (!%p212_p10), %s218_s30, 4 }
  0x1a   : > { %s220_s5 = scalar_lea.vmem (!%p212_p10), [#allocation2], %s633_s4  ;;  %p257_p11 = scmp.lt.s32.totalorder (!%p212_p10), %s635_s20, 5 }
  0x1b   : > { %s634_s26 = sshll.u32 (!%p212_p10), %s218_s30, 6 }
  0x1c   : > { %s851_s27 = scalar_lea.vmem (!%p212_p10), [#allocation3], %s634_s26 }
  0x1e   : > { %v759_v2 = vmov 0   ;;  %v712_v3 = vld [vmem:[%s220_s5 + $0x4] ss:$8 sps:$4 sm:$0xff]   ;;  %v714_v5 = vld [vmem:[%s220_s5] ss:$8 sps:$4 sm:$0xff]   ;;  %vm316_vm0 = vcmask 130048   ;;  %v276_v9 = vlaneseq }
  0x1f   : > { %361 = vmatprep.mubr.bf16.mxu0 %v759_v2  ;;  %381 = vmatprep.mubr.bf16.mxu1 %v759_v2  ;;  %v715_v4 = vld [vmem:[%s890_s0] sm:$0xff]   ;;  %v716_v6 = vld [vmem:[%s890_s0 + $0x10] sm:$0xff]   ;;  %v717_v7 = vld [vmem:[%s890_s0 + $0x8] sm:$0xff]   ;;  %s902_s20 = smov (!%p257_p11, %s635_s20), 5  ;;  %s668_s12 = sshll.u32 (%p815_p6), %s749_s14, 3 }
  0x20   : > { %343 = vmatprep.subr.bf16.mxu0 %v712_v3  ;;  %669 = vmatprep.subr.bf16.mxu1 %v712_v3  ;;  %v718_v8 = vld [vmem:[%s890_s0 + $0x18] sm:$0xff]   ;;  %v277_v10 = vshrl.u32 %v276_v9, 7  ;;  %s259_s25 = scalar_lea.vmem %s892_s2, %s902_s20  ;;  %s470_s30 = scalar_lea.vmem (%p815_p6), %s893_s3, %s668_s12 }
  0x21   : > { %344 = vmatpush1.bf16.msra.mxu0 %v714_v5  ;;  %670 = vmatpush1.bf16.msra.mxu1 %v714_v5  ;;  %v274_v13 = vld [vmem:[%s259_s25] sm:$0x3] }
  0x22   : > { %v278_v11 = vsub.s32 0, %v277_v10  ;;  %v282_v12 = vsub.s32 1, %v277_v10 }
  0x24   : > { %642 = vmatmul.mubr.msk.bf16.vlgmr.msra.gmra.mxu0 %vm316_vm0, %v715_v4  ;;  %644 = vmatmul.mubr.msk.bf16.vlgmr.msra.gmra.mxu1 %vm316_vm0, %v716_v6  ;;  %v279_v14 = vrot.slane %v274_v13, %v278_v11  ;;  %v283_v15 = vrot.slane %v274_v13, %v282_v12 }
  0x25   : > { %371 = vmatprep.mubr.bf16.mxu0 %v759_v2  ;;  %391 = vmatprep.mubr.bf16.mxu1 %v759_v2 }
  0x2c   : > { %643 = vmatmul.mubr.msk.bf16.gmra.mxu0 %vm316_vm0, %v717_v7  ;;  %645 = vmatmul.mubr.msk.bf16.gmra.mxu1 %vm316_vm0, %v718_v8 }
  0xe4   : > { %v363_v16 = vpop.f32.mrf.mxu0  ;;  %v383_v17 = vpop.f32.mrf.mxu1 }
  0xe5   : > { %v364_v20 = vadd.f32 %v363_v16, %v279_v14  ;;  %v384_v21 = vadd.f32 %v383_v17, %v279_v14 }
  0xe6   : > { %v365_v18 = vpop.f32.mrf.mxu0  ;;  %v385_v19 = vpop.f32.mrf.mxu1 }
  0xe7   : > { %v366_v22 = vadd.f32 %v365_v18, %v283_v15  ;;  %v386_v23 = vadd.f32 %v385_v19, %v283_v15 }
  0xe8   : > { %v367_v24 = vpop.f32.mrf.mxu0  ;;  %v387_v25 = vpop.f32.mrf.mxu1 }
  0xe9   : > { %v660_v26 = vpack.c.bf16 %v366_v22, %v364_v20  ;;  %v664_v27 = vpack.c.bf16 %v386_v23, %v384_v21  ;;  %v368_v30 = vadd.f32 %v367_v24, %v279_v14  ;;  %v388_v31 = vadd.f32 %v387_v25, %v279_v14 }
  0xea   : > { %v369_v28 = vpop.f32.mrf.mxu0  ;;  %v389_v29 = vpop.f32.mrf.mxu1 }
  0xeb   : > { %450 = vst [vmem:[%s851_s27] sm:$0xff] %v660_v26  ;;  %454 = vst [vmem:[%s851_s27 + $0x20] sm:$0xff] %v664_v27  ;;  %v370_v32 = vadd.f32 %v369_v28, %v283_v15  ;;  %v390_v33 = vadd.f32 %v389_v29, %v283_v15 }
  0xec   : > { %v373_v34 = vpop.f32.mrf.mxu0  ;;  %v393_v35 = vpop.f32.mrf.mxu1 }
  0xed   : > { %v661_v36 = vpack.c.bf16 %v370_v32, %v368_v30  ;;  %v665_v37 = vpack.c.bf16 %v390_v33, %v388_v31  ;;  %v374_v40 = vadd.f32 %v373_v34, %v279_v14  ;;  %v394_v41 = vadd.f32 %v393_v35, %v279_v14 }
  0xee   : > { %v375_v38 = vpop.f32.mrf.mxu0  ;;  %v395_v39 = vpop.f32.mrf.mxu1 }
  0xef   : > { %451 = vst [vmem:[%s851_s27 + $0x8] sm:$0xff] %v661_v36  ;;  %455 = vst [vmem:[%s851_s27 + $0x28] sm:$0xff] %v665_v37  ;;  %v376_v42 = vadd.f32 %v375_v38, %v283_v15  ;;  %v396_v43 = vadd.f32 %v395_v39, %v283_v15 }
  0xf0   : > { %v377_v44 = vpop.f32.mrf.mxu0  ;;  %v397_v45 = vpop.f32.mrf.mxu1 }
  0xf1   : > { %v662_v46 = vpack.c.bf16 %v376_v42, %v374_v40  ;;  %v666_v47 = vpack.c.bf16 %v396_v43, %v394_v41  ;;  %v378_v50 = vadd.f32 %v377_v44, %v279_v14  ;;  %v398_v51 = vadd.f32 %v397_v45, %v279_v14 }
  0xf2   : > { %v379_v48 = vpop.f32.mrf.mxu0  ;;  %v399_v49 = vpop.f32.mrf.mxu1  ;;  %v513_v56 = vld [vmem:[%s851_s27] sm:$0xff] (%p815_p6) }
  0xf3   : > { %452 = vst [vmem:[%s851_s27 + $0x10] sm:$0xff] %v662_v46  ;;  %456 = vst [vmem:[%s851_s27 + $0x30] sm:$0xff] %v666_v47  ;;  %v380_v52 = vadd.f32 %v379_v48, %v283_v15  ;;  %v400_v53 = vadd.f32 %v399_v49, %v283_v15  ;;  %464 = sbr.rel (!%p815_p6) target bundleno = 257 (0x101), region = 74  ;;  %v521_v60 = vld [vmem:[%s851_s27 + $0x20] sm:$0xff] (%p815_p6) }
  0xf4   : > { %514 = vst [vmem:[%s470_s30] sm:$0xff] (%p815_p6), %v513_v56  ;;  %522 = vst [vmem:[%s470_s30 + $0x60] sm:$0xff] (%p815_p6), %v521_v60 }
  0xf5   : > { %v663_v54 = vpack.c.bf16 %v380_v52, %v378_v50  ;;  %v667_v55 = vpack.c.bf16 %v400_v53, %v398_v51 }
  0xf6   : > { %v515_v57 = vld [vmem:[%s851_s27 + $0x8] sm:$0xff] (%p815_p6) }
  0xf7   : > { %453 = vst [vmem:[%s851_s27 + $0x18] sm:$0xff] %v663_v54  ;;  %457 = vst [vmem:[%s851_s27 + $0x38] sm:$0xff] %v667_v55  ;;  %v523_v61 = vld [vmem:[%s851_s27 + $0x28] sm:$0xff] (%p815_p6) }
  0xf8   : > { %516 = vst [vmem:[%s470_s30 + $0x18] sm:$0xff] %v515_v57  ;;  %524 = vst [vmem:[%s470_s30 + $0x78] sm:$0xff] %v523_v61 }
  0xfa   : > { %v517_v58 = vld [vmem:[%s851_s27 + $0x10] sm:$0xff] }
  0xfb   : > { %518 = vst [vmem:[%s470_s30 + $0x30] sm:$0xff] %v517_v58  ;;  %v525_v62 = vld [vmem:[%s851_s27 + $0x30] sm:$0xff] }
  0xfc   : > { %526 = vst [vmem:[%s470_s30 + $0x90] sm:$0xff] %v525_v62 }
  0xfe   : > { %v519_v59 = vld [vmem:[%s851_s27 + $0x18] sm:$0xff] }
  0xff   : > { %520 = vst [vmem:[%s470_s30 + $0x48] sm:$0xff] %v519_v59  ;;  %v527_v63 = vld [vmem:[%s851_s27 + $0x38] sm:$0xff] }
 0x100   : > { %528 = vst [vmem:[%s470_s30 + $0xa8] sm:$0xff] %v527_v63 }
 0x101 PF: > { %s13_s16 = sadd.s32 1, %s757_s16   ;;  %s895_s12 = smov %s745_s13 }
 0x102   : > { %p10_p12 = scmp.ge.s32.totalorder %s13_s16, 5   ;;  %s896_s13 = smov %s820_s22 }
 0x103   : > { %s897_s14 = smov %s753_s15  ;;  %s898_s15 = smov %s900_s17 }
 0x104   :  { %12 = sbr.rel (!%p10_p12) target bundleno = 3 (0x3), region = 149 }

// kernel: brain_gpt_forward.8
= control target key start
LH: loop header
LB: loop body
LE: loop exit
PB: predicated region body
PF: predicated region fallthrough
CT: control target
= control target key end

     0   :  { %v360_v0 = vmov 0.0   ;;  %vm361_vm0 = vmmov 0   ;;  %vm256_vm1 = vcmask 523264   ;;  %s455_s3 = inlined_call_operand.vmem [shape: bf16[128,64], index: 3, kind: input, shape index: {}]   ;;  %s456_s1 = inlined_call_operand.vmem [shape: bf16[128,64], index: 1, kind: input, shape index: {}]   ;;  %s457_s2 = inlined_call_operand.vmem [shape: bf16[16,128], index: 2, kind: input, shape index: {}]   ;;  %s458_s0 = inlined_call_operand.vmem [shape: bf16[16,128], index: 0, kind: input, shape index: {}]   ;;  %s459_s4 = inlined_call_operand.vmem [shape: f32[1,64], index: 4, kind: input, shape index: {}]   ;;  %s460_s5 = inlined_call_operand.vmem [shape: f32[16,64], index: 5, kind: output, shape index: {}]  }
   0x1   :  { %300 = vmatprep.subr.bf16.mxu0 %v360_v0  ;;  %320 = vmatprep.subr.bf16.mxu1 %v360_v0  ;;  %v342_v1 = vld [vmem:[%s455_s3 + $0x38] sm:$0xff]   ;;  %v344_v3 = vld [vmem:[%s455_s3 + $0x30] sm:$0xff]   ;;  %v346_v5 = vld [vmem:[%s455_s3 + $0x28] sm:$0xff]  }
   0x2   :  { %v343_v2 = vld [vmem:[%s456_s1 + $0x38] sm:$0xff]   ;;  %316 = vmatprep.mubr.msk.bf16.mxu0 %vm361_vm0, %v360_v0  ;;  %336 = vmatprep.mubr.msk.bf16.mxu1 %vm361_vm0, %v360_v0  ;;  %v345_v4 = vld [vmem:[%s456_s1 + $0x30] sm:$0xff]   ;;  %v347_v6 = vld [vmem:[%s456_s1 + $0x28] sm:$0xff]  }
   0x3   :  { %301 = vmatpush3.bf16.msra.mxu0 %v342_v1  ;;  %321 = vmatpush3.bf16.msra.mxu1 %v343_v2  ;;  %v348_v7 = vld [vmem:[%s455_s3 + $0x20] sm:$0xff]   ;;  %v350_v9 = vld [vmem:[%s455_s3 + $0x18] sm:$0xff]   ;;  %v352_v11 = vld [vmem:[%s455_s3 + $0x10] sm:$0xff]  }
   0x4   :  { %302 = vmatprep.subr.bf16.mxu0 %v360_v0  ;;  %322 = vmatprep.subr.bf16.mxu1 %v360_v0  ;;  %v349_v8 = vld [vmem:[%s456_s1 + $0x20] sm:$0xff]   ;;  %v351_v10 = vld [vmem:[%s456_s1 + $0x18] sm:$0xff]   ;;  %v353_v12 = vld [vmem:[%s456_s1 + $0x10] sm:$0xff]  }
   0x5   :  { %v354_v13 = vld [vmem:[%s455_s3 + $0x8] sm:$0xff]   ;;  %v356_v15 = vld [vmem:[%s455_s3] sm:$0xff]  }
   0x6   :  { %v355_v14 = vld [vmem:[%s456_s1 + $0x8] sm:$0xff]   ;;  %v357_v16 = vld [vmem:[%s456_s1] sm:$0xff]  }
   0x7   :  { %303 = vmatpush3.bf16.msra.mxu0 %v344_v3  ;;  %323 = vmatpush3.bf16.msra.mxu1 %v345_v4  ;;  %v358_v17 = vld [vmem:[%s457_s2] sm:$0xff]  }
   0x8   :  { %304 = vmatprep.subr.bf16.mxu0 %v360_v0  ;;  %324 = vmatprep.subr.bf16.mxu1 %v360_v0  ;;  %v359_v18 = vld [vmem:[%s458_s0] sm:$0xff]  }
   0x9   :  { %v281_v21 = vld [vmem:[%s459_s4] ss:$0 sm:$0xff] }
   0xb   :  { %305 = vmatpush3.bf16.msra.mxu0 %v346_v5  ;;  %325 = vmatpush3.bf16.msra.mxu1 %v347_v6 }
   0xc   :  { %306 = vmatprep.subr.bf16.mxu0 %v360_v0  ;;  %326 = vmatprep.subr.bf16.mxu1 %v360_v0 }
   0xf   :  { %307 = vmatpush3.bf16.msra.mxu0 %v348_v7  ;;  %327 = vmatpush3.bf16.msra.mxu1 %v349_v8 }
  0x10   :  { %308 = vmatprep.subr.bf16.mxu0 %v360_v0  ;;  %328 = vmatprep.subr.bf16.mxu1 %v360_v0 }
  0x13   :  { %309 = vmatpush3.bf16.msra.mxu0 %v350_v9  ;;  %329 = vmatpush3.bf16.msra.mxu1 %v351_v10 }
  0x14   :  { %310 = vmatprep.subr.bf16.mxu0 %v360_v0  ;;  %330 = vmatprep.subr.bf16.mxu1 %v360_v0 }
  0x17   :  { %311 = vmatpush3.bf16.msra.mxu0 %v352_v11  ;;  %331 = vmatpush3.bf16.msra.mxu1 %v353_v12 }
  0x18   :  { %312 = vmatprep.subr.bf16.mxu0 %v360_v0  ;;  %332 = vmatprep.subr.bf16.mxu1 %v360_v0 }
  0x1b   :  { %313 = vmatpush3.bf16.msra.mxu0 %v354_v13  ;;  %333 = vmatpush3.bf16.msra.mxu1 %v355_v14 }
  0x1c   :  { %314 = vmatprep.subr.bf16.mxu0 %v360_v0  ;;  %334 = vmatprep.subr.bf16.mxu1 %v360_v0 }
  0x1f   :  { %315 = vmatpush3.bf16.msra.mxu0 %v356_v15  ;;  %335 = vmatpush3.bf16.msra.mxu1 %v357_v16 }
  0x22   :  { %317 = vmatmul.mubr.bf16.vlgmr.msra.gmra.mxu0 %v358_v17  ;;  %337 = vmatmul.mubr.bf16.vlgmr.msra.gmra.mxu1 %v359_v18 }
  0xe2   :  { %v145_v19 = vpop.f32.mrf.mxu0  ;;  %v240_v20 = vpop.f32.mrf.mxu1 }
  0xe3   :  { %v241_v22 = vadd.f32 %v240_v20, %v145_v19 }
  0xe4   :  { %v318_v23 = vpop.f32.mrf.mxu0  ;;  %v338_v24 = vpop.f32.mrf.mxu1 }
  0xe5   :  { %v254_v25 = vadd.f32 %v281_v21, %v241_v22 }
  0xe6   :  { %v148_v26 = vpop.f32.mrf.mxu0  ;;  %v243_v27 = vpop.f32.mrf.mxu1 }
  0xe7   :  { %257 = vst.msk [vmem:[%s460_s5] sm:$0xff] %vm256_vm1, %v254_v25  ;;  %v244_v28 = vadd.f32 %v243_v27, %v148_v26 }
  0xe8   :  { %v319_v29 = vpop.f32.mrf.mxu0  ;;  %v339_v30 = vpop.f32.mrf.mxu1 }
  0xe9   :  { %v255_v31 = vadd.f32 %v281_v21, %v244_v28 }
  0xeb   :  { %258 = vst.msk [vmem:[%s460_s5 + $0x8] sm:$0xff] %vm256_vm1, %v255_v31 }

// kernel: brain_gpt_forward.9
= control target key start
LH: loop header
LB: loop body
LE: loop exit
PB: predicated region body
PF: predicated region fallthrough
CT: control target
= control target key end

     0   :  { %s1321_s0 = inlined_call_operand.vmem [shape: s32[16], index: 0, kind: input, shape index: {}]   ;;  %s1322_s1 = inlined_call_operand.vmem [shape: f32[50,64], index: 1, kind: input, shape index: {}]   ;;  %s1323_s2 = inlined_call_operand.vmem [shape: f32[16,64], index: 2, kind: output, shape index: {}]  }
   0x1   :  { %s7_s11 = sshll.u32 %s1321_s0, 4  ;;  %s8_s11 = int_to_ptr.vmem [resolvable:$true] %s7_s11 }
   0x2   :  { %s1202_s12 = scalar_lea.vmem %s8_s11, 16  ;;  %p1207_p1 = scmp.lt.s32.totalorder %s8_s11, %s8_s11 }
   0x3   :  { %p1203_p0 = scmp.ne.s32.totalorder %s8_s11, %s1202_s12  ;;  %p1208_p2 = scmp.lt.s32.totalorder %s1202_s12, %s1202_s12 }
   0x5   :  { %p1209_p3 = por %p1208_p2, %p1207_p1 }
   0x7   :  { %p1210_p4 = pnand %p1209_p3, %p1203_p0 }
   0x9   :  { %1213 = shalt.err (!%p1210_p4)  }
   0xa   :  { %s1248_s13 = smov [#allocation5]  }
   0xb   :  { %10 = dma.vmem_to_smem %s8_s11, 16, %s1248_s13, [#allocation4] }
   0xc   :  { %1214 = dma.done.wait [#allocation4], 16 }
   0xd   :  { %1215 = vsyncadd [#allocation4], 4294967280 }
   0xe   :  { %12 = sfence }
   0xf   :  { %s14_s14 = sld [smem:[#allocation5]] }
  0x15   :  { %s15_s17 = scalar_lea.vmem %s1322_s1, %s14_s14 }
  0x16   :  { %v34_v0 = vld [vmem:[%s15_s17] sm:$0x1] }
  0x17   :  { %35 = vst [vmem:[#allocation2] sm:$0x1] %v34_v0 }
  0x18   :  { %61 = vsyncadd [#allocation3], 16  ;;  %s1170_s0 = sld [smem:[#allocation5 + $0x1]] }
  0x1e   :  { %s64_s20 = scalar_lea.vmem %s1322_s1, %s1170_s0 }
  0x1f   :  { %v85_v1 = vld [vmem:[%s64_s20] sm:$0x1] }
  0x20   :  { %86 = vst [vmem:[#allocation2 + $0x1] sm:$0x1] %v85_v1 }
  0x21   :  { %112 = vsyncadd [#allocation3 + $0x1], 16  ;;  %s1171_s21 = sld [smem:[#allocation5 + $0x2]] }
  0x27   :  { %s115_s24 = scalar_lea.vmem %s1322_s1, %s1171_s21 }
  0x28   :  { %v136_v2 = vld [vmem:[%s115_s24] sm:$0x1] }
  0x29   :  { %137 = vst [vmem:[#allocation2 + $0x2] sm:$0x1] %v136_v2 }
  0x2a   :  { %163 = vsyncadd [#allocation3 + $0x2], 16  ;;  %s1172_s25 = sld [smem:[#allocation5 + $0x3]] }
  0x30   :  { %s166_s28 = scalar_lea.vmem %s1322_s1, %s1172_s25 }
  0x31   :  { %v187_v3 = vld [vmem:[%s166_s28] sm:$0x1] }
  0x32   :  { %188 = vst [vmem:[#allocation2 + $0x3] sm:$0x1] %v187_v3 }
  0x33   :  { %214 = vsyncadd [#allocation3 + $0x3], 16  ;;  %s1173_s29 = sld [smem:[#allocation5 + $0x4]] }
  0x39   :  { %s217_s4 = scalar_lea.vmem %s1322_s1, %s1173_s29 }
  0x3a   :  { %v238_v4 = vld [vmem:[%s217_s4] sm:$0x1] }
  0x3b   :  { %239 = vst [vmem:[#allocation2 + $0x4] sm:$0x1] %v238_v4 }
  0x3c   :  { %265 = vsyncadd [#allocation3 + $0x4], 16  ;;  %s1174_s5 = sld [smem:[#allocation5 + $0x5]] }
  0x42   :  { %s268_s8 = scalar_lea.vmem %s1322_s1, %s1174_s5 }
  0x43   :  { %v289_v5 = vld [vmem:[%s268_s8] sm:$0x1] }
  0x44   :  { %290 = vst [vmem:[#allocation2 + $0x5] sm:$0x1] %v289_v5 }
  0x45   :  { %316 = vsyncadd [#allocation3 + $0x5], 16  ;;  %s1175_s9 = sld [smem:[#allocation5 + $0x6]] }
  0x4b   :  { %s319_s12 = scalar_lea.vmem %s1322_s1, %s1175_s9 }
  0x4c   :  { %v340_v6 = vld [vmem:[%s319_s12] sm:$0x1] }
  0x4d   :  { %341 = vst [vmem:[#allocation2 + $0x6] sm:$0x1] %v340_v6 }
  0x4e   :  { %367 = vsyncadd [#allocation3 + $0x6], 16  ;;  %s1176_s13 = sld [smem:[#allocation5 + $0x7]] }
  0x54   :  { %s370_s16 = scalar_lea.vmem %s1322_s1, %s1176_s13 }
  0x55   :  { %v391_v7 = vld [vmem:[%s370_s16] sm:$0x1] }
  0x56   :  { %392 = vst [vmem:[#allocation2 + $0x7] sm:$0x1] %v391_v7 }
  0x57   :  { %418 = vsyncadd [#allocation3 + $0x7], 16  ;;  %s1177_s17 = sld [smem:[#allocation5 + $0x8]] }
  0x5d   :  { %s421_s19 = scalar_lea.vmem %s1322_s1, %s1177_s17 }
  0x5e   :  { %v442_v8 = vld [vmem:[%s421_s19] sm:$0x1] }
  0x5f   :  { %443 = vst [vmem:[#allocation2 + $0x8] sm:$0x1] %v442_v8 }
  0x60   :  { %469 = vsyncadd [#allocation3 + $0x8], 16  ;;  %s1178_s20 = sld [smem:[#allocation5 + $0x9]] }
  0x66   :  { %s472_s23 = scalar_lea.vmem %s1322_s1, %s1178_s20 }
  0x67   :  { %v493_v9 = vld [vmem:[%s472_s23] sm:$0x1] }
  0x68   :  { %494 = vst [vmem:[#allocation2 + $0x9] sm:$0x1] %v493_v9 }
  0x69   :  { %520 = vsyncadd [#allocation3 + $0x9], 16  ;;  %s1179_s24 = sld [smem:[#allocation5 + $0xa]] }
  0x6f   :  { %s523_s27 = scalar_lea.vmem %s1322_s1, %s1179_s24 }
  0x70   :  { %v544_v10 = vld [vmem:[%s523_s27] sm:$0x1] }
  0x71   :  { %545 = vst [vmem:[#allocation2 + $0xa] sm:$0x1] %v544_v10 }
  0x72   :  { %571 = vsyncadd [#allocation3 + $0xa], 16  ;;  %s1180_s28 = sld [smem:[#allocation5 + $0xb]] }
  0x78   :  { %s574_s3 = scalar_lea.vmem %s1322_s1, %s1180_s28 }
  0x79   :  { %v595_v11 = vld [vmem:[%s574_s3] sm:$0x1] }
  0x7a   :  { %596 = vst [vmem:[#allocation2 + $0xb] sm:$0x1] %v595_v11 }
  0x7b   :  { %622 = vsyncadd [#allocation3 + $0xb], 16  ;;  %s1181_s4 = sld [smem:[#allocation5 + $0xc]] }
  0x81   :  { %s625_s7 = scalar_lea.vmem %s1322_s1, %s1181_s4 }
  0x82   :  { %v646_v12 = vld [vmem:[%s625_s7] sm:$0x1] }
  0x83   :  { %647 = vst [vmem:[#allocation2 + $0xc] sm:$0x1] %v646_v12 }
  0x84   :  { %673 = vsyncadd [#allocation3 + $0xc], 16  ;;  %s1182_s8 = sld [smem:[#allocation5 + $0xd]] }
  0x8a   :  { %s676_s11 = scalar_lea.vmem %s1322_s1, %s1182_s8 }
  0x8b   :  { %v697_v13 = vld [vmem:[%s676_s11] sm:$0x1] }
  0x8c   :  { %698 = vst [vmem:[#allocation2 + $0xd] sm:$0x1] %v697_v13 }
  0x8d   :  { %724 = vsyncadd [#allocation3 + $0xd], 16  ;;  %s1183_s12 = sld [smem:[#allocation5 + $0xe]] }
  0x93   :  { %s727_s15 = scalar_lea.vmem %s1322_s1, %s1183_s12 }
  0x94   :  { %v748_v14 = vld [vmem:[%s727_s15] sm:$0x1] }
  0x95   :  { %749 = vst [vmem:[#allocation2 + $0xe] sm:$0x1] %v748_v14 }
  0x96   :  { %775 = vsyncadd [#allocation3 + $0xe], 16  ;;  %s1184_s16 = sld [smem:[#allocation5 + $0xf]] }
  0x9c   :  { %s778_s18 = scalar_lea.vmem %s1322_s1, %s1184_s16 }
  0x9d   :  { %v799_v15 = vld [vmem:[%s778_s18] sm:$0x1] }
  0x9e   :  { %800 = vst [vmem:[#allocation2 + $0xf] sm:$0x1] %v799_v15 }
  0x9f   :  { %826 = vsyncadd [#allocation3 + $0xf], 16 }
  0xa0   :  { %1216 = dma.done.wait [#allocation3], 16 }
  0xa1   :  { %1217 = vsyncadd [#allocation3], 4294967280 }
  0xa2   :  { %1218 = dma.done.wait [#allocation3 + $0x1], 16 }
  0xa3   :  { %1219 = vsyncadd [#allocation3 + $0x1], 4294967280 }
  0xa4   :  { %1220 = dma.done.wait [#allocation3 + $0x2], 16 }
  0xa5   :  { %1221 = vsyncadd [#allocation3 + $0x2], 4294967280 }
  0xa6   :  { %1222 = dma.done.wait [#allocation3 + $0x3], 16 }
  0xa7   :  { %1223 = vsyncadd [#allocation3 + $0x3], 4294967280 }
  0xa8   :  { %1224 = dma.done.wait [#allocation3 + $0x4], 16 }
  0xa9   :  { %1225 = vsyncadd [#allocation3 + $0x4], 4294967280 }
  0xaa   :  { %1226 = dma.done.wait [#allocation3 + $0x5], 16 }
  0xab   :  { %1227 = vsyncadd [#allocation3 + $0x5], 4294967280 }
  0xac   :  { %1228 = dma.done.wait [#allocation3 + $0x6], 16 }
  0xad   :  { %1229 = vsyncadd [#allocation3 + $0x6], 4294967280 }
  0xae   :  { %1230 = dma.done.wait [#allocation3 + $0x7], 16 }
  0xaf   :  { %1231 = vsyncadd [#allocation3 + $0x7], 4294967280 }
  0xb0   :  { %1232 = dma.done.wait [#allocation3 + $0x8], 16 }
  0xb1   :  { %1233 = vsyncadd [#allocation3 + $0x8], 4294967280 }
  0xb2   :  { %1234 = dma.done.wait [#allocation3 + $0x9], 16 }
  0xb3   :  { %1235 = vsyncadd [#allocation3 + $0x9], 4294967280 }
  0xb4   :  { %1236 = dma.done.wait [#allocation3 + $0xa], 16 }
  0xb5   :  { %1237 = vsyncadd [#allocation3 + $0xa], 4294967280 }
  0xb6   :  { %1238 = dma.done.wait [#allocation3 + $0xb], 16 }
  0xb7   :  { %1239 = vsyncadd [#allocation3 + $0xb], 4294967280 }
  0xb8   :  { %1240 = dma.done.wait [#allocation3 + $0xc], 16 }
  0xb9   :  { %1241 = vsyncadd [#allocation3 + $0xc], 4294967280 }
  0xba   :  { %1242 = dma.done.wait [#allocation3 + $0xd], 16 }
  0xbb   :  { %1243 = vsyncadd [#allocation3 + $0xd], 4294967280 }
  0xbc   :  { %1244 = dma.done.wait [#allocation3 + $0xe], 16 }
  0xbd   :  { %1245 = vsyncadd [#allocation3 + $0xe], 4294967280 }
  0xbe   :  { %1246 = dma.done.wait [#allocation3 + $0xf], 16 }
  0xbf   :  { %1247 = vsyncadd [#allocation3 + $0xf], 4294967280  ;;  %vm861_vm0 = vcmask 523264   ;;  %v859_v16 = vld [vmem:[#allocation2] sm:$0xff]  ;;  %v860_v17 = vld [vmem:[#allocation2 + $0x8] sm:$0xff] }
  0xc0   :  { %862 = vst.msk [vmem:[%s1323_s2] sm:$0xff] %vm861_vm0, %v859_v16  ;;  %863 = vst.msk [vmem:[%s1323_s2 + $0x8] sm:$0xff] %vm861_vm0, %v860_v17 }
  0xc1   :  { %868 = vsyncmov [#allocation3] }
  0xc4   :  { %s869_s22 = vpop.sfrf %868 }
  0xc5   :  { %p1185_p5 = scmp.ne.s32.totalorder %s869_s22, 0 }
  0xc7   :  { %873 = shalt.err (%p1185_p5)  }
  0xc8   :  { %875 = vsyncmov [#allocation3 + $0x1] }
  0xcb   :  { %s876_s23 = vpop.sfrf %875 }
  0xcc   :  { %p1186_p6 = scmp.ne.s32.totalorder %s876_s23, 0 }
  0xce   :  { %880 = shalt.err (%p1186_p6)  }
  0xcf   :  { %882 = vsyncmov [#allocation3 + $0x2] }
  0xd2   :  { %s883_s24 = vpop.sfrf %882 }
  0xd3   :  { %p1187_p7 = scmp.ne.s32.totalorder %s883_s24, 0 }
  0xd5   :  { %887 = shalt.err (%p1187_p7)  }
  0xd6   :  { %889 = vsyncmov [#allocation3 + $0x3] }
  0xd9   :  { %s890_s25 = vpop.sfrf %889 }
  0xda   :  { %p1188_p8 = scmp.ne.s32.totalorder %s890_s25, 0 }
  0xdc   :  { %894 = shalt.err (%p1188_p8)  }
  0xdd   :  { %896 = vsyncmov [#allocation3 + $0x4] }
  0xe0   :  { %s897_s26 = vpop.sfrf %896 }
  0xe1   :  { %p1189_p9 = scmp.ne.s32.totalorder %s897_s26, 0 }
  0xe3   :  { %901 = shalt.err (%p1189_p9)  }
  0xe4   :  { %903 = vsyncmov [#allocation3 + $0x5] }
  0xe7   :  { %s904_s2 = vpop.sfrf %903 }
  0xe8   :  { %p1190_p10 = scmp.ne.s32.totalorder %s904_s2, 0 }
  0xea   :  { %908 = shalt.err (%p1190_p10)  }
  0xeb   :  { %910 = vsyncmov [#allocation3 + $0x6] }
  0xee   :  { %s911_s27 = vpop.sfrf %910 }
  0xef   :  { %p1191_p11 = scmp.ne.s32.totalorder %s911_s27, 0 }
  0xf1   :  { %915 = shalt.err (%p1191_p11)  }
  0xf2   :  { %917 = vsyncmov [#allocation3 + $0x7] }
  0xf5   :  { %s918_s28 = vpop.sfrf %917 }
  0xf6   :  { %p1192_p12 = scmp.ne.s32.totalorder %s918_s28, 0 }
  0xf8   :  { %922 = shalt.err (%p1192_p12)  }
  0xf9   :  { %924 = vsyncmov [#allocation3 + $0x8] }
  0xfc   :  { %s925_s29 = vpop.sfrf %924 }
  0xfd   :  { %p1193_p13 = scmp.ne.s32.totalorder %s925_s29, 0 }
  0xff   :  { %929 = shalt.err (%p1193_p13)  }
 0x100   :  { %931 = vsyncmov [#allocation3 + $0x9] }
 0x103   :  { %s932_s30 = vpop.sfrf %931 }
 0x104   :  { %p1194_p0 = scmp.ne.s32.totalorder %s932_s30, 0 }
 0x106   :  { %936 = shalt.err (%p1194_p0)  }
 0x107   :  { %938 = vsyncmov [#allocation3 + $0xa] }
 0x10a   :  { %s939_s3 = vpop.sfrf %938 }
 0x10b   :  { %p1195_p1 = scmp.ne.s32.totalorder %s939_s3, 0 }
 0x10d   :  { %943 = shalt.err (%p1195_p1)  }
 0x10e   :  { %945 = vsyncmov [#allocation3 + $0xb] }
 0x111   :  { %s946_s4 = vpop.sfrf %945 }
 0x112   :  { %p1196_p2 = scmp.ne.s32.totalorder %s946_s4, 0 }
 0x114   :  { %950 = shalt.err (%p1196_p2)  }
 0x115   :  { %952 = vsyncmov [#allocation3 + $0xc] }
 0x118   :  { %s953_s5 = vpop.sfrf %952 }
 0x119   :  { %p1197_p3 = scmp.ne.s32.totalorder %s953_s5, 0 }
 0x11b   :  { %957 = shalt.err (%p1197_p3)  }
 0x11c   :  { %959 = vsyncmov [#allocation3 + $0xd] }
 0x11f   :  { %s960_s6 = vpop.sfrf %959 }
 0x120   :  { %p1198_p4 = scmp.ne.s32.totalorder %s960_s6, 0 }
 0x122   :  { %964 = shalt.err (%p1198_p4)  }
 0x123   :  { %966 = vsyncmov [#allocation3 + $0xe] }
 0x126   :  { %s967_s7 = vpop.sfrf %966 }
 0x127   :  { %p1199_p5 = scmp.ne.s32.totalorder %s967_s7, 0 }
 0x129   :  { %971 = shalt.err (%p1199_p5)  }
 0x12a   :  { %973 = vsyncmov [#allocation3 + $0xf] }
 0x12d   :  { %s974_s8 = vpop.sfrf %973 }
 0x12e   :  { %p1200_p6 = scmp.ne.s32.totalorder %s974_s8, 0 }
 0x130   :  { %978 = shalt.err (%p1200_p6)  }

// kernel: brain_gpt_forward.7
= control target key start
LH: loop header
LB: loop body
LE: loop exit
PB: predicated region body
PF: predicated region fallthrough
CT: control target
= control target key end

     0   :  { %v4640_v2 = vmov 0.0   ;;  %v4638_v3 = vmov 0   ;;  %vm3219_vm0 = vmmov 0   ;;  %v3220_v28 = vmov 0.0|0.0   ;;  %s4630_s0 = inlined_call_operand.vmem [shape: bf16[8,8,768], index: 0, kind: input, shape index: {}, may-alias: {0,1}]   ;;  %s4631_s1 = inlined_call_operand.vmem [shape: bf16[8,8,768], index: 1, kind: input, shape index: {}, may-alias: {0,1}]   ;;  %s4632_s2 = inlined_call_operand.vmem [shape: bf16[128,384], index: 2, kind: input, shape index: {}]   ;;  %s4633_s3 = inlined_call_operand.vmem [shape: bf16[128,384], index: 3, kind: input, shape index: {}]   ;;  %s4634_s4 = inlined_call_operand.vmem [shape: f32[1,384], index: 4, kind: input, shape index: {}]   ;;  %s4635_s5 = inlined_call_operand.vmem [shape: f32[1,384], index: 5, kind: input, shape index: {}]   ;;  %s4636_s6 = inlined_call_operand.vmem [shape: bf16[8,8,128], index: 6, kind: output, shape index: {0}]   ;;  %s4637_s7 = inlined_call_operand.vmem [shape: bf16[8,8,128], index: 7, kind: output, shape index: {1}]  }
   0x1   :  { %v3264_v0 = vld [vmem:[%s4632_s2 + $0xac] ss:$12 sps:$4 sm:$0xff]   ;;  %v3269_v1 = vld [vmem:[%s4632_s2 + $0xa8] ss:$12 sps:$4 sm:$0xff]   ;;  %2617 = vmatprep.subr.bf16.mxu1 %v4640_v2  ;;  %428 = vmatprep.mubr.bf16.mxu0 %v4638_v3  ;;  %v3285_v5 = vld [vmem:[%s4632_s2 + $0x90] ss:$12 sps:$4 sm:$0xff]   ;;  %v253_v56 = vlaneseq }
   0x2   :  { %396 = vmatprep.subr.bf16.mxu0 %v3264_v0  ;;  %v3277_v4 = vld [vmem:[%s4632_s2 + $0x94] ss:$12 sps:$4 sm:$0xff]   ;;  %2633 = vmatprep.mubr.msk.bf16.mxu1 %vm3219_vm0, %v4640_v2  ;;  %v3291_v6 = vld [vmem:[%s4632_s2 + $0x7c] ss:$12 sps:$4 sm:$0xff]   ;;  %v3297_v7 = vld [vmem:[%s4632_s2 + $0x78] ss:$12 sps:$4 sm:$0xff]  }
   0x3   :  { %397 = vmatpush1.bf16.msra.mxu0 %v3269_v1  ;;  %v3303_v8 = vld [vmem:[%s4632_s2 + $0x64] ss:$12 sps:$4 sm:$0xff]   ;;  %v3308_v9 = vld [vmem:[%s4632_s2 + $0x60] ss:$12 sps:$4 sm:$0xff]   ;;  %v3333_v13 = vld [vmem:[%s4632_s2 + $0x48] ss:$12 sps:$4 sm:$0xff]  }
   0x4   :  { %398 = vmatprep.subr.bf16.mxu0 %v3277_v4  ;;  %v3314_v10 = vld [vmem:[%s4632_s2 + $0xb0] ss:$12 sps:$4 sm:$0xff]   ;;  %v3320_v11 = vld [vmem:[%s4632_s2 + $0x4c] ss:$12 sps:$4 sm:$0xff]   ;;  %4710 = vst [vmem:[#allocation7_spill] sm:$0xff] %v3333_v13  ;;  %v3447_v32 = vld [vmem:[%s4630_s0] sm:$0xff] }
   0x5   :  { %4709 = vst [vmem:[#allocation6_spill] sm:$0xff] %v3320_v11  ;;  %2618 = vmatpush3.bf16.msra.mxu1 %v3314_v10  ;;  %v3326_v12 = vld [vmem:[%s4632_s2 + $0x98] ss:$12 sps:$4 sm:$0xff]   ;;  %v3339_v14 = vld [vmem:[%s4632_s2 + $0x34] ss:$12 sps:$4 sm:$0xff]   ;;  %v3631_v57 = vshrl.u32 %v253_v56, 7  ;;  %v242_v62 = vunpack.c.l.bf16 %v3447_v32 }
   0x6   :  { %2619 = vmatprep.subr.bf16.mxu1 %v4640_v2  ;;  %4711 = vst [vmem:[#allocation8_spill] sm:$0xff] %v3339_v14  ;;  %v3345_v15 = vld [vmem:[%s4632_s2 + $0x80] ss:$12 sps:$4 sm:$0xff]   ;;  %v3352_v16 = vld [vmem:[%s4632_s2 + $0x30] ss:$12 sps:$4 sm:$0xff]   ;;  %v2370_v53 = vld [vmem:[%s4631_s1 + $0xb4] sm:$0xff] }
   0x7   :  { %399 = vmatpush1.bf16.msra.mxu0 %v3285_v5  ;;  %4712 = vst [vmem:[#allocation9_spill] sm:$0xff] %v3352_v16  ;;  %v3358_v17 = vld [vmem:[%s4632_s2 + $0x1c] ss:$12 sps:$4 sm:$0xff]   ;;  %v3371_v19 = vld [vmem:[%s4632_s2 + $0x18] ss:$12 sps:$4 sm:$0xff]   ;;  %v255_v58 = vsub.s32 0, %v3631_v57 }
   0x8   :  { %400 = vmatprep.subr.bf16.mxu0 %v3291_v6  ;;  %4713 = vst [vmem:[#allocation10_spill] sm:$0xff] %v3358_v17  ;;  %v3364_v18 = vld [vmem:[%s4632_s2 + $0x68] ss:$12 sps:$4 sm:$0xff]   ;;  %4714 = vst [vmem:[#allocation11_spill] sm:$0xff] %v3371_v19  ;;  %v3377_v20 = vld [vmem:[%s4632_s2 + $0x4] ss:$12 sps:$4 sm:$0xff]  }
   0x9   :  { %2620 = vmatpush3.bf16.msra.mxu1 %v3326_v12  ;;  %4715 = vst [vmem:[#allocation12_spill] sm:$0xff] %v3377_v20  ;;  %v3383_v21 = vld [vmem:[%s4632_s2 + $0x50] ss:$12 sps:$4 sm:$0xff]   ;;  %v3390_v22 = vld [vmem:[%s4632_s2] ss:$12 sps:$4 sm:$0xff]   ;;  %v259_v61 = vsub.s32 1, %v3631_v57 }
   0xa   :  { %2621 = vmatprep.subr.bf16.mxu1 %v4640_v2  ;;  %4716 = vst [vmem:[#allocation13_spill] sm:$0xff] %v3383_v21  ;;  %4717 = vst [vmem:[#allocation14_spill] sm:$0xff] %v3390_v22  ;;  %v3396_v23 = vld [vmem:[%s4633_s3 + $0xac] ss:$12 sps:$4 sm:$0xff]   ;;  %v3409_v25 = vld [vmem:[%s4633_s3 + $0xa8] ss:$12 sps:$4 sm:$0xff]  }
   0xb   :  { %401 = vmatpush1.bf16.msra.mxu0 %v3297_v7  ;;  %4718 = vst [vmem:[#allocation15_spill] sm:$0xff] %v3396_v23  ;;  %v3402_v24 = vld [vmem:[%s4632_s2 + $0x38] ss:$12 sps:$4 sm:$0xff]   ;;  %v3415_v26 = vld [vmem:[%s4633_s3 + $0x94] ss:$12 sps:$4 sm:$0xff]  }
   0xc   :  { %402 = vmatprep.subr.bf16.mxu0 %v3303_v8  ;;  %4719 = vst [vmem:[#allocation16_spill] sm:$0xff] %v3402_v24  ;;  %v3421_v27 = vld [vmem:[%s4632_s2 + $0x20] ss:$12 sps:$4 sm:$0xff]   ;;  %v3429_v29 = vld [vmem:[%s4633_s3 + $0x90] ss:$12 sps:$4 sm:$0xff]  }
   0xd   :  { %2622 = vmatpush3.bf16.msra.mxu1 %v3345_v15  ;;  %4720 = vst [vmem:[#allocation17_spill] sm:$0xff] %v3421_v27  ;;  %v3436_v30 = vld [vmem:[%s4633_s3 + $0x7c] ss:$12 sps:$4 sm:$0xff]   ;;  %v3454_v33 = vld [vmem:[%s4633_s3 + $0x78] ss:$12 sps:$4 sm:$0xff]  }
   0xe   :  { %2623 = vmatprep.subr.bf16.mxu1 %v4640_v2  ;;  %v3442_v31 = vld [vmem:[%s4632_s2 + $0x8] ss:$12 sps:$4 sm:$0xff]   ;;  %v3460_v34 = vld [vmem:[%s4633_s3 + $0x64] ss:$12 sps:$4 sm:$0xff]   ;;  %v3473_v36 = vld [vmem:[%s4633_s3 + $0x60] ss:$12 sps:$4 sm:$0xff]  }
   0xf   :  { %403 = vmatpush1.bf16.msra.mxu0 %v3308_v9  ;;  %4721 = vst [vmem:[#allocation18_spill] sm:$0xff] %v3442_v31  ;;  %v3466_v35 = vld [vmem:[%s4633_s3 + $0xb0] ss:$12 sps:$4 sm:$0xff]   ;;  %v3479_v37 = vld [vmem:[%s4633_s3 + $0x4c] ss:$12 sps:$4 sm:$0xff]  }
  0x10   :  { %404 = vmatprep.subr.bf16.mxu0 %v3320_v11  ;;  %v3486_v38 = vld [vmem:[%s4633_s3 + $0x98] ss:$12 sps:$4 sm:$0xff]   ;;  %v3495_v39 = vld [vmem:[%s4633_s3 + $0x48] ss:$12 sps:$4 sm:$0xff]   ;;  %v3507_v41 = vld [vmem:[%s4633_s3 + $0x80] ss:$12 sps:$4 sm:$0xff]  }
  0x11   :  { %2624 = vmatpush3.bf16.msra.mxu1 %v3364_v18  ;;  %v3501_v40 = vld [vmem:[%s4633_s3 + $0x34] ss:$12 sps:$4 sm:$0xff]   ;;  %v3514_v42 = vld [vmem:[%s4633_s3 + $0x30] ss:$12 sps:$4 sm:$0xff]   ;;  %v3533_v45 = vld [vmem:[%s4633_s3 + $0x18] ss:$12 sps:$4 sm:$0xff]  }
  0x12   :  { %2625 = vmatprep.subr.bf16.mxu1 %v4640_v2  ;;  %v3520_v43 = vld [vmem:[%s4633_s3 + $0x1c] ss:$12 sps:$4 sm:$0xff]   ;;  %v3539_v46 = vld [vmem:[%s4633_s3 + $0x4] ss:$12 sps:$4 sm:$0xff]   ;;  %v3552_v48 = vld [vmem:[%s4633_s3] ss:$12 sps:$4 sm:$0xff]  }
  0x13   :  { %405 = vmatpush1.bf16.msra.mxu0 %v3333_v13  ;;  %v3526_v44 = vld [vmem:[%s4633_s3 + $0x68] ss:$12 sps:$4 sm:$0xff]   ;;  %v3545_v47 = vld [vmem:[%s4633_s3 + $0x50] ss:$12 sps:$4 sm:$0xff]   ;;  %v3559_v49 = vld [vmem:[%s4633_s3 + $0x38] ss:$12 sps:$4 sm:$0xff]  }
  0x14   :  { %406 = vmatprep.subr.bf16.mxu0 %v3339_v14  ;;  %v3568_v50 = vld [vmem:[%s4633_s3 + $0x20] ss:$12 sps:$4 sm:$0xff]   ;;  %v3579_v51 = vld [vmem:[%s4633_s3 + $0x8] ss:$12 sps:$4 sm:$0xff]   ;;  %v2378_v54 = vld [vmem:[%s4631_s1 + $0xbc] sm:$0xf] }
  0x15   :  { %2626 = vmatpush3.bf16.msra.mxu1 %v3383_v21  ;;  %v2355_v52 = vld [vmem:[%s4630_s0 + $0x8] sm:$0xf]  ;;  %135 = vst [vmem:[#allocation5 + $0x5c] sm:$0xf] %v2378_v54  ;;  %v3629_v55 = vld [vmem:[%s4630_s0 + $0x18] sm:$0xff] }
  0x16   :  { %2627 = vmatprep.subr.bf16.mxu1 %v4640_v2  ;;  %56 = vst [vmem:[#allocation4 + $0x8] sm:$0xf] %v2355_v52  ;;  %4722 = vst [vmem:[#allocation19_spill] sm:$0xff] %v3629_v55  ;;  %v236_v59 = vld [vmem:[%s4634_s4] sm:$0x7]  ;;  %v243_v55 = vunpack.c.h.bf16 %v3447_v32 }
  0x17   :  { %407 = vmatpush1.bf16.msra.mxu0 %v3352_v16  ;;  %v3637_v60 = vrot.slane %v236_v59, %v255_v58  ;;  %v3642_v52 = vrot.slane %v236_v59, %v259_v61 }
  0x18   :  { %408 = vmatprep.subr.bf16.mxu0 %v3358_v17 }
  0x19   :  { %2628 = vmatpush3.bf16.msra.mxu1 %v3402_v24  ;;  %4723 = vst [vmem:[#allocation20_spill] sm:$0xff] %v3637_v60  ;;  %4724 = vst [vmem:[#allocation21_spill] sm:$0xff] %v3642_v52 }
  0x1a   :  { %2629 = vmatprep.subr.bf16.mxu1 %v4640_v2 }
  0x1b   :  { %409 = vmatpush1.bf16.msra.mxu0 %v3371_v19 }
  0x1c   :  { %410 = vmatprep.subr.bf16.mxu0 %v3377_v20 }
  0x1d   :  { %2630 = vmatpush3.bf16.msra.mxu1 %v3421_v27 }
  0x1e   :  { %2631 = vmatprep.subr.bf16.mxu1 %v4640_v2 }
  0x1f   :  { %411 = vmatpush1.bf16.msra.mxu0 %v3390_v22 }
  0x20   :  { %622 = vmatprep.subr.bf16.mxu0 %v3396_v23 }
  0x21   :  { %2632 = vmatpush3.bf16.msra.mxu1 %v3442_v31 }
  0x22   :  { %429 = vmatmul.mubr.bf16.vlgmr.msra.gmra.mxu0 %v3220_v28  ;;  %2637 = vmatprep.subr.bf16.mxu1 %v4640_v2 }
  0x23   :  { %623 = vmatpush1.bf16.msra.mxu0 %v3409_v25  ;;  %654 = vmatprep.mubr.bf16.mxu0 %v4638_v3 }
  0x24   :  { %624 = vmatprep.subr.bf16.mxu0 %v3415_v26  ;;  %2634 = vmatmul.mubr.bf16.vlgmr.msra.gmra.mxu1 %v3220_v28 }
  0x25   :  { %2638 = vmatpush3.bf16.msra.mxu1 %v3466_v35  ;;  %2653 = vmatprep.mubr.msk.bf16.mxu1 %vm3219_vm0, %v4640_v2 }
  0x26   :  { %2639 = vmatprep.subr.bf16.mxu1 %v4640_v2 }
  0x27   :  { %625 = vmatpush1.bf16.msra.mxu0 %v3429_v29 }
  0x28   :  { %626 = vmatprep.subr.bf16.mxu0 %v3436_v30 }
  0x29   :  { %2640 = vmatpush3.bf16.msra.mxu1 %v3486_v38 }
  0x2a   :  { %2641 = vmatprep.subr.bf16.mxu1 %v4640_v2 }
  0x2b   :  { %627 = vmatpush1.bf16.msra.mxu0 %v3454_v33 }
  0x2c   :  { %628 = vmatprep.subr.bf16.mxu0 %v3460_v34 }
  0x2d   :  { %2642 = vmatpush3.bf16.msra.mxu1 %v3507_v41 }
  0x2e   :  { %2643 = vmatprep.subr.bf16.mxu1 %v4640_v2 }
  0x2f   :  { %629 = vmatpush1.bf16.msra.mxu0 %v3473_v36 }
  0x30   :  { %630 = vmatprep.subr.bf16.mxu0 %v3479_v37 }
  0x31   :  { %2644 = vmatpush3.bf16.msra.mxu1 %v3526_v44 }
  0x32   :  { %2645 = vmatprep.subr.bf16.mxu1 %v4640_v2 }
  0x33   :  { %631 = vmatpush1.bf16.msra.mxu0 %v3495_v39 }
  0x34   :  { %632 = vmatprep.subr.bf16.mxu0 %v3501_v40 }
  0x35   :  { %2646 = vmatpush3.bf16.msra.mxu1 %v3545_v47 }
  0x36   :  { %2647 = vmatprep.subr.bf16.mxu1 %v4640_v2 }
  0x37   :  { %633 = vmatpush1.bf16.msra.mxu0 %v3514_v42 }
  0x38   :  { %634 = vmatprep.subr.bf16.mxu0 %v3520_v43 }
  0x39   :  { %2648 = vmatpush3.bf16.msra.mxu1 %v3559_v49 }
  0x3a   :  { %2649 = vmatprep.subr.bf16.mxu1 %v4640_v2 }
  0x3b   :  { %635 = vmatpush1.bf16.msra.mxu0 %v3533_v45 }
  0x3c   :  { %636 = vmatprep.subr.bf16.mxu0 %v3539_v46 }
  0x3d   :  { %2650 = vmatpush3.bf16.msra.mxu1 %v3568_v50 }
  0x3e   :  { %2651 = vmatprep.subr.bf16.mxu1 %v4640_v2 }
  0x3f   :  { %637 = vmatpush1.bf16.msra.mxu0 %v3552_v48 }
  0x40   :  { %762 = vmatprep.subr.bf16.mxu0 %v3264_v0 }
  0x41   :  { %2652 = vmatpush3.bf16.msra.mxu1 %v3579_v51 }
  0x42   :  { %655 = vmatmul.mubr.bf16.vlgmr.msra.gmra.mxu0 %v3220_v28  ;;  %2657 = vmatprep.subr.bf16.mxu1 %v4640_v2 }
  0x43   :  { %763 = vmatpush1.bf16.msra.mxu0 %v3269_v1  ;;  %794 = vmatprep.mubr.bf16.mxu0 %v4638_v3 }
  0x44   :  { %764 = vmatprep.subr.bf16.mxu0 %v3277_v4  ;;  %2654 = vmatmul.mubr.bf16.vlgmr.msra.gmra.mxu1 %v3220_v28 }
  0x45   :  { %2658 = vmatpush3.bf16.msra.mxu1 %v3314_v10  ;;  %2673 = vmatprep.mubr.msk.bf16.mxu1 %vm3219_vm0, %v4640_v2 }
  0x46   :  { %2659 = vmatprep.subr.bf16.mxu1 %v4640_v2 }
  0x47   :  { %765 = vmatpush1.bf16.msra.mxu0 %v3285_v5 }
  0x48   :  { %766 = vmatprep.subr.bf16.mxu0 %v3291_v6 }
  0x49   :  { %2660 = vmatpush3.bf16.msra.mxu1 %v3326_v12 }
  0x4a   :  { %2661 = vmatprep.subr.bf16.mxu1 %v4640_v2 }
  0x4b   :  { %767 = vmatpush1.bf16.msra.mxu0 %v3297_v7 }
  0x4c   :  { %768 = vmatprep.subr.bf16.mxu0 %v3303_v8 }
  0x4d   :  { %2662 = vmatpush3.bf16.msra.mxu1 %v3345_v15 }
  0x4e   :  { %2663 = vmatprep.subr.bf16.mxu1 %v4640_v2 }
  0x4f   :  { %769 = vmatpush1.bf16.msra.mxu0 %v3308_v9 }
  0x50   :  { %770 = vmatprep.subr.bf16.mxu0 %v3320_v11 }
  0x51   :  { %2664 = vmatpush3.bf16.msra.mxu1 %v3364_v18 }
  0x52   :  { %2665 = vmatprep.subr.bf16.mxu1 %v4640_v2 }
  0x53   :  { %771 = vmatpush1.bf16.msra.mxu0 %v3333_v13 }
  0x54   :  { %772 = vmatprep.subr.bf16.mxu0 %v3339_v14 }
  0x55   :  { %2666 = vmatpush3.bf16.msra.mxu1 %v3383_v21 }
  0x56   :  { %2667 = vmatprep.subr.bf16.mxu1 %v4640_v2 }
  0x57   :  { %773 = vmatpush1.bf16.msra.mxu0 %v3352_v16 }
  0x58   :  { %774 = vmatprep.subr.bf16.mxu0 %v3358_v17 }
  0x59   :  { %2668 = vmatpush3.bf16.msra.mxu1 %v3402_v24 }
  0x5a   :  { %2669 = vmatprep.subr.bf16.mxu1 %v4640_v2 }
  0x5b   :  { %775 = vmatpush1.bf16.msra.mxu0 %v3371_v19 }
  0x5c   :  { %776 = vmatprep.subr.bf16.mxu0 %v3377_v20 }
  0x5d   :  { %2670 = vmatpush3.bf16.msra.mxu1 %v3421_v27 }
  0x5e   :  { %2671 = vmatprep.subr.bf16.mxu1 %v4640_v2 }
  0x5f   :  { %777 = vmatpush1.bf16.msra.mxu0 %v3390_v22 }
  0x60   :  { %843 = vmatprep.subr.bf16.mxu0 %v3396_v23 }
  0x61   :  { %2672 = vmatpush3.bf16.msra.mxu1 %v3442_v31 }
  0x62   :  { %2677 = vmatprep.subr.bf16.mxu1 %v4640_v2 }
  0xe2   :  { %v430_v63 = vpop.f32.mrf.mxu0 }
  0xe3   :  { %v431_v28 = vadd.f32 %v430_v63, %v3637_v60 }
  0xe4   :  { %v432_v54 = vpop.f32.mrf.mxu0  ;;  %v471_v20 = vpop.f32.mrf.mxu1 }
  0xe5   :  { %v703_v56 = vadd.f32 %v431_v28, %v242_v62  ;;  %v433_v23 = vadd.f32 %v432_v54, %v3642_v52  ;;  %v263_v62 = vsub.s32 2, %v3631_v57 }
  0xe6   :  { %v434_v3 = vpop.f32.mrf.mxu0  ;;  %v2635_v27 = vpop.f32.mrf.mxu1 }
  0xe7   :  { %v2427_v2 = vmul.f32 -1.442695, %v703_v56  ;;  %v710_v22 = vadd.f32 %v433_v23, %v243_v55  ;;  %v237_v3 = vld [vmem:[%s4635_s5] sm:$0x7]  ;;  %v3650_v32 = vrot.slane %v236_v59, %v263_v62  ;;  %v248_v23 = vunpack.c.l.bf16 %v2370_v53  ;;  %v241_v27 = vld [vmem:[#allocation4 + $0x8] sm:$0xf] }
  0xe8   :  { %v435_v31 = vpop.f32.mrf.mxu0  ;;  %v474_v17 = vpop.f32.mrf.mxu1  ;;  %v3656_v55 = vrot.slane %v237_v3, %v259_v61  ;;  %v249_v56 = vunpack.c.h.bf16 %v2370_v53 }
  0xe9   :  { %3005 = vpow2.f32 %v2427_v2  ;;  %v2428_v19 = vmul.f32 -1.442695, %v710_v22  ;;  %4725 = vst [vmem:[#allocation22_spill] sm:$0xff] %v3650_v32  ;;  %v3652_v31 = vrot.slane %v237_v3, %v255_v58 }
  0xea   :  { %v2636_v24 = vpop.f32.mrf.mxu1 }
  0xeb   :  { %3007 = vpow2.f32 %v2428_v19  ;;  %4726 = vst [vmem:[#allocation23_spill] sm:$0xff] %v3652_v31  ;;  %v472_v19 = vadd.f32 %v471_v20, %v3650_v32 }
  0xf6   :  { %v3006_v63 = vpop.eup %3005 }
  0xf7   :  { %v707_v60 = vadd.f32 1.0, %v3006_v63 }
  0xf8   :  { %v3008_v2 = vpop.eup %3007 }
  0xf9   :  { %3009 = vrcp.f32 %v707_v60  ;;  %v714_v17 = vadd.f32 1.0, %v3008_v2  ;;  %v244_v60 = vunpack.c.l.bf16 %v241_v27 }
  0xfb   :  { %3011 = vrcp.f32 %v714_v17 }
 0x102   :  { %v656_v22 = vpop.f32.mrf.mxu0 }
 0x103   :  { %v657_v24 = vadd.f32 %v656_v22, %v3652_v31 }
 0x104   :  { %v658_v57 = vpop.f32.mrf.mxu0  ;;  %v697_v2 = vpop.f32.mrf.mxu1 }
 0x105   :  { %v724_v28 = vadd.f32 %v657_v24, %v248_v23  ;;  %v659_v52 = vadd.f32 %v658_v57, %v3656_v55 }
 0x106   :  { %v3010_v54 = vpop.eup %3009  ;;  %v660_v59 = vpop.f32.mrf.mxu0 }
 0x107   :  { %v717_v58 = vmul.f32 %v3010_v54, %v472_v19  ;;  %v2429_v63 = vmul.f32 -1.442695, %v724_v28  ;;  %v731_v20 = vadd.f32 %v659_v52, %v249_v56  ;;  %v2655_v22 = vpop.f32.mrf.mxu1 }
 0x108   :  { %v661_v16 = vpop.f32.mrf.mxu0  ;;  %v3012_v23 = vpop.eup %3011 }
 0x109   :  { %v718_v14 = vadd.f32 %v717_v58, %v244_v60  ;;  %3013 = vpow2.f32 %v2429_v63  ;;  %v2430_v61 = vmul.f32 -1.442695, %v731_v20  ;;  %v700_v32 = vpop.f32.mrf.mxu1  ;;  %v720_v24 = vsub.f32 1.0, %v3012_v23 }
 0x10a   :  { %v722_v28 = vmul.f32 0.0, %v3012_v23  ;;  %v3663_v16 = vrot.slane %v237_v3, %v263_v62  ;;  %v4727_v32 = vmov 0.0   ;;  %v4728_v60 = vmov 0  }
 0x10b   :  { %3015 = vtanh.f32 %v718_v14  ;;  %v2656_v31 = vpop.f32.mrf.mxu1 }
 0x10c   :  { %3017 = vpow2.f32 %v2430_v61  ;;  %v247_v31 = vld [vmem:[#allocation5 + $0x5c] sm:$0xf]  ;;  %v698_v3 = vadd.f32 %v697_v2, %v3663_v16 }
 0x10d   :  { %v250_v54 = vunpack.c.l.bf16 %v247_v31  ;;  %v4738_v31 = vld [vmem:[#allocation15_spill] sm:$0xff] }
 0x116   :  { %v3014_v27 = vpop.eup %3013 }
 0x117   :  { %v728_v53 = vadd.f32 1.0, %v3014_v27 }
 0x118   :  { %v3016_v17 = vpop.eup %3015 }
 0x119   :  { %3019 = vrcp.f32 %v728_v53  ;;  %v721_v19 = vmul.f32 %v3016_v17, %v720_v24  ;;  %v3018_v52 = vpop.eup %3017  ;;  %v4731_v53 = vld [vmem:[#allocation16_spill] sm:$0xff]  ;;  %v4732_v24 = vld [vmem:[#allocation10_spill] sm:$0xff]  ;;  %v4733_v17 = vld [vmem:[#allocation11_spill] sm:$0xff] }
 0x11a   :  { %v735_v62 = vadd.f32 1.0, %v3018_v52  ;;  %v4737_v52 = vld [vmem:[#allocation18_spill] sm:$0xff] }
 0x11b   :  { %v3659_v57 = vadd.f32 %v722_v28, %v721_v19  ;;  %v4734_v19 = vld [vmem:[#allocation17_spill] sm:$0xff]  ;;  %v4735_v28 = vld [vmem:[#allocation12_spill] sm:$0xff] }
 0x11c   :  { %3021 = vrcp.f32 %v735_v62  ;;  %v2356_v62 = vld [vmem:[%s4630_s0 + $0x20] sm:$0xf] }
 0x11d   :  { %v745_v14 = vpack.c.bf16 %v3659_v57, %v3659_v57  ;;  %58 = vst [vmem:[#allocation4 + $0x14] sm:$0xf] %v2356_v62 }
 0x11f   :  { %746 = vst [vmem:[%s4636_s6] sm:$0xf] %v745_v14  ;;  %795 = vmatmul.mubr.bf16.vlgmr.msra.gmra.mxu0 %v745_v14  ;;  %2674 = vmatmul.mubr.bf16.vlgmr.msra.gmra.mxu1 %v745_v14  ;;  %v4736_v14 = vld [vmem:[#allocation14_spill] sm:$0xff] }
 0x120   :  { %844 = vmatpush1.bf16.msra.mxu0 %v3409_v25  ;;  %2678 = vmatpush3.bf16.msra.mxu1 %v3466_v35 }
 0x121   :  { %845 = vmatprep.subr.bf16.mxu0 %v3415_v26  ;;  %2679 = vmatprep.subr.bf16.mxu1 %v4727_v32 }
 0x122   :  { %875 = vmatprep.mubr.bf16.mxu0 %v4728_v60  ;;  %2693 = vmatprep.mubr.msk.bf16.mxu1 %vm3219_vm0, %v4727_v32 }
 0x124   :  { %846 = vmatpush1.bf16.msra.mxu0 %v3429_v29  ;;  %2680 = vmatpush3.bf16.msra.mxu1 %v3486_v38 }
 0x125   :  { %847 = vmatprep.subr.bf16.mxu0 %v3436_v30  ;;  %2681 = vmatprep.subr.bf16.mxu1 %v4727_v32 }
 0x126   :  { %v3020_v56 = vpop.eup %3019 }
 0x127   :  { %v738_v59 = vmul.f32 %v3020_v56, %v698_v3  ;;  %v2369_v3 = vld [vmem:[%s4631_s1 + $0x9c] sm:$0xff]  ;;  %v3758_v56 = vld [vmem:[%s4630_s0 + $0x30] sm:$0xff] }
 0x128   :  { %848 = vmatpush1.bf16.msra.mxu0 %v3454_v33  ;;  %2682 = vmatpush3.bf16.msra.mxu1 %v3507_v41  ;;  %4739 = vst [vmem:[#allocation24_spill] sm:$0xff] %v3758_v56 }
 0x129   :  { %v739_v58 = vadd.f32 %v738_v59, %v250_v54  ;;  %849 = vmatprep.subr.bf16.mxu0 %v3460_v34  ;;  %2683 = vmatprep.subr.bf16.mxu1 %v4727_v32  ;;  %v3022_v63 = vpop.eup %3021  ;;  %v2377_v54 = vld [vmem:[%s4631_s1 + $0xa4] sm:$0xf]  ;;  %v4740_v59 = vld [vmem:[#allocation19_spill] sm:$0xff] }
 0x12a   :  { %v741_v20 = vsub.f32 1.0, %v3022_v63  ;;  %v743_v61 = vmul.f32 0.0, %v3022_v63  ;;  %133 = vst [vmem:[#allocation5 + $0x50] sm:$0xf] %v2377_v54  ;;  %v4742_v54 = vld [vmem:[#allocation21_spill] sm:$0xff] }
 0x12b   :  { %3023 = vtanh.f32 %v739_v58  ;;  %v753_v58 = vunpack.c.l.bf16 %v4740_v59 }
 0x12c   :  { %850 = vmatpush1.bf16.msra.mxu0 %v3473_v36  ;;  %2684 = vmatpush3.bf16.msra.mxu1 %v3526_v44 }
 0x12d   :  { %851 = vmatprep.subr.bf16.mxu0 %v3479_v37  ;;  %2685 = vmatprep.subr.bf16.mxu1 %v4727_v32 }
 0x130   :  { %852 = vmatpush1.bf16.msra.mxu0 %v3495_v39  ;;  %2686 = vmatpush3.bf16.msra.mxu1 %v3545_v47 }
 0x131   :  { %853 = vmatprep.subr.bf16.mxu0 %v3501_v40  ;;  %2687 = vmatprep.subr.bf16.mxu1 %v4727_v32 }
 0x134   :  { %854 = vmatpush1.bf16.msra.mxu0 %v3514_v42  ;;  %2688 = vmatpush3.bf16.msra.mxu1 %v3559_v49 }
 0x135   :  { %855 = vmatprep.subr.bf16.mxu0 %v3520_v43  ;;  %2689 = vmatprep.subr.bf16.mxu1 %v4727_v32 }
 0x138   :  { %v3024_v2 = vpop.eup %3023  ;;  %856 = vmatpush1.bf16.msra.mxu0 %v3533_v45  ;;  %2690 = vmatpush3.bf16.msra.mxu1 %v3568_v50 }
 0x139   :  { %857 = vmatprep.subr.bf16.mxu0 %v3539_v46  ;;  %2691 = vmatprep.subr.bf16.mxu1 %v4727_v32  ;;  %v742_v22 = vmul.f32 %v3024_v2, %v741_v20  ;;  %v4741_v2 = vld [vmem:[#allocation20_spill] sm:$0xff] }
 0x13b   :  { %v3700_v23 = vadd.f32 %v743_v61, %v742_v22 }
 0x13c   :  { %858 = vmatpush1.bf16.msra.mxu0 %v3552_v48  ;;  %2692 = vmatpush3.bf16.msra.mxu1 %v3579_v51 }
 0x13d   :  { %v747_v27 = vpack.c.bf16 %v3700_v23, %v3700_v23  ;;  %984 = vmatprep.subr.bf16.mxu0 %v3264_v0  ;;  %2697 = vmatprep.subr.bf16.mxu1 %v4727_v32  ;;  %v4729_v0 = vld [vmem:[#allocation8_spill] sm:$0xff] }
 0x13f   :  { %2431 = vst [vmem:[%s4637_s7 + $0x1c] sm:$0xf] %v747_v27  ;;  %876 = vmatmul.mubr.bf16.vlgmr.msra.gmra.mxu0 %v747_v27  ;;  %2694 = vmatmul.mubr.bf16.vlgmr.msra.gmra.mxu1 %v747_v27 }
 0x140   :  { %985 = vmatpush1.bf16.msra.mxu0 %v3269_v1  ;;  %2698 = vmatpush3.bf16.msra.mxu1 %v3314_v10  ;;  %v4730_v1 = vld [vmem:[#allocation9_spill] sm:$0xff] }
 0x141   :  { %986 = vmatprep.subr.bf16.mxu0 %v3277_v4  ;;  %2699 = vmatprep.subr.bf16.mxu1 %v4727_v32 }
 0x142   :  { %1016 = vmatprep.mubr.bf16.mxu0 %v4728_v60  ;;  %2713 = vmatprep.mubr.msk.bf16.mxu1 %vm3219_vm0, %v4727_v32 }
 0x144   :  { %987 = vmatpush1.bf16.msra.mxu0 %v3285_v5  ;;  %2700 = vmatpush3.bf16.msra.mxu1 %v3326_v12 }
 0x145   :  { %988 = vmatprep.subr.bf16.mxu0 %v3291_v6  ;;  %2701 = vmatprep.subr.bf16.mxu1 %v4727_v32 }
 0x148   :  { %989 = vmatpush1.bf16.msra.mxu0 %v3297_v7  ;;  %2702 = vmatpush3.bf16.msra.mxu1 %v3345_v15 }
 0x149   :  { %990 = vmatprep.subr.bf16.mxu0 %v3303_v8  ;;  %2703 = vmatprep.subr.bf16.mxu1 %v4727_v32 }
 0x14c   :  { %991 = vmatpush1.bf16.msra.mxu0 %v3308_v9  ;;  %2704 = vmatpush3.bf16.msra.mxu1 %v3364_v18 }
 0x14d   :  { %992 = vmatprep.subr.bf16.mxu0 %v3320_v11  ;;  %2705 = vmatprep.subr.bf16.mxu1 %v4727_v32 }
 0x150   :  { %993 = vmatpush1.bf16.msra.mxu0 %v3333_v13  ;;  %2706 = vmatpush3.bf16.msra.mxu1 %v3383_v21 }
 0x151   :  { %994 = vmatprep.subr.bf16.mxu0 %v4729_v0  ;;  %2707 = vmatprep.subr.bf16.mxu1 %v4727_v32 }
 0x154   :  { %995 = vmatpush1.bf16.msra.mxu0 %v4730_v1  ;;  %2708 = vmatpush3.bf16.msra.mxu1 %v4731_v53 }
 0x155   :  { %996 = vmatprep.subr.bf16.mxu0 %v4732_v24  ;;  %2709 = vmatprep.subr.bf16.mxu1 %v4727_v32 }
 0x158   :  { %997 = vmatpush1.bf16.msra.mxu0 %v4733_v17  ;;  %2710 = vmatpush3.bf16.msra.mxu1 %v4734_v19 }
 0x159   :  { %998 = vmatprep.subr.bf16.mxu0 %v4735_v28  ;;  %2711 = vmatprep.subr.bf16.mxu1 %v4727_v32  ;;  %v754_v28 = vunpack.c.h.bf16 %v4740_v59 }
 0x15c   :  { %999 = vmatpush1.bf16.msra.mxu0 %v4736_v14  ;;  %2712 = vmatpush3.bf16.msra.mxu1 %v4737_v52 }
 0x15d   :  { %1065 = vmatprep.subr.bf16.mxu0 %v4738_v31  ;;  %2717 = vmatprep.subr.bf16.mxu1 %v4727_v32 }
 0x1df   :  { %v796_v63 = vpop.f32.mrf.mxu0  ;;  %v837_v20 = vpop.f32.mrf.mxu1 }
 0x1e0   :  { %v797_v22 = vadd.f32 %v796_v63, %v4741_v2  ;;  %v759_v2 = vunpack.c.l.bf16 %v2369_v3 }
 0x1e1   :  { %v798_v61 = vpop.f32.mrf.mxu0  ;;  %v2675_v27 = vpop.f32.mrf.mxu1 }
 0x1e2   :  { %v924_v62 = vadd.f32 %v797_v22, %v753_v58  ;;  %v799_v19 = vadd.f32 %v798_v61, %v4742_v54  ;;  %v752_v27 = vld [vmem:[#allocation4 + $0x14] sm:$0xf]  ;;  %v4743_v22 = vld [vmem:[#allocation23_spill] sm:$0xff] }
 0x1e3   :  { %v800_v31 = vpop.f32.mrf.mxu0  ;;  %v840_v52 = vpop.f32.mrf.mxu1  ;;  %v755_v61 = vunpack.c.l.bf16 %v752_v27 }
 0x1e4   :  { %v2432_v14 = vmul.f32 -1.442695, %v924_v62  ;;  %v931_v56 = vadd.f32 %v799_v19, %v754_v28  ;;  %v760_v28 = vunpack.c.h.bf16 %v2369_v3 }
 0x1e5   :  { %v801_v17 = vpop.f32.mrf.mxu0  ;;  %v2676_v24 = vpop.f32.mrf.mxu1 }
 0x1e6   :  { %3025 = vpow2.f32 %v2432_v14  ;;  %v2433_v53 = vmul.f32 -1.442695, %v931_v56  ;;  %v4744_v17 = vld [vmem:[#allocation22_spill] sm:$0xff] }
 0x1e7   :  { %v838_v24 = vadd.f32 %v837_v20, %v4744_v17 }
 0x1e8   :  { %3027 = vpow2.f32 %v2433_v53 }
 0x1f3   :  { %v3026_v1 = vpop.eup %3025 }
 0x1f4   :  { %v928_v0 = vadd.f32 1.0, %v3026_v1 }
 0x1f5   :  { %v3028_v63 = vpop.eup %3027 }
 0x1f6   :  { %3029 = vrcp.f32 %v928_v0  ;;  %v935_v52 = vadd.f32 1.0, %v3028_v63 }
 0x1f8   :  { %3031 = vrcp.f32 %v935_v52 }
 0x1ff   :  { %v877_v58 = vpop.f32.mrf.mxu0  ;;  %v918_v31 = vpop.f32.mrf.mxu1 }
 0x200   :  { %v878_v62 = vadd.f32 %v877_v58, %v4743_v22 }
 0x201   :  { %v879_v59 = vpop.f32.mrf.mxu0  ;;  %v2695_v21 = vpop.f32.mrf.mxu1 }
 0x202   :  { %v945_v14 = vadd.f32 %v878_v62, %v759_v2  ;;  %v880_v54 = vadd.f32 %v879_v59, %v3656_v55 }
 0x203   :  { %v3030_v19 = vpop.eup %3029  ;;  %v881_v53 = vpop.f32.mrf.mxu0 }
 0x204   :  { %v921_v56 = vpop.f32.mrf.mxu1  ;;  %v938_v1 = vmul.f32 %v3030_v19, %v838_v24  ;;  %v2434_v0 = vmul.f32 -1.442695, %v945_v14  ;;  %v952_v58 = vadd.f32 %v880_v54, %v760_v28 }
 0x205   :  { %v882_v13 = vpop.f32.mrf.mxu0  ;;  %v3032_v27 = vpop.eup %3031 }
 0x206   :  { %v2696_v11 = vpop.f32.mrf.mxu1  ;;  %v939_v63 = vadd.f32 %v938_v1, %v755_v61  ;;  %3033 = vpow2.f32 %v2434_v0  ;;  %v2435_v21 = vmul.f32 -1.442695, %v952_v58  ;;  %v941_v62 = vsub.f32 1.0, %v3032_v27  ;;  %v3817_v58 = vld [vmem:[%s4632_s2 + $0xac] ss:$12 sps:$4 sm:$0xff]  }
 0x207   :  { %v943_v52 = vmul.f32 %v3032_v27, %v3659_v57  ;;  %v758_v57 = vld [vmem:[#allocation5 + $0x50] sm:$0xf]  ;;  %v4756_v27 = vld [vmem:[#allocation18_spill] sm:$0xff] }
 0x208   :  { %3035 = vtanh.f32 %v939_v63  ;;  %v761_v59 = vunpack.c.l.bf16 %v758_v57 }
 0x209   :  { %3037 = vpow2.f32 %v2435_v21  ;;  %v4755_v21 = vld [vmem:[#allocation14_spill] sm:$0xff] }
 0x213   :  { %v3034_v20 = vpop.eup %3033 }
 0x214   :  { %v949_v2 = vadd.f32 1.0, %v3034_v20  ;;  %v4757_v20 = vld [vmem:[#allocation15_spill] sm:$0xff] }
 0x215   :  { %v3036_v3 = vpop.eup %3035 }
 0x216   :  { %3039 = vrcp.f32 %v949_v2  ;;  %v942_v53 = vmul.f32 %v3036_v3, %v941_v62  ;;  %v3038_v13 = vpop.eup %3037  ;;  %v2357_v2 = vld [vmem:[%s4630_s0 + $0x38] sm:$0xf]  ;;  %v2368_v62 = vld [vmem:[%s4631_s1 + $0x84] sm:$0xff]  ;;  %v2376_v3 = vld [vmem:[%s4631_s1 + $0x8c] sm:$0xf] }
 0x217   :  { %v956_v54 = vadd.f32 1.0, %v3038_v13  ;;  %60 = vst [vmem:[#allocation4 + $0x20] sm:$0xf] %v2357_v2  ;;  %131 = vst [vmem:[#allocation5 + $0x44] sm:$0xf] %v2376_v3 }
 0x218   :  { %v3768_v24 = vadd.f32 %v943_v52, %v942_v53  ;;  %v3876_v53 = vld [vmem:[%s4630_s0 + $0x48] sm:$0xff]  ;;  %v4758_v52 = vld [vmem:[#allocation24_spill] sm:$0xff] }
 0x219   :  { %3041 = vrcp.f32 %v956_v54  ;;  %v4759_v54 = vld [vmem:[#allocation20_spill] sm:$0xff] }
 0x21a   :  { %v966_v11 = vpack.c.bf16 %v3768_v24, %v3768_v24 }
 0x21c   :  { %2436 = vst [vmem:[%s4636_s6 + $0x4] sm:$0xf] %v966_v11  ;;  %1017 = vmatmul.mubr.bf16.vlgmr.msra.gmra.mxu0 %v966_v11  ;;  %2714 = vmatmul.mubr.bf16.vlgmr.msra.gmra.mxu1 %v966_v11  ;;  %v975_v11 = vunpack.c.l.bf16 %v4758_v52 }
 0x21d   :  { %1066 = vmatpush1.bf16.msra.mxu0 %v3409_v25  ;;  %2718 = vmatpush3.bf16.msra.mxu1 %v3466_v35  ;;  %v919_v25 = vadd.f32 %v918_v31, %v3663_v16 }
 0x21e   :  { %1067 = vmatprep.subr.bf16.mxu0 %v3415_v26  ;;  %2719 = vmatprep.subr.bf16.mxu1 %v4727_v32 }
 0x21f   :  { %1097 = vmatprep.mubr.bf16.mxu0 %v4728_v60  ;;  %2733 = vmatprep.mubr.msk.bf16.mxu1 %vm3219_vm0, %v4727_v32 }
 0x221   :  { %1068 = vmatpush1.bf16.msra.mxu0 %v3429_v29  ;;  %2720 = vmatpush3.bf16.msra.mxu1 %v3486_v38 }
 0x222   :  { %1069 = vmatprep.subr.bf16.mxu0 %v3436_v30  ;;  %2721 = vmatprep.subr.bf16.mxu1 %v4727_v32 }
 0x223   :  { %v3040_v26 = vpop.eup %3039 }
 0x224   :  { %v959_v61 = vmul.f32 %v3040_v26, %v919_v25 }
 0x225   :  { %1070 = vmatpush1.bf16.msra.mxu0 %v3454_v33  ;;  %2722 = vmatpush3.bf16.msra.mxu1 %v3507_v41 }
 0x226   :  { %v960_v14 = vadd.f32 %v959_v61, %v761_v59  ;;  %1071 = vmatprep.subr.bf16.mxu0 %v3460_v34  ;;  %2723 = vmatprep.subr.bf16.mxu1 %v4727_v32  ;;  %v3042_v31 = vpop.eup %3041 }
 0x227   :  { %v962_v19 = vsub.f32 1.0, %v3042_v31  ;;  %v964_v1 = vmul.f32 %v3042_v31, %v3700_v23  ;;  %v3827_v23 = vld [vmem:[%s4632_s2 + $0xa8] ss:$12 sps:$4 sm:$0xff]  }
 0x228   :  { %3043 = vtanh.f32 %v960_v14 }
 0x229   :  { %1072 = vmatpush1.bf16.msra.mxu0 %v3473_v36  ;;  %2724 = vmatpush3.bf16.msra.mxu1 %v3526_v44 }
 0x22a   :  { %1073 = vmatprep.subr.bf16.mxu0 %v3479_v37  ;;  %2725 = vmatprep.subr.bf16.mxu1 %v4727_v32 }
 0x22d   :  { %1074 = vmatpush1.bf16.msra.mxu0 %v3495_v39  ;;  %2726 = vmatpush3.bf16.msra.mxu1 %v3545_v47 }
 0x22e   :  { %1075 = vmatprep.subr.bf16.mxu0 %v3501_v40  ;;  %2727 = vmatprep.subr.bf16.mxu1 %v4727_v32 }
 0x231   :  { %1076 = vmatpush1.bf16.msra.mxu0 %v3514_v42  ;;  %2728 = vmatpush3.bf16.msra.mxu1 %v3559_v49 }
 0x232   :  { %1077 = vmatprep.subr.bf16.mxu0 %v3520_v43  ;;  %2729 = vmatprep.subr.bf16.mxu1 %v4727_v32 }
 0x235   :  { %v3044_v28 = vpop.eup %3043  ;;  %1078 = vmatpush1.bf16.msra.mxu0 %v3533_v45  ;;  %2730 = vmatpush3.bf16.msra.mxu1 %v3568_v50 }
 0x236   :  { %1079 = vmatprep.subr.bf16.mxu0 %v3539_v46  ;;  %2731 = vmatprep.subr.bf16.mxu1 %v4727_v32  ;;  %v963_v56 = vmul.f32 %v3044_v28, %v962_v19  ;;  %v976_v28 = vunpack.c.h.bf16 %v4758_v52 }
 0x238   :  { %v3808_v0 = vadd.f32 %v964_v1, %v963_v56  ;;  %v4760_v56 = vld [vmem:[#allocation21_spill] sm:$0xff] }
 0x239   :  { %1080 = vmatpush1.bf16.msra.mxu0 %v3552_v48  ;;  %2732 = vmatpush3.bf16.msra.mxu1 %v3579_v51 }
 0x23a   :  { %v969_v63 = vpack.c.bf16 %v3808_v0, %v3808_v0  ;;  %1206 = vmatprep.subr.bf16.mxu0 %v3817_v58  ;;  %2737 = vmatprep.subr.bf16.mxu1 %v4727_v32 }
 0x23c   :  { %2437 = vst [vmem:[%s4637_s7 + $0x18] sm:$0xf] %v969_v63  ;;  %1098 = vmatmul.mubr.bf16.vlgmr.msra.gmra.mxu0 %v969_v63  ;;  %2734 = vmatmul.mubr.bf16.vlgmr.msra.gmra.mxu1 %v969_v63 }
 0x23d   :  { %1207 = vmatpush1.bf16.msra.mxu0 %v3827_v23  ;;  %2738 = vmatpush3.bf16.msra.mxu1 %v3314_v10  ;;  %v4748_v10 = vld [vmem:[#allocation8_spill] sm:$0xff] }
 0x23e   :  { %1208 = vmatprep.subr.bf16.mxu0 %v3277_v4  ;;  %2739 = vmatprep.subr.bf16.mxu1 %v4727_v32  ;;  %v4745_v4 = vld [vmem:[#allocation6_spill] sm:$0xff] }
 0x23f   :  { %1238 = vmatprep.mubr.bf16.mxu0 %v4728_v60  ;;  %2753 = vmatprep.mubr.msk.bf16.mxu1 %vm3219_vm0, %v4727_v32 }
 0x241   :  { %1209 = vmatpush1.bf16.msra.mxu0 %v3285_v5  ;;  %2740 = vmatpush3.bf16.msra.mxu1 %v3326_v12  ;;  %v4746_v5 = vld [vmem:[#allocation7_spill] sm:$0xff]  ;;  %v4751_v12 = vld [vmem:[#allocation10_spill] sm:$0xff] }
 0x242   :  { %1210 = vmatprep.subr.bf16.mxu0 %v3291_v6  ;;  %2741 = vmatprep.subr.bf16.mxu1 %v4727_v32  ;;  %v4747_v6 = vld [vmem:[#allocation13_spill] sm:$0xff] }
 0x245   :  { %1211 = vmatpush1.bf16.msra.mxu0 %v3297_v7  ;;  %2742 = vmatpush3.bf16.msra.mxu1 %v3345_v15  ;;  %v4749_v7 = vld [vmem:[#allocation9_spill] sm:$0xff] }
 0x246   :  { %1212 = vmatprep.subr.bf16.mxu0 %v3303_v8  ;;  %2743 = vmatprep.subr.bf16.mxu1 %v4727_v32  ;;  %v4750_v8 = vld [vmem:[#allocation16_spill] sm:$0xff]  ;;  %v4753_v15 = vld [vmem:[#allocation17_spill] sm:$0xff] }
 0x249   :  { %1213 = vmatpush1.bf16.msra.mxu0 %v3308_v9  ;;  %2744 = vmatpush3.bf16.msra.mxu1 %v3364_v18  ;;  %v4752_v9 = vld [vmem:[#allocation11_spill] sm:$0xff]  ;;  %v4754_v18 = vld [vmem:[#allocation12_spill] sm:$0xff] }
 0x24a   :  { %1214 = vmatprep.subr.bf16.mxu0 %v4745_v4  ;;  %2745 = vmatprep.subr.bf16.mxu1 %v4727_v32 }
 0x24d   :  { %1215 = vmatpush1.bf16.msra.mxu0 %v4746_v5  ;;  %2746 = vmatpush3.bf16.msra.mxu1 %v4747_v6 }
 0x24e   :  { %1216 = vmatprep.subr.bf16.mxu0 %v4748_v10  ;;  %2747 = vmatprep.subr.bf16.mxu1 %v4727_v32 }
 0x251   :  { %1217 = vmatpush1.bf16.msra.mxu0 %v4749_v7  ;;  %2748 = vmatpush3.bf16.msra.mxu1 %v4750_v8 }
 0x252   :  { %1218 = vmatprep.subr.bf16.mxu0 %v4751_v12  ;;  %2749 = vmatprep.subr.bf16.mxu1 %v4727_v32  ;;  %v981_v12 = vunpack.c.l.bf16 %v2368_v62 }
 0x255   :  { %1219 = vmatpush1.bf16.msra.mxu0 %v4752_v9  ;;  %2750 = vmatpush3.bf16.msra.mxu1 %v4753_v15  ;;  %v974_v9 = vld [vmem:[#allocation4 + $0x20] sm:$0xf] }
 0x256   :  { %1220 = vmatprep.subr.bf16.mxu0 %v4754_v18  ;;  %2751 = vmatprep.subr.bf16.mxu1 %v4727_v32  ;;  %v977_v3 = vunpack.c.l.bf16 %v974_v9 }
 0x259   :  { %1221 = vmatpush1.bf16.msra.mxu0 %v4755_v21  ;;  %2752 = vmatpush3.bf16.msra.mxu1 %v4756_v27 }
 0x25a   :  { %1287 = vmatprep.subr.bf16.mxu0 %v4757_v20  ;;  %2757 = vmatprep.subr.bf16.mxu1 %v4727_v32 }
 0x2dc   :  { %v1018_v13 = vpop.f32.mrf.mxu0  ;;  %v1059_v57 = vpop.f32.mrf.mxu1 }
 0x2dd   :  { %v1019_v59 = vadd.f32 %v1018_v13, %v4759_v54  ;;  %v1060_v52 = vadd.f32 %v1059_v57, %v4744_v17 }
 0x2de   :  { %v1020_v25 = vpop.f32.mrf.mxu0  ;;  %v2715_v26 = vpop.f32.mrf.mxu1 }
 0x2df   :  { %v1146_v61 = vadd.f32 %v1019_v59, %v975_v11  ;;  %v1021_v1 = vadd.f32 %v1020_v25, %v4760_v56  ;;  %v982_v59 = vunpack.c.h.bf16 %v2368_v62 }
 0x2e0   :  { %v1022_v14 = vpop.f32.mrf.mxu0  ;;  %v1062_v31 = vpop.f32.mrf.mxu1 }
 0x2e1   :  { %v2438_v19 = vmul.f32 -1.442695, %v1146_v61  ;;  %v1153_v5 = vadd.f32 %v1021_v1, %v976_v28 }
 0x2e2   :  { %v1023_v63 = vpop.f32.mrf.mxu0  ;;  %v2716_v4 = vpop.f32.mrf.mxu1 }
 0x2e3   :  { %3045 = vpow2.f32 %v2438_v19  ;;  %v2439_v6 = vmul.f32 -1.442695, %v1153_v5 }
 0x2e5   :  { %3047 = vpow2.f32 %v2439_v6 }
 0x2f0   :  { %v3046_v10 = vpop.eup %3045 }
 0x2f1   :  { %v1150_v7 = vadd.f32 1.0, %v3046_v10 }
 0x2f2   :  { %v3048_v8 = vpop.eup %3047 }
 0x2f3   :  { %3049 = vrcp.f32 %v1150_v7  ;;  %v1157_v21 = vadd.f32 1.0, %v3048_v8 }
 0x2f5   :  { %3051 = vrcp.f32 %v1157_v21  ;;  %v3896_v21 = vld [vmem:[%s4633_s3 + $0xa8] ss:$12 sps:$4 sm:$0xff]  }
 0x2fc   :  { %v1099_v15 = vpop.f32.mrf.mxu0  ;;  %v1140_v18 = vpop.f32.mrf.mxu1 }
 0x2fd   :  { %v1100_v27 = vadd.f32 %v1099_v15, %v4743_v22 }
 0x2fe   :  { %v1101_v20 = vpop.f32.mrf.mxu0  ;;  %v2735_v2 = vpop.f32.mrf.mxu1 }
 0x2ff   :  { %v1167_v11 = vadd.f32 %v1100_v27, %v981_v12  ;;  %v1102_v31 = vadd.f32 %v1101_v20, %v3656_v55  ;;  %v980_v27 = vld [vmem:[#allocation5 + $0x44] sm:$0xf]  ;;  %v1141_v2 = vadd.f32 %v1140_v18, %v3663_v16  ;;  %v4043_v18 = vld [vmem:[%s4632_s2 + $0x30] ss:$12 sps:$4 sm:$0xff]  }
 0x300   :  { %v3050_v13 = vpop.eup %3049  ;;  %v1103_v25 = vpop.f32.mrf.mxu0  ;;  %4766 = vst [vmem:[#allocation13_spill] sm:$0xff] %v4043_v18 }
 0x301   :  { %v1143_v26 = vpop.f32.mrf.mxu1  ;;  %v1160_v61 = vmul.f32 %v3050_v13, %v1060_v52  ;;  %v2440_v14 = vmul.f32 -1.442695, %v1167_v11  ;;  %v1174_v63 = vadd.f32 %v1102_v31, %v982_v59  ;;  %v4049_v13 = vld [vmem:[%s4632_s2 + $0x38] ss:$12 sps:$4 sm:$0xff]   ;;  %v4055_v59 = vld [vmem:[%s4632_s2 + $0x1c] ss:$12 sps:$4 sm:$0xff]  }
 0x302   :  { %v1104_v19 = vpop.f32.mrf.mxu0  ;;  %v3052_v5 = vpop.eup %3051  ;;  %4767 = vst [vmem:[#allocation8_spill] sm:$0xff] %v4049_v13  ;;  %4768 = vst [vmem:[#allocation9_spill] sm:$0xff] %v4055_v59  ;;  %v4062_v25 = vld [vmem:[%s4632_s2 + $0x18] ss:$12 sps:$4 sm:$0xff]   ;;  %v4068_v26 = vld [vmem:[%s4632_s2 + $0x20] ss:$12 sps:$4 sm:$0xff]  }
 0x303   :  { %v2736_v28 = vpop.f32.mrf.mxu1  ;;  %v1161_v1 = vadd.f32 %v1160_v61, %v977_v3  ;;  %3053 = vpow2.f32 %v2440_v14  ;;  %v2441_v4 = vmul.f32 -1.442695, %v1174_v63  ;;  %v1163_v10 = vsub.f32 1.0, %v3052_v5  ;;  %4769 = vst [vmem:[#allocation16_spill] sm:$0xff] %v4062_v25  ;;  %4770 = vst [vmem:[#allocation10_spill] sm:$0xff] %v4068_v26 }
 0x304   :  { %v1165_v8 = vmul.f32 %v3052_v5, %v3768_v24  ;;  %v3903_v24 = vld [vmem:[%s4633_s3 + $0x94] ss:$12 sps:$4 sm:$0xff]   ;;  %v4074_v61 = vld [vmem:[%s4632_s2 + $0x4] ss:$12 sps:$4 sm:$0xff]   ;;  %v4093_v19 = vld [vmem:[%s4633_s3 + $0xac] ss:$12 sps:$4 sm:$0xff]   ;;  %v1197_v5 = vunpack.c.l.bf16 %v3876_v53 }
 0x305   :  { %3055 = vtanh.f32 %v1161_v1  ;;  %4771 = vst [vmem:[#allocation11_spill] sm:$0xff] %v4074_v61  ;;  %v4081_v14 = vld [vmem:[%s4632_s2] ss:$12 sps:$4 sm:$0xff]   ;;  %v4087_v31 = vld [vmem:[%s4632_s2 + $0x8] ss:$12 sps:$4 sm:$0xff]   ;;  %4774 = vst [vmem:[#allocation14_spill] sm:$0xff] %v4093_v19 }
 0x306   :  { %3057 = vpow2.f32 %v2441_v4  ;;  %4772 = vst [vmem:[#allocation17_spill] sm:$0xff] %v4081_v14  ;;  %4773 = vst [vmem:[#allocation12_spill] sm:$0xff] %v4087_v31  ;;  %v2358_v28 = vld [vmem:[%s4630_s0 + $0x50] sm:$0xf]  ;;  %v2375_v63 = vld [vmem:[%s4631_s1 + $0x74] sm:$0xf] }
 0x307   :  { %62 = vst [vmem:[#allocation4 + $0x2c] sm:$0xf] %v2358_v28  ;;  %v2367_v1 = vld [vmem:[%s4631_s1 + $0x6c] sm:$0xff]  ;;  %129 = vst [vmem:[#allocation5 + $0x38] sm:$0xf] %v2375_v63  ;;  %v4109_v4 = vld [vmem:[%s4630_s0 + $0x60] sm:$0xff] }
 0x310   :  { %v3054_v57 = vpop.eup %3053 }
 0x311   :  { %v1171_v6 = vadd.f32 1.0, %v3054_v57 }
 0x312   :  { %v3056_v62 = vpop.eup %3055 }
 0x313   :  { %3059 = vrcp.f32 %v1171_v6  ;;  %v1164_v7 = vmul.f32 %v3056_v62, %v1163_v10  ;;  %v3058_v15 = vpop.eup %3057 }
 0x314   :  { %v1178_v20 = vadd.f32 1.0, %v3058_v15 }
 0x315   :  { %v3886_v12 = vadd.f32 %v1165_v8, %v1164_v7 }
 0x316   :  { %3061 = vrcp.f32 %v1178_v20  ;;  %v1198_v20 = vunpack.c.h.bf16 %v3876_v53 }
 0x317   :  { %v1188_v9 = vpack.c.bf16 %v3886_v12, %v3886_v12 }
 0x319   :  { %2442 = vst [vmem:[%s4636_s6 + $0x8] sm:$0xf] %v1188_v9  ;;  %1239 = vmatmul.mubr.bf16.vlgmr.msra.gmra.mxu0 %v1188_v9  ;;  %2754 = vmatmul.mubr.bf16.vlgmr.msra.gmra.mxu1 %v1188_v9 }
 0x31a   :  { %1288 = vmatpush1.bf16.msra.mxu0 %v3896_v21  ;;  %2758 = vmatpush3.bf16.msra.mxu1 %v3466_v35  ;;  %v983_v35 = vunpack.c.l.bf16 %v980_v27 }
 0x31b   :  { %1289 = vmatprep.subr.bf16.mxu0 %v3903_v24  ;;  %2759 = vmatprep.subr.bf16.mxu1 %v4727_v32 }
 0x31c   :  { %1319 = vmatprep.mubr.bf16.mxu0 %v4728_v60  ;;  %2773 = vmatprep.mubr.msk.bf16.mxu1 %vm3219_vm0, %v4727_v32 }
 0x31e   :  { %1290 = vmatpush1.bf16.msra.mxu0 %v3429_v29  ;;  %2760 = vmatpush3.bf16.msra.mxu1 %v3486_v38 }
 0x31f   :  { %1291 = vmatprep.subr.bf16.mxu0 %v3436_v30  ;;  %2761 = vmatprep.subr.bf16.mxu1 %v4727_v32 }
 0x320   :  { %v3060_v3 = vpop.eup %3059 }
 0x321   :  { %v1181_v52 = vmul.f32 %v3060_v3, %v1141_v2 }
 0x322   :  { %1292 = vmatpush1.bf16.msra.mxu0 %v3454_v33  ;;  %2762 = vmatpush3.bf16.msra.mxu1 %v3507_v41  ;;  %v3967_v41 = vld [vmem:[%s4632_s2 + $0x90] ss:$12 sps:$4 sm:$0xff]  }
 0x323   :  { %v1182_v11 = vadd.f32 %v1181_v52, %v983_v35  ;;  %1293 = vmatprep.subr.bf16.mxu0 %v3460_v34  ;;  %2763 = vmatprep.subr.bf16.mxu1 %v4727_v32  ;;  %v3062_v29 = vpop.eup %3061 }
 0x324   :  { %v1184_v30 = vsub.f32 1.0, %v3062_v29 }
 0x325   :  { %3063 = vtanh.f32 %v1182_v11 }
 0x326   :  { %1294 = vmatpush1.bf16.msra.mxu0 %v3473_v36  ;;  %2764 = vmatpush3.bf16.msra.mxu1 %v3526_v44  ;;  %v1186_v36 = vmul.f32 %v3062_v29, %v3808_v0  ;;  %v3986_v44 = vld [vmem:[%s4632_s2 + $0x78] ss:$12 sps:$4 sm:$0xff]   ;;  %v4036_v0 = vld [vmem:[%s4632_s2 + $0x34] ss:$12 sps:$4 sm:$0xff]  }
 0x327   :  { %1295 = vmatprep.subr.bf16.mxu0 %v3479_v37  ;;  %2765 = vmatprep.subr.bf16.mxu1 %v4727_v32  ;;  %4765 = vst [vmem:[#allocation7_spill] sm:$0xff] %v4036_v0 }
 0x32a   :  { %1296 = vmatpush1.bf16.msra.mxu0 %v3495_v39  ;;  %2766 = vmatpush3.bf16.msra.mxu1 %v3545_v47  ;;  %v3951_v39 = vld [vmem:[%s4632_s2 + $0xb0] ss:$12 sps:$4 sm:$0xff]   ;;  %v4005_v47 = vld [vmem:[%s4632_s2 + $0x60] ss:$12 sps:$4 sm:$0xff]  }
 0x32b   :  { %1297 = vmatprep.subr.bf16.mxu0 %v3501_v40  ;;  %2767 = vmatprep.subr.bf16.mxu1 %v4727_v32  ;;  %v3957_v40 = vld [vmem:[%s4632_s2 + $0x94] ss:$12 sps:$4 sm:$0xff]  }
 0x32e   :  { %1298 = vmatpush1.bf16.msra.mxu0 %v3514_v42  ;;  %2768 = vmatpush3.bf16.msra.mxu1 %v3559_v49  ;;  %v3973_v42 = vld [vmem:[%s4632_s2 + $0x98] ss:$12 sps:$4 sm:$0xff]  }
 0x32f   :  { %1299 = vmatprep.subr.bf16.mxu0 %v3520_v43  ;;  %2769 = vmatprep.subr.bf16.mxu1 %v4727_v32  ;;  %v3979_v43 = vld [vmem:[%s4632_s2 + $0x7c] ss:$12 sps:$4 sm:$0xff]   ;;  %v4017_v49 = vld [vmem:[%s4632_s2 + $0x4c] ss:$12 sps:$4 sm:$0xff]  }
 0x330   :  { %4762 = vst [vmem:[#allocation23_spill] sm:$0xff] %v4017_v49 }
 0x332   :  { %v3064_v33 = vpop.eup %3063  ;;  %1300 = vmatpush1.bf16.msra.mxu0 %v3533_v45  ;;  %2770 = vmatpush3.bf16.msra.mxu1 %v3568_v50  ;;  %v3992_v45 = vld [vmem:[%s4632_s2 + $0x80] ss:$12 sps:$4 sm:$0xff]   ;;  %v4024_v50 = vld [vmem:[%s4632_s2 + $0x48] ss:$12 sps:$4 sm:$0xff]  }
 0x333   :  { %1301 = vmatprep.subr.bf16.mxu0 %v3539_v46  ;;  %2771 = vmatprep.subr.bf16.mxu1 %v4727_v32  ;;  %v1185_v34 = vmul.f32 %v3064_v33, %v1184_v30  ;;  %v3998_v46 = vld [vmem:[%s4632_s2 + $0x64] ss:$12 sps:$4 sm:$0xff]   ;;  %4763 = vst [vmem:[#allocation22_spill] sm:$0xff] %v4024_v50 }
 0x335   :  { %v3936_v37 = vadd.f32 %v1186_v36, %v1185_v34  ;;  %v1203_v34 = vunpack.c.l.bf16 %v2367_v1  ;;  %v1196_v36 = vld [vmem:[#allocation4 + $0x2c] sm:$0xf] }
 0x336   :  { %1302 = vmatpush1.bf16.msra.mxu0 %v3552_v48  ;;  %2772 = vmatpush3.bf16.msra.mxu1 %v3579_v51  ;;  %v4011_v48 = vld [vmem:[%s4632_s2 + $0x68] ss:$12 sps:$4 sm:$0xff]   ;;  %v4030_v51 = vld [vmem:[%s4632_s2 + $0x50] ss:$12 sps:$4 sm:$0xff]  }
 0x337   :  { %v1191_v38 = vpack.c.bf16 %v3936_v37, %v3936_v37  ;;  %1428 = vmatprep.subr.bf16.mxu0 %v3817_v58  ;;  %2777 = vmatprep.subr.bf16.mxu1 %v4727_v32  ;;  %4761 = vst [vmem:[#allocation19_spill] sm:$0xff] %v4011_v48  ;;  %4764 = vst [vmem:[#allocation6_spill] sm:$0xff] %v4030_v51 }
 0x339   :  { %2443 = vst [vmem:[%s4637_s7 + $0x14] sm:$0xf] %v1191_v38  ;;  %1320 = vmatmul.mubr.bf16.vlgmr.msra.gmra.mxu0 %v1191_v38  ;;  %2774 = vmatmul.mubr.bf16.vlgmr.msra.gmra.mxu1 %v1191_v38 }
 0x33a   :  { %1429 = vmatpush1.bf16.msra.mxu0 %v3827_v23  ;;  %2778 = vmatpush3.bf16.msra.mxu1 %v3951_v39 }
 0x33b   :  { %1430 = vmatprep.subr.bf16.mxu0 %v3957_v40  ;;  %2779 = vmatprep.subr.bf16.mxu1 %v4727_v32 }
 0x33c   :  { %1460 = vmatprep.mubr.bf16.mxu0 %v4728_v60  ;;  %2793 = vmatprep.mubr.msk.bf16.mxu1 %vm3219_vm0, %v4727_v32 }
 0x33e   :  { %1431 = vmatpush1.bf16.msra.mxu0 %v3967_v41  ;;  %2780 = vmatpush3.bf16.msra.mxu1 %v3973_v42 }
 0x33f   :  { %1432 = vmatprep.subr.bf16.mxu0 %v3979_v43  ;;  %2781 = vmatprep.subr.bf16.mxu1 %v4727_v32 }
 0x342   :  { %1433 = vmatpush1.bf16.msra.mxu0 %v3986_v44  ;;  %2782 = vmatpush3.bf16.msra.mxu1 %v3992_v45 }
 0x343   :  { %1434 = vmatprep.subr.bf16.mxu0 %v3998_v46  ;;  %2783 = vmatprep.subr.bf16.mxu1 %v4727_v32 }
 0x346   :  { %1435 = vmatpush1.bf16.msra.mxu0 %v4005_v47  ;;  %2784 = vmatpush3.bf16.msra.mxu1 %v4011_v48 }
 0x347   :  { %1436 = vmatprep.subr.bf16.mxu0 %v4017_v49  ;;  %2785 = vmatprep.subr.bf16.mxu1 %v4727_v32 }
 0x34a   :  { %1437 = vmatpush1.bf16.msra.mxu0 %v4024_v50  ;;  %2786 = vmatpush3.bf16.msra.mxu1 %v4030_v51 }
 0x34b   :  { %1438 = vmatprep.subr.bf16.mxu0 %v4036_v0  ;;  %2787 = vmatprep.subr.bf16.mxu1 %v4727_v32 }
 0x34e   :  { %1439 = vmatpush1.bf16.msra.mxu0 %v4043_v18  ;;  %2788 = vmatpush3.bf16.msra.mxu1 %v4049_v13 }
 0x34f   :  { %1440 = vmatprep.subr.bf16.mxu0 %v4055_v59  ;;  %2789 = vmatprep.subr.bf16.mxu1 %v4727_v32 }
 0x352   :  { %1441 = vmatpush1.bf16.msra.mxu0 %v4062_v25  ;;  %2790 = vmatpush3.bf16.msra.mxu1 %v4068_v26 }
 0x353   :  { %1442 = vmatprep.subr.bf16.mxu0 %v4074_v61  ;;  %2791 = vmatprep.subr.bf16.mxu1 %v4727_v32 }
 0x356   :  { %1443 = vmatpush1.bf16.msra.mxu0 %v4081_v14  ;;  %2792 = vmatpush3.bf16.msra.mxu1 %v4087_v31 }
 0x357   :  { %1509 = vmatprep.subr.bf16.mxu0 %v4093_v19  ;;  %2797 = vmatprep.subr.bf16.mxu1 %v4727_v32 }
 0x3d9   :  { %v1240_v57 = vpop.f32.mrf.mxu0  ;;  %v1281_v6 = vpop.f32.mrf.mxu1 }
 0x3da   :  { %v1241_v10 = vadd.f32 %v1240_v57, %v4759_v54 }
 0x3db   :  { %v1242_v62 = vpop.f32.mrf.mxu0  ;;  %v2755_v7 = vpop.f32.mrf.mxu1 }
 0x3dc   :  { %v1368_v8 = vadd.f32 %v1241_v10, %v1197_v5  ;;  %v1243_v35 = vadd.f32 %v1242_v62, %v4760_v56  ;;  %v1199_v10 = vunpack.c.l.bf16 %v1196_v36  ;;  %v1282_v62 = vadd.f32 %v1281_v6, %v4744_v17 }
 0x3dd   :  { %v1244_v9 = vpop.f32.mrf.mxu0  ;;  %v1284_v15 = vpop.f32.mrf.mxu1 }
 0x3de   :  { %v2444_v27 = vmul.f32 -1.442695, %v1368_v8  ;;  %v1375_v52 = vadd.f32 %v1243_v35, %v1198_v20  ;;  %v1204_v9 = vunpack.c.h.bf16 %v2367_v1 }
 0x3df   :  { %v1245_v2 = vpop.f32.mrf.mxu0  ;;  %v2756_v3 = vpop.f32.mrf.mxu1 }
 0x3e0   :  { %3065 = vpow2.f32 %v2444_v27  ;;  %v2445_v11 = vmul.f32 -1.442695, %v1375_v52 }
 0x3e2   :  { %3067 = vpow2.f32 %v2445_v11 }
 0x3ed   :  { %v3066_v29 = vpop.eup %3065 }
 0x3ee   :  { %v1372_v30 = vadd.f32 1.0, %v3066_v29 }
 0x3ef   :  { %v3068_v33 = vpop.eup %3067 }
 0x3f0   :  { %3069 = vrcp.f32 %v1372_v30  ;;  %v1379_v63 = vadd.f32 1.0, %v3068_v33 }
 0x3f2   :  { %3071 = vrcp.f32 %v1379_v63 }
 0x3f9   :  { %v1321_v38 = vpop.f32.mrf.mxu0  ;;  %v1362_v28 = vpop.f32.mrf.mxu1 }
 0x3fa   :  { %v1322_v5 = vadd.f32 %v1321_v38, %v4743_v22 }
 0x3fb   :  { %v1323_v53 = vpop.f32.mrf.mxu0  ;;  %v2775_v57 = vpop.f32.mrf.mxu1 }
 0x3fc   :  { %v1389_v7 = vadd.f32 %v1322_v5, %v1203_v34  ;;  %v1324_v2 = vadd.f32 %v1323_v53, %v3656_v55 }
 0x3fd   :  { %v3070_v8 = vpop.eup %3069  ;;  %v1325_v15 = vpop.f32.mrf.mxu0 }
 0x3fe   :  { %v1365_v27 = vpop.f32.mrf.mxu1  ;;  %v1382_v20 = vmul.f32 %v3070_v8, %v1282_v62  ;;  %v2446_v35 = vmul.f32 -1.442695, %v1389_v7  ;;  %v1396_v29 = vadd.f32 %v1324_v2, %v1204_v9  ;;  %v4141_v7 = vld [vmem:[%s4633_s3 + $0x90] ss:$12 sps:$4 sm:$0xff]   ;;  %v4147_v8 = vld [vmem:[%s4633_s3 + $0x98] ss:$12 sps:$4 sm:$0xff]   ;;  %v1363_v15 = vadd.f32 %v1362_v28, %v3663_v16 }
 0x3ff   :  { %v1326_v3 = vpop.f32.mrf.mxu0  ;;  %v3072_v33 = vpop.eup %3071  ;;  %v4154_v27 = vld [vmem:[%s4633_s3 + $0x7c] ss:$12 sps:$4 sm:$0xff]   ;;  %v4161_v2 = vld [vmem:[%s4633_s3 + $0x78] ss:$12 sps:$4 sm:$0xff]   ;;  %v4167_v28 = vld [vmem:[%s4633_s3 + $0x80] ss:$12 sps:$4 sm:$0xff]  }
 0x400   :  { %v2776_v52 = vpop.f32.mrf.mxu1  ;;  %v1383_v11 = vadd.f32 %v1382_v20, %v1199_v10  ;;  %3073 = vpow2.f32 %v2446_v35  ;;  %v2447_v30 = vmul.f32 -1.442695, %v1396_v29  ;;  %v1385_v36 = vsub.f32 1.0, %v3072_v33  ;;  %v4130_v10 = vld [vmem:[%s4633_s3 + $0xb0] ss:$12 sps:$4 sm:$0xff]  }
 0x401   :  { %v1387_v63 = vmul.f32 %v3072_v33, %v3886_v12  ;;  %v1202_v12 = vld [vmem:[#allocation5 + $0x38] sm:$0xf]  ;;  %v4173_v52 = vld [vmem:[%s4633_s3 + $0x64] ss:$12 sps:$4 sm:$0xff]   ;;  %v4186_v29 = vld [vmem:[%s4633_s3 + $0x68] ss:$12 sps:$4 sm:$0xff]  }
 0x402   :  { %3075 = vtanh.f32 %v1383_v11  ;;  %v1205_v9 = vunpack.c.l.bf16 %v1202_v12  ;;  %v4180_v11 = vld [vmem:[%s4633_s3 + $0x60] ss:$12 sps:$4 sm:$0xff]   ;;  %v4199_v33 = vld [vmem:[%s4633_s3 + $0x48] ss:$12 sps:$4 sm:$0xff]   ;;  %v4237_v12 = vld [vmem:[%s4633_s3 + $0x18] ss:$12 sps:$4 sm:$0xff]  }
 0x403   :  { %3077 = vpow2.f32 %v2447_v30  ;;  %v4192_v30 = vld [vmem:[%s4633_s3 + $0x4c] ss:$12 sps:$4 sm:$0xff]  }
 0x40d   :  { %v3074_v6 = vpop.eup %3073 }
 0x40e   :  { %v1393_v34 = vadd.f32 1.0, %v3074_v6  ;;  %v4205_v6 = vld [vmem:[%s4633_s3 + $0x50] ss:$12 sps:$4 sm:$0xff]  }
 0x40f   :  { %v3076_v1 = vpop.eup %3075 }
 0x410   :  { %3079 = vrcp.f32 %v1393_v34  ;;  %v1386_v38 = vmul.f32 %v3076_v1, %v1385_v36  ;;  %v3078_v57 = vpop.eup %3077  ;;  %v4211_v34 = vld [vmem:[%s4633_s3 + $0x34] ss:$12 sps:$4 sm:$0xff]   ;;  %v4218_v1 = vld [vmem:[%s4633_s3 + $0x30] ss:$12 sps:$4 sm:$0xff]  }
 0x411   :  { %v1400_v62 = vadd.f32 1.0, %v3078_v57 }
 0x412   :  { %v4119_v5 = vadd.f32 %v1387_v63, %v1386_v38  ;;  %v4224_v38 = vld [vmem:[%s4633_s3 + $0x38] ss:$12 sps:$4 sm:$0xff]   ;;  %v4230_v63 = vld [vmem:[%s4633_s3 + $0x1c] ss:$12 sps:$4 sm:$0xff]  }
 0x413   :  { %3081 = vrcp.f32 %v1400_v62  ;;  %v4243_v62 = vld [vmem:[%s4633_s3 + $0x20] ss:$12 sps:$4 sm:$0xff]  }
 0x414   :  { %v1410_v53 = vpack.c.bf16 %v4119_v5, %v4119_v5  ;;  %4775 = vst [vmem:[#allocation18_spill] sm:$0xff] %v4243_v62 }
 0x416   :  { %2448 = vst [vmem:[%s4636_s6 + $0xc] sm:$0xf] %v1410_v53  ;;  %1461 = vmatmul.mubr.bf16.vlgmr.msra.gmra.mxu0 %v1410_v53  ;;  %2794 = vmatmul.mubr.bf16.vlgmr.msra.gmra.mxu1 %v1410_v53 }
 0x417   :  { %1510 = vmatpush1.bf16.msra.mxu0 %v3896_v21  ;;  %2798 = vmatpush3.bf16.msra.mxu1 %v4130_v10 }
 0x418   :  { %1511 = vmatprep.subr.bf16.mxu0 %v3903_v24  ;;  %2799 = vmatprep.subr.bf16.mxu1 %v4727_v32 }
 0x419   :  { %1541 = vmatprep.mubr.bf16.mxu0 %v4728_v60  ;;  %2813 = vmatprep.mubr.msk.bf16.mxu1 %vm3219_vm0, %v4727_v32 }
 0x41b   :  { %1512 = vmatpush1.bf16.msra.mxu0 %v4141_v7  ;;  %2800 = vmatpush3.bf16.msra.mxu1 %v4147_v8 }
 0x41c   :  { %1513 = vmatprep.subr.bf16.mxu0 %v4154_v27  ;;  %2801 = vmatprep.subr.bf16.mxu1 %v4727_v32 }
 0x41d   :  { %v3080_v20 = vpop.eup %3079 }
 0x41e   :  { %v1403_v35 = vmul.f32 %v3080_v20, %v1363_v15 }
 0x41f   :  { %1514 = vmatpush1.bf16.msra.mxu0 %v4161_v2  ;;  %2802 = vmatpush3.bf16.msra.mxu1 %v4167_v28 }
 0x420   :  { %v1404_v3 = vadd.f32 %v1403_v35, %v1205_v9  ;;  %1515 = vmatprep.subr.bf16.mxu0 %v4173_v52  ;;  %2803 = vmatprep.subr.bf16.mxu1 %v4727_v32  ;;  %v3082_v36 = vpop.eup %3081  ;;  %v4249_v9 = vld [vmem:[%s4633_s3 + $0x4] ss:$12 sps:$4 sm:$0xff]  }
 0x421   :  { %v1406_v53 = vsub.f32 1.0, %v3082_v36  ;;  %v1408_v20 = vmul.f32 %v3082_v36, %v3936_v37  ;;  %v2359_v37 = vld [vmem:[%s4630_s0 + $0x68] sm:$0xf]  ;;  %v2366_v36 = vld [vmem:[%s4631_s1 + $0x54] sm:$0xff] }
 0x422   :  { %3083 = vtanh.f32 %v1404_v3  ;;  %v4259_v3 = vld [vmem:[%s4633_s3] ss:$12 sps:$4 sm:$0xff]   ;;  %64 = vst [vmem:[#allocation4 + $0x38] sm:$0xf] %v2359_v37 }
 0x423   :  { %1516 = vmatpush1.bf16.msra.mxu0 %v4180_v11  ;;  %2804 = vmatpush3.bf16.msra.mxu1 %v4186_v29 }
 0x424   :  { %1517 = vmatprep.subr.bf16.mxu0 %v4192_v30  ;;  %2805 = vmatprep.subr.bf16.mxu1 %v4727_v32 }
 0x427   :  { %1518 = vmatpush1.bf16.msra.mxu0 %v4199_v33  ;;  %2806 = vmatpush3.bf16.msra.mxu1 %v4205_v6 }
 0x428   :  { %1519 = vmatprep.subr.bf16.mxu0 %v4211_v34  ;;  %2807 = vmatprep.subr.bf16.mxu1 %v4727_v32 }
 0x42b   :  { %1520 = vmatpush1.bf16.msra.mxu0 %v4218_v1  ;;  %2808 = vmatpush3.bf16.msra.mxu1 %v4224_v38 }
 0x42c   :  { %1521 = vmatprep.subr.bf16.mxu0 %v4230_v63  ;;  %2809 = vmatprep.subr.bf16.mxu1 %v4727_v32 }
 0x42f   :  { %v3084_v57 = vpop.eup %3083  ;;  %1522 = vmatpush1.bf16.msra.mxu0 %v4237_v12  ;;  %2810 = vmatpush3.bf16.msra.mxu1 %v4243_v62  ;;  %v4265_v62 = vld [vmem:[%s4633_s3 + $0x8] ss:$12 sps:$4 sm:$0xff]  }
 0x430   :  { %1523 = vmatprep.subr.bf16.mxu0 %v4249_v9  ;;  %2811 = vmatprep.subr.bf16.mxu1 %v4727_v32  ;;  %v1407_v15 = vmul.f32 %v3084_v57, %v1406_v53  ;;  %v2374_v57 = vld [vmem:[%s4631_s1 + $0x5c] sm:$0xf] }
 0x431   :  { %127 = vst [vmem:[#allocation5 + $0x2c] sm:$0xf] %v2374_v57 }
 0x432   :  { %v4254_v35 = vadd.f32 %v1408_v20, %v1407_v15  ;;  %v4322_v15 = vld [vmem:[%s4630_s0 + $0x78] sm:$0xff]  ;;  %v1419_v20 = vunpack.c.l.bf16 %v4109_v4 }
 0x433   :  { %1524 = vmatpush1.bf16.msra.mxu0 %v4259_v3  ;;  %2812 = vmatpush3.bf16.msra.mxu1 %v4265_v62  ;;  %4776 = vst [vmem:[#allocation15_spill] sm:$0xff] %v4322_v15 }
 0x434   :  { %v1413_v53 = vpack.c.bf16 %v4254_v35, %v4254_v35  ;;  %1650 = vmatprep.subr.bf16.mxu0 %v3817_v58  ;;  %2817 = vmatprep.subr.bf16.mxu1 %v4727_v32 }
 0x436   :  { %2449 = vst [vmem:[%s4637_s7 + $0x10] sm:$0xf] %v1413_v53  ;;  %1542 = vmatmul.mubr.bf16.vlgmr.msra.gmra.mxu0 %v1413_v53  ;;  %2814 = vmatmul.mubr.bf16.vlgmr.msra.gmra.mxu1 %v1413_v53 }
 0x437   :  { %1651 = vmatpush1.bf16.msra.mxu0 %v3827_v23  ;;  %2818 = vmatpush3.bf16.msra.mxu1 %v3951_v39 }
 0x438   :  { %1652 = vmatprep.subr.bf16.mxu0 %v3957_v40  ;;  %2819 = vmatprep.subr.bf16.mxu1 %v4727_v32 }
 0x439   :  { %1682 = vmatprep.mubr.bf16.mxu0 %v4728_v60  ;;  %2833 = vmatprep.mubr.msk.bf16.mxu1 %vm3219_vm0, %v4727_v32 }
 0x43b   :  { %1653 = vmatpush1.bf16.msra.mxu0 %v3967_v41  ;;  %2820 = vmatpush3.bf16.msra.mxu1 %v3973_v42 }
 0x43c   :  { %1654 = vmatprep.subr.bf16.mxu0 %v3979_v43  ;;  %2821 = vmatprep.subr.bf16.mxu1 %v4727_v32 }
 0x43f   :  { %1655 = vmatpush1.bf16.msra.mxu0 %v3986_v44  ;;  %2822 = vmatpush3.bf16.msra.mxu1 %v3992_v45 }
 0x440   :  { %1656 = vmatprep.subr.bf16.mxu0 %v3998_v46  ;;  %2823 = vmatprep.subr.bf16.mxu1 %v4727_v32 }
 0x443   :  { %1657 = vmatpush1.bf16.msra.mxu0 %v4005_v47  ;;  %2824 = vmatpush3.bf16.msra.mxu1 %v4011_v48 }
 0x444   :  { %1658 = vmatprep.subr.bf16.mxu0 %v4017_v49  ;;  %2825 = vmatprep.subr.bf16.mxu1 %v4727_v32 }
 0x447   :  { %1659 = vmatpush1.bf16.msra.mxu0 %v4024_v50  ;;  %2826 = vmatpush3.bf16.msra.mxu1 %v4030_v51 }
 0x448   :  { %1660 = vmatprep.subr.bf16.mxu0 %v4036_v0  ;;  %2827 = vmatprep.subr.bf16.mxu1 %v4727_v32 }
 0x44b   :  { %1661 = vmatpush1.bf16.msra.mxu0 %v4043_v18  ;;  %2828 = vmatpush3.bf16.msra.mxu1 %v4049_v13  ;;  %v1420_v13 = vunpack.c.h.bf16 %v4109_v4 }
 0x44c   :  { %1662 = vmatprep.subr.bf16.mxu0 %v4055_v59  ;;  %2829 = vmatprep.subr.bf16.mxu1 %v4727_v32 }
 0x44f   :  { %1663 = vmatpush1.bf16.msra.mxu0 %v4062_v25  ;;  %2830 = vmatpush3.bf16.msra.mxu1 %v4068_v26 }
 0x450   :  { %1664 = vmatprep.subr.bf16.mxu0 %v4074_v61  ;;  %2831 = vmatprep.subr.bf16.mxu1 %v4727_v32 }
 0x453   :  { %1665 = vmatpush1.bf16.msra.mxu0 %v4081_v14  ;;  %2832 = vmatpush3.bf16.msra.mxu1 %v4087_v31 }
 0x454   :  { %1731 = vmatprep.subr.bf16.mxu0 %v4093_v19  ;;  %2837 = vmatprep.subr.bf16.mxu1 %v4727_v32 }
 0x4d6   :  { %v1462_v53 = vpop.f32.mrf.mxu0  ;;  %v1503_v19 = vpop.f32.mrf.mxu1 }
 0x4d7   :  { %v1463_v37 = vadd.f32 %v1462_v53, %v4759_v54  ;;  %v1425_v54 = vunpack.c.l.bf16 %v2366_v36 }
 0x4d8   :  { %v1464_v31 = vpop.f32.mrf.mxu0  ;;  %v2795_v14 = vpop.f32.mrf.mxu1 }
 0x4d9   :  { %v1590_v61 = vadd.f32 %v1463_v37, %v1419_v20  ;;  %v1465_v57 = vadd.f32 %v1464_v31, %v4760_v56  ;;  %v1418_v14 = vld [vmem:[#allocation4 + $0x38] sm:$0xf] }
 0x4da   :  { %v1466_v26 = vpop.f32.mrf.mxu0  ;;  %v1506_v25 = vpop.f32.mrf.mxu1  ;;  %v1421_v31 = vunpack.c.l.bf16 %v1418_v14 }
 0x4db   :  { %v2450_v59 = vmul.f32 -1.442695, %v1590_v61  ;;  %v1597_v15 = vadd.f32 %v1465_v57, %v1420_v13 }
 0x4dc   :  { %v1467_v18 = vpop.f32.mrf.mxu0  ;;  %v2796_v0 = vpop.f32.mrf.mxu1 }
 0x4dd   :  { %3085 = vpow2.f32 %v2450_v59  ;;  %v2451_v51 = vmul.f32 -1.442695, %v1597_v15  ;;  %v1504_v0 = vadd.f32 %v1503_v19, %v4744_v17  ;;  %v1426_v59 = vunpack.c.h.bf16 %v2366_v36 }
 0x4df   :  { %3087 = vpow2.f32 %v2451_v51 }
 0x4ea   :  { %v3086_v50 = vpop.eup %3085 }
 0x4eb   :  { %v1594_v49 = vadd.f32 1.0, %v3086_v50 }
 0x4ec   :  { %v3088_v53 = vpop.eup %3087 }
 0x4ed   :  { %3089 = vrcp.f32 %v1594_v49  ;;  %v1601_v25 = vadd.f32 1.0, %v3088_v53 }
 0x4ef   :  { %3091 = vrcp.f32 %v1601_v25 }
 0x4f6   :  { %v1543_v20 = vpop.f32.mrf.mxu0  ;;  %v1584_v26 = vpop.f32.mrf.mxu1 }
 0x4f7   :  { %v1544_v61 = vadd.f32 %v1543_v20, %v4743_v22 }
 0x4f8   :  { %v1545_v4 = vpop.f32.mrf.mxu0  ;;  %v2815_v37 = vpop.f32.mrf.mxu1 }
 0x4f9   :  { %v1611_v18 = vadd.f32 %v1544_v61, %v1425_v54  ;;  %v1546_v57 = vadd.f32 %v1545_v4, %v3656_v55 }
 0x4fa   :  { %v3090_v13 = vpop.eup %3089  ;;  %v1547_v51 = vpop.f32.mrf.mxu0 }
 0x4fb   :  { %v1587_v15 = vpop.f32.mrf.mxu1  ;;  %v1604_v50 = vmul.f32 %v3090_v13, %v1504_v0  ;;  %v2452_v49 = vmul.f32 -1.442695, %v1611_v18  ;;  %v1618_v20 = vadd.f32 %v1546_v57, %v1426_v59  ;;  %v1585_v18 = vadd.f32 %v1584_v26, %v3663_v16  ;;  %v4777_v57 = vld [vmem:[#allocation18_spill] sm:$0xff] }
 0x4fc   :  { %v1548_v56 = vpop.f32.mrf.mxu0  ;;  %v3092_v14 = vpop.eup %3091 }
 0x4fd   :  { %v2816_v48 = vpop.f32.mrf.mxu1  ;;  %v1605_v53 = vadd.f32 %v1604_v50, %v1421_v31  ;;  %3093 = vpow2.f32 %v2452_v49  ;;  %v2453_v37 = vmul.f32 -1.442695, %v1618_v20  ;;  %v1607_v61 = vsub.f32 1.0, %v3092_v14 }
 0x4fe   :  { %v1609_v25 = vmul.f32 %v3092_v14, %v4119_v5  ;;  %v1424_v5 = vld [vmem:[#allocation5 + $0x2c] sm:$0xf] }
 0x4ff   :  { %3095 = vtanh.f32 %v1605_v53  ;;  %v1427_v31 = vunpack.c.l.bf16 %v1424_v5  ;;  %v4789_v5 = vld [vmem:[#allocation17_spill] sm:$0xff] }
 0x500   :  { %3097 = vpow2.f32 %v2453_v37 }
 0x50a   :  { %v3094_v19 = vpop.eup %3093 }
 0x50b   :  { %v1615_v54 = vadd.f32 1.0, %v3094_v19  ;;  %v4781_v19 = vld [vmem:[#allocation6_spill] sm:$0xff] }
 0x50c   :  { %v3096_v36 = vpop.eup %3095 }
 0x50d   :  { %3099 = vrcp.f32 %v1615_v54  ;;  %v1608_v51 = vmul.f32 %v3096_v36, %v1607_v61  ;;  %v3098_v48 = vpop.eup %3097  ;;  %v4782_v54 = vld [vmem:[#allocation7_spill] sm:$0xff]  ;;  %v4783_v61 = vld [vmem:[#allocation13_spill] sm:$0xff]  ;;  %v4784_v36 = vld [vmem:[#allocation8_spill] sm:$0xff] }
 0x50e   :  { %v1622_v4 = vadd.f32 1.0, %v3098_v48  ;;  %v4788_v48 = vld [vmem:[#allocation11_spill] sm:$0xff] }
 0x50f   :  { %v4332_v0 = vadd.f32 %v1609_v25, %v1608_v51  ;;  %v4785_v51 = vld [vmem:[#allocation9_spill] sm:$0xff]  ;;  %v4786_v25 = vld [vmem:[#allocation16_spill] sm:$0xff] }
 0x510   :  { %3101 = vrcp.f32 %v1622_v4  ;;  %v4790_v4 = vld [vmem:[#allocation12_spill] sm:$0xff] }
 0x511   :  { %v1632_v56 = vpack.c.bf16 %v4332_v0, %v4332_v0 }
 0x513   :  { %2454 = vst [vmem:[%s4636_s6 + $0x10] sm:$0xf] %v1632_v56  ;;  %1683 = vmatmul.mubr.bf16.vlgmr.msra.gmra.mxu0 %v1632_v56  ;;  %2834 = vmatmul.mubr.bf16.vlgmr.msra.gmra.mxu1 %v1632_v56  ;;  %v4787_v56 = vld [vmem:[#allocation10_spill] sm:$0xff] }
 0x514   :  { %1732 = vmatpush1.bf16.msra.mxu0 %v3896_v21  ;;  %2838 = vmatpush3.bf16.msra.mxu1 %v4130_v10 }
 0x515   :  { %1733 = vmatprep.subr.bf16.mxu0 %v3903_v24  ;;  %2839 = vmatprep.subr.bf16.mxu1 %v4727_v32 }
 0x516   :  { %1763 = vmatprep.mubr.bf16.mxu0 %v4728_v60  ;;  %2853 = vmatprep.mubr.msk.bf16.mxu1 %vm3219_vm0, %v4727_v32 }
 0x518   :  { %1734 = vmatpush1.bf16.msra.mxu0 %v4141_v7  ;;  %2840 = vmatpush3.bf16.msra.mxu1 %v4147_v8 }
 0x519   :  { %1735 = vmatprep.subr.bf16.mxu0 %v4154_v27  ;;  %2841 = vmatprep.subr.bf16.mxu1 %v4727_v32 }
 0x51a   :  { %v3100_v13 = vpop.eup %3099 }
 0x51b   :  { %v1625_v59 = vmul.f32 %v3100_v13, %v1585_v18  ;;  %v2360_v18 = vld [vmem:[%s4630_s0 + $0x80] sm:$0xf] }
 0x51c   :  { %1736 = vmatpush1.bf16.msra.mxu0 %v4161_v2  ;;  %2842 = vmatpush3.bf16.msra.mxu1 %v4167_v28  ;;  %66 = vst [vmem:[#allocation4 + $0x44] sm:$0xf] %v2360_v18  ;;  %v2365_v13 = vld [vmem:[%s4631_s1 + $0x3c] sm:$0xff] }
 0x51d   :  { %v1626_v15 = vadd.f32 %v1625_v59, %v1427_v31  ;;  %1737 = vmatprep.subr.bf16.mxu0 %v4173_v52  ;;  %2843 = vmatprep.subr.bf16.mxu1 %v4727_v32  ;;  %v3102_v26 = vpop.eup %3101  ;;  %v4791_v31 = vld [vmem:[#allocation14_spill] sm:$0xff] }
 0x51e   :  { %v1628_v50 = vsub.f32 1.0, %v3102_v26  ;;  %v1630_v20 = vmul.f32 %v3102_v26, %v4254_v35  ;;  %v4780_v35 = vld [vmem:[#allocation22_spill] sm:$0xff]  ;;  %v4793_v26 = vld [vmem:[#allocation15_spill] sm:$0xff] }
 0x51f   :  { %3103 = vtanh.f32 %v1626_v15  ;;  %v2373_v59 = vld [vmem:[%s4631_s1 + $0x44] sm:$0xf]  ;;  %v4430_v15 = vld [vmem:[%s4630_s0 + $0x90] sm:$0xff] }
 0x520   :  { %1738 = vmatpush1.bf16.msra.mxu0 %v4180_v11  ;;  %2844 = vmatpush3.bf16.msra.mxu1 %v4186_v29  ;;  %125 = vst [vmem:[#allocation5 + $0x20] sm:$0xf] %v2373_v59  ;;  %4792 = vst [vmem:[#allocation24_spill] sm:$0xff] %v4430_v15  ;;  %v4795_v59 = vld [vmem:[#allocation21_spill] sm:$0xff] }
 0x521   :  { %1739 = vmatprep.subr.bf16.mxu0 %v4192_v30  ;;  %2845 = vmatprep.subr.bf16.mxu1 %v4727_v32 }
 0x524   :  { %1740 = vmatpush1.bf16.msra.mxu0 %v4199_v33  ;;  %2846 = vmatpush3.bf16.msra.mxu1 %v4205_v6 }
 0x525   :  { %1741 = vmatprep.subr.bf16.mxu0 %v4211_v34  ;;  %2847 = vmatprep.subr.bf16.mxu1 %v4727_v32 }
 0x528   :  { %1742 = vmatpush1.bf16.msra.mxu0 %v4218_v1  ;;  %2848 = vmatpush3.bf16.msra.mxu1 %v4224_v38 }
 0x529   :  { %1743 = vmatprep.subr.bf16.mxu0 %v4230_v63  ;;  %2849 = vmatprep.subr.bf16.mxu1 %v4727_v32 }
 0x52c   :  { %v3104_v49 = vpop.eup %3103  ;;  %1744 = vmatpush1.bf16.msra.mxu0 %v4237_v12  ;;  %2850 = vmatpush3.bf16.msra.mxu1 %v4777_v57 }
 0x52d   :  { %1745 = vmatprep.subr.bf16.mxu0 %v4249_v9  ;;  %2851 = vmatprep.subr.bf16.mxu1 %v4727_v32  ;;  %v1629_v53 = vmul.f32 %v3104_v49, %v1628_v50  ;;  %v1641_v50 = vunpack.c.l.bf16 %v4793_v26 }
 0x52f   :  { %v4372_v37 = vadd.f32 %v1630_v20, %v1629_v53  ;;  %v4794_v20 = vld [vmem:[#allocation20_spill] sm:$0xff] }
 0x530   :  { %1746 = vmatpush1.bf16.msra.mxu0 %v4259_v3  ;;  %2852 = vmatpush3.bf16.msra.mxu1 %v4265_v62 }
 0x531   :  { %v1635_v14 = vpack.c.bf16 %v4372_v37, %v4372_v37  ;;  %1872 = vmatprep.subr.bf16.mxu0 %v3817_v58  ;;  %2857 = vmatprep.subr.bf16.mxu1 %v4727_v32  ;;  %v4778_v58 = vld [vmem:[#allocation19_spill] sm:$0xff] }
 0x533   :  { %2455 = vst [vmem:[%s4637_s7 + $0xc] sm:$0xf] %v1635_v14  ;;  %1764 = vmatmul.mubr.bf16.vlgmr.msra.gmra.mxu0 %v1635_v14  ;;  %2854 = vmatmul.mubr.bf16.vlgmr.msra.gmra.mxu1 %v1635_v14 }
 0x534   :  { %1873 = vmatpush1.bf16.msra.mxu0 %v3827_v23  ;;  %2858 = vmatpush3.bf16.msra.mxu1 %v3951_v39  ;;  %v4779_v23 = vld [vmem:[#allocation23_spill] sm:$0xff] }
 0x535   :  { %1874 = vmatprep.subr.bf16.mxu0 %v3957_v40  ;;  %2859 = vmatprep.subr.bf16.mxu1 %v4727_v32 }
 0x536   :  { %1904 = vmatprep.mubr.bf16.mxu0 %v4728_v60  ;;  %2873 = vmatprep.mubr.msk.bf16.mxu1 %vm3219_vm0, %v4727_v32 }
 0x538   :  { %1875 = vmatpush1.bf16.msra.mxu0 %v3967_v41  ;;  %2860 = vmatpush3.bf16.msra.mxu1 %v3973_v42 }
 0x539   :  { %1876 = vmatprep.subr.bf16.mxu0 %v3979_v43  ;;  %2861 = vmatprep.subr.bf16.mxu1 %v4727_v32 }
 0x53c   :  { %1877 = vmatpush1.bf16.msra.mxu0 %v3986_v44  ;;  %2862 = vmatpush3.bf16.msra.mxu1 %v3992_v45 }
 0x53d   :  { %1878 = vmatprep.subr.bf16.mxu0 %v3998_v46  ;;  %2863 = vmatprep.subr.bf16.mxu1 %v4727_v32 }
 0x540   :  { %1879 = vmatpush1.bf16.msra.mxu0 %v4005_v47  ;;  %2864 = vmatpush3.bf16.msra.mxu1 %v4778_v58 }
 0x541   :  { %1880 = vmatprep.subr.bf16.mxu0 %v4779_v23  ;;  %2865 = vmatprep.subr.bf16.mxu1 %v4727_v32 }
 0x544   :  { %1881 = vmatpush1.bf16.msra.mxu0 %v4780_v35  ;;  %2866 = vmatpush3.bf16.msra.mxu1 %v4781_v19 }
 0x545   :  { %1882 = vmatprep.subr.bf16.mxu0 %v4782_v54  ;;  %2867 = vmatprep.subr.bf16.mxu1 %v4727_v32 }
 0x548   :  { %1883 = vmatpush1.bf16.msra.mxu0 %v4783_v61  ;;  %2868 = vmatpush3.bf16.msra.mxu1 %v4784_v36 }
 0x549   :  { %1884 = vmatprep.subr.bf16.mxu0 %v4785_v51  ;;  %2869 = vmatprep.subr.bf16.mxu1 %v4727_v32 }
 0x54c   :  { %1885 = vmatpush1.bf16.msra.mxu0 %v4786_v25  ;;  %2870 = vmatpush3.bf16.msra.mxu1 %v4787_v56  ;;  %v1642_v25 = vunpack.c.h.bf16 %v4793_v26 }
 0x54d   :  { %1886 = vmatprep.subr.bf16.mxu0 %v4788_v48  ;;  %2871 = vmatprep.subr.bf16.mxu1 %v4727_v32 }
 0x550   :  { %1887 = vmatpush1.bf16.msra.mxu0 %v4789_v5  ;;  %2872 = vmatpush3.bf16.msra.mxu1 %v4790_v4 }
 0x551   :  { %1953 = vmatprep.subr.bf16.mxu0 %v4791_v31  ;;  %2877 = vmatprep.subr.bf16.mxu1 %v4727_v32 }
 0x5d3   :  { %v1684_v49 = vpop.f32.mrf.mxu0  ;;  %v1725_v53 = vpop.f32.mrf.mxu1 }
 0x5d4   :  { %v1685_v14 = vadd.f32 %v1684_v49, %v4794_v20  ;;  %v1647_v20 = vunpack.c.l.bf16 %v2365_v13 }
 0x5d5   :  { %v1686_v18 = vpop.f32.mrf.mxu0  ;;  %v2835_v31 = vpop.f32.mrf.mxu1 }
 0x5d6   :  { %v1812_v4 = vadd.f32 %v1685_v14, %v1641_v50  ;;  %v1687_v51 = vadd.f32 %v1686_v18, %v4795_v59  ;;  %v1640_v31 = vld [vmem:[#allocation4 + $0x44] sm:$0xf] }
 0x5d7   :  { %v1688_v5 = vpop.f32.mrf.mxu0  ;;  %v1728_v48 = vpop.f32.mrf.mxu1  ;;  %v1643_v18 = vunpack.c.l.bf16 %v1640_v31 }
 0x5d8   :  { %v2456_v56 = vmul.f32 -1.442695, %v1812_v4  ;;  %v1819_v15 = vadd.f32 %v1687_v51, %v1642_v25  ;;  %v1648_v25 = vunpack.c.h.bf16 %v2365_v13 }
 0x5d9   :  { %v1689_v36 = vpop.f32.mrf.mxu0  ;;  %v2836_v61 = vpop.f32.mrf.mxu1 }
 0x5da   :  { %3105 = vpow2.f32 %v2456_v56  ;;  %v2457_v54 = vmul.f32 -1.442695, %v1819_v15  ;;  %v1726_v61 = vadd.f32 %v1725_v53, %v4744_v17 }
 0x5dc   :  { %3107 = vpow2.f32 %v2457_v54 }
 0x5e7   :  { %v3106_v19 = vpop.eup %3105 }
 0x5e8   :  { %v1816_v35 = vadd.f32 1.0, %v3106_v19 }
 0x5e9   :  { %v3108_v49 = vpop.eup %3107 }
 0x5ea   :  { %3109 = vrcp.f32 %v1816_v35  ;;  %v1823_v48 = vadd.f32 1.0, %v3108_v49 }
 0x5ec   :  { %3111 = vrcp.f32 %v1823_v48 }
 0x5f3   :  { %v1765_v50 = vpop.f32.mrf.mxu0  ;;  %v1806_v5 = vpop.f32.mrf.mxu1 }
 0x5f4   :  { %v1766_v4 = vadd.f32 %v1765_v50, %v4743_v22 }
 0x5f5   :  { %v1767_v26 = vpop.f32.mrf.mxu0  ;;  %v2855_v14 = vpop.f32.mrf.mxu1 }
 0x5f6   :  { %v1833_v36 = vadd.f32 %v1766_v4, %v1647_v20  ;;  %v1768_v15 = vadd.f32 %v1767_v26, %v3656_v55 }
 0x5f7   :  { %v3110_v51 = vpop.eup %3109  ;;  %v1769_v54 = vpop.f32.mrf.mxu0 }
 0x5f8   :  { %v1809_v56 = vpop.f32.mrf.mxu1  ;;  %v1826_v19 = vmul.f32 %v3110_v51, %v1726_v61  ;;  %v2458_v35 = vmul.f32 -1.442695, %v1833_v36  ;;  %v1840_v50 = vadd.f32 %v1768_v15, %v1648_v25 }
 0x5f9   :  { %v1770_v59 = vpop.f32.mrf.mxu0  ;;  %v3112_v31 = vpop.eup %3111 }
 0x5fa   :  { %v2856_v23 = vpop.f32.mrf.mxu1  ;;  %v1827_v49 = vadd.f32 %v1826_v19, %v1643_v18  ;;  %3113 = vpow2.f32 %v2458_v35  ;;  %v2459_v14 = vmul.f32 -1.442695, %v1840_v50  ;;  %v1829_v4 = vsub.f32 1.0, %v3112_v31  ;;  %v3213_v50 = vld [vmem:[%s4632_s2 + $0xac] ss:$12 sps:$4 sm:$0xff]  }
 0x5fb   :  { %v1831_v48 = vmul.f32 %v3112_v31, %v4332_v0  ;;  %v1646_v0 = vld [vmem:[#allocation5 + $0x20] sm:$0xf]  ;;  %v4807_v31 = vld [vmem:[#allocation12_spill] sm:$0xff] }
 0x5fc   :  { %3115 = vtanh.f32 %v1827_v49  ;;  %v1649_v18 = vunpack.c.l.bf16 %v1646_v0 }
 0x5fd   :  { %3117 = vpow2.f32 %v2459_v14  ;;  %v4806_v14 = vld [vmem:[#allocation17_spill] sm:$0xff] }
 0x607   :  { %v3114_v53 = vpop.eup %3113 }
 0x608   :  { %v1837_v20 = vadd.f32 1.0, %v3114_v53  ;;  %v4808_v53 = vld [vmem:[#allocation14_spill] sm:$0xff] }
 0x609   :  { %v3116_v13 = vpop.eup %3115 }
 0x60a   :  { %3119 = vrcp.f32 %v1837_v20  ;;  %v1830_v54 = vmul.f32 %v3116_v13, %v1829_v4  ;;  %v3118_v59 = vpop.eup %3117  ;;  %v2361_v20 = vld [vmem:[%s4630_s0 + $0x98] sm:$0xf]  ;;  %v2364_v4 = vld [vmem:[%s4631_s1 + $0x24] sm:$0xff]  ;;  %v2372_v13 = vld [vmem:[%s4631_s1 + $0x2c] sm:$0xf] }
 0x60b   :  { %v1844_v26 = vadd.f32 1.0, %v3118_v59  ;;  %68 = vst [vmem:[#allocation4 + $0x50] sm:$0xf] %v2361_v20  ;;  %123 = vst [vmem:[#allocation5 + $0x14] sm:$0xf] %v2372_v13 }
 0x60c   :  { %v4440_v61 = vadd.f32 %v1831_v48, %v1830_v54  ;;  %v4542_v54 = vld [vmem:[%s4630_s0 + $0xa8] sm:$0xff]  ;;  %v4809_v48 = vld [vmem:[#allocation24_spill] sm:$0xff] }
 0x60d   :  { %3121 = vrcp.f32 %v1844_v26  ;;  %v4810_v26 = vld [vmem:[#allocation20_spill] sm:$0xff] }
 0x60e   :  { %v1854_v23 = vpack.c.bf16 %v4440_v61, %v4440_v61 }
 0x610   :  { %2460 = vst [vmem:[%s4636_s6 + $0x14] sm:$0xf] %v1854_v23  ;;  %1905 = vmatmul.mubr.bf16.vlgmr.msra.gmra.mxu0 %v1854_v23  ;;  %2874 = vmatmul.mubr.bf16.vlgmr.msra.gmra.mxu1 %v1854_v23  ;;  %v1863_v23 = vunpack.c.l.bf16 %v4809_v48 }
 0x611   :  { %1954 = vmatpush1.bf16.msra.mxu0 %v3896_v21  ;;  %2878 = vmatpush3.bf16.msra.mxu1 %v4130_v10  ;;  %v1807_v21 = vadd.f32 %v1806_v5, %v3663_v16 }
 0x612   :  { %1955 = vmatprep.subr.bf16.mxu0 %v3903_v24  ;;  %2879 = vmatprep.subr.bf16.mxu1 %v4727_v32 }
 0x613   :  { %1985 = vmatprep.mubr.bf16.mxu0 %v4728_v60  ;;  %2893 = vmatprep.mubr.msk.bf16.mxu1 %vm3219_vm0, %v4727_v32 }
 0x615   :  { %1956 = vmatpush1.bf16.msra.mxu0 %v4141_v7  ;;  %2880 = vmatpush3.bf16.msra.mxu1 %v4147_v8 }
 0x616   :  { %1957 = vmatprep.subr.bf16.mxu0 %v4154_v27  ;;  %2881 = vmatprep.subr.bf16.mxu1 %v4727_v32 }
 0x617   :  { %v3120_v24 = vpop.eup %3119 }
 0x618   :  { %v1847_v36 = vmul.f32 %v3120_v24, %v1807_v21 }
 0x619   :  { %1958 = vmatpush1.bf16.msra.mxu0 %v4161_v2  ;;  %2882 = vmatpush3.bf16.msra.mxu1 %v4167_v28 }
 0x61a   :  { %v1848_v51 = vadd.f32 %v1847_v36, %v1649_v18  ;;  %1959 = vmatprep.subr.bf16.mxu0 %v4173_v52  ;;  %2883 = vmatprep.subr.bf16.mxu1 %v4727_v32  ;;  %v3122_v5 = vpop.eup %3121 }
 0x61b   :  { %v1850_v25 = vsub.f32 1.0, %v3122_v5  ;;  %v1852_v35 = vmul.f32 %v3122_v5, %v4372_v37  ;;  %v3214_v37 = vld [vmem:[%s4632_s2 + $0xa8] ss:$12 sps:$4 sm:$0xff]  }
 0x61c   :  { %3123 = vtanh.f32 %v1848_v51 }
 0x61d   :  { %1960 = vmatpush1.bf16.msra.mxu0 %v4180_v11  ;;  %2884 = vmatpush3.bf16.msra.mxu1 %v4186_v29 }
 0x61e   :  { %1961 = vmatprep.subr.bf16.mxu0 %v4192_v30  ;;  %2885 = vmatprep.subr.bf16.mxu1 %v4727_v32 }
 0x621   :  { %1962 = vmatpush1.bf16.msra.mxu0 %v4199_v33  ;;  %2886 = vmatpush3.bf16.msra.mxu1 %v4205_v6 }
 0x622   :  { %1963 = vmatprep.subr.bf16.mxu0 %v4211_v34  ;;  %2887 = vmatprep.subr.bf16.mxu1 %v4727_v32 }
 0x625   :  { %1964 = vmatpush1.bf16.msra.mxu0 %v4218_v1  ;;  %2888 = vmatpush3.bf16.msra.mxu1 %v4224_v38 }
 0x626   :  { %1965 = vmatprep.subr.bf16.mxu0 %v4230_v63  ;;  %2889 = vmatprep.subr.bf16.mxu1 %v4727_v32 }
 0x629   :  { %v3124_v56 = vpop.eup %3123  ;;  %1966 = vmatpush1.bf16.msra.mxu0 %v4237_v12  ;;  %2890 = vmatpush3.bf16.msra.mxu1 %v4777_v57 }
 0x62a   :  { %1967 = vmatprep.subr.bf16.mxu0 %v4249_v9  ;;  %2891 = vmatprep.subr.bf16.mxu1 %v4727_v32  ;;  %v1851_v19 = vmul.f32 %v3124_v56, %v1850_v25  ;;  %v1864_v56 = vunpack.c.h.bf16 %v4809_v48 }
 0x62c   :  { %v4480_v15 = vadd.f32 %v1852_v35, %v1851_v19  ;;  %v4811_v19 = vld [vmem:[#allocation21_spill] sm:$0xff] }
 0x62d   :  { %1968 = vmatpush1.bf16.msra.mxu0 %v4259_v3  ;;  %2892 = vmatpush3.bf16.msra.mxu1 %v4265_v62 }
 0x62e   :  { %v1857_v49 = vpack.c.bf16 %v4480_v15, %v4480_v15  ;;  %2093 = vmatprep.subr.bf16.mxu0 %v3213_v50  ;;  %2897 = vmatprep.subr.bf16.mxu1 %v4727_v32 }
 0x630   :  { %2461 = vst [vmem:[%s4637_s7 + $0x8] sm:$0xf] %v1857_v49  ;;  %1986 = vmatmul.mubr.bf16.vlgmr.msra.gmra.mxu0 %v1857_v49  ;;  %2894 = vmatmul.mubr.bf16.vlgmr.msra.gmra.mxu1 %v1857_v49 }
 0x631   :  { %2094 = vmatpush1.bf16.msra.mxu0 %v3214_v37  ;;  %2898 = vmatpush3.bf16.msra.mxu1 %v3951_v39  ;;  %v4796_v39 = vld [vmem:[#allocation23_spill] sm:$0xff] }
 0x632   :  { %2095 = vmatprep.subr.bf16.mxu0 %v3957_v40  ;;  %2899 = vmatprep.subr.bf16.mxu1 %v4727_v32  ;;  %v4797_v40 = vld [vmem:[#allocation22_spill] sm:$0xff] }
 0x633   :  { %2125 = vmatprep.mubr.bf16.mxu0 %v4728_v60  ;;  %2913 = vmatprep.mubr.msk.bf16.mxu1 %vm3219_vm0, %v4727_v32 }
 0x635   :  { %2096 = vmatpush1.bf16.msra.mxu0 %v3967_v41  ;;  %2900 = vmatpush3.bf16.msra.mxu1 %v3973_v42  ;;  %v4798_v41 = vld [vmem:[#allocation6_spill] sm:$0xff]  ;;  %v4799_v42 = vld [vmem:[#allocation7_spill] sm:$0xff] }
 0x636   :  { %2097 = vmatprep.subr.bf16.mxu0 %v3979_v43  ;;  %2901 = vmatprep.subr.bf16.mxu1 %v4727_v32  ;;  %v4800_v43 = vld [vmem:[#allocation13_spill] sm:$0xff] }
 0x639   :  { %2098 = vmatpush1.bf16.msra.mxu0 %v3986_v44  ;;  %2902 = vmatpush3.bf16.msra.mxu1 %v3992_v45  ;;  %v4801_v44 = vld [vmem:[#allocation8_spill] sm:$0xff]  ;;  %v4802_v45 = vld [vmem:[#allocation9_spill] sm:$0xff] }
 0x63a   :  { %2099 = vmatprep.subr.bf16.mxu0 %v3998_v46  ;;  %2903 = vmatprep.subr.bf16.mxu1 %v4727_v32  ;;  %v4803_v46 = vld [vmem:[#allocation16_spill] sm:$0xff] }
 0x63d   :  { %2100 = vmatpush1.bf16.msra.mxu0 %v4005_v47  ;;  %2904 = vmatpush3.bf16.msra.mxu1 %v4778_v58  ;;  %v4804_v47 = vld [vmem:[#allocation10_spill] sm:$0xff]  ;;  %v4805_v58 = vld [vmem:[#allocation11_spill] sm:$0xff] }
 0x63e   :  { %2101 = vmatprep.subr.bf16.mxu0 %v4796_v39  ;;  %2905 = vmatprep.subr.bf16.mxu1 %v4727_v32 }
 0x641   :  { %2102 = vmatpush1.bf16.msra.mxu0 %v4797_v40  ;;  %2906 = vmatpush3.bf16.msra.mxu1 %v4798_v41 }
 0x642   :  { %2103 = vmatprep.subr.bf16.mxu0 %v4799_v42  ;;  %2907 = vmatprep.subr.bf16.mxu1 %v4727_v32 }
 0x645   :  { %2104 = vmatpush1.bf16.msra.mxu0 %v4800_v43  ;;  %2908 = vmatpush3.bf16.msra.mxu1 %v4801_v44  ;;  %v1869_v43 = vunpack.c.l.bf16 %v2364_v4  ;;  %v1862_v44 = vld [vmem:[#allocation4 + $0x50] sm:$0xf] }
 0x646   :  { %2105 = vmatprep.subr.bf16.mxu0 %v4802_v45  ;;  %2909 = vmatprep.subr.bf16.mxu1 %v4727_v32 }
 0x649   :  { %2106 = vmatpush1.bf16.msra.mxu0 %v4803_v46  ;;  %2910 = vmatpush3.bf16.msra.mxu1 %v4804_v47 }
 0x64a   :  { %2107 = vmatprep.subr.bf16.mxu0 %v4805_v58  ;;  %2911 = vmatprep.subr.bf16.mxu1 %v4727_v32 }
 0x64d   :  { %2108 = vmatpush1.bf16.msra.mxu0 %v4806_v14  ;;  %2912 = vmatpush3.bf16.msra.mxu1 %v4807_v31 }
 0x64e   :  { %2174 = vmatprep.subr.bf16.mxu0 %v4808_v53  ;;  %2917 = vmatprep.subr.bf16.mxu1 %v4727_v32  ;;  %v1865_v53 = vunpack.c.l.bf16 %v1862_v44  ;;  %v3215_v44 = vld [vmem:[%s4633_s3 + $0xa8] ss:$12 sps:$4 sm:$0xff]  }
 0x6d0   :  { %v1906_v59 = vpop.f32.mrf.mxu0  ;;  %v1947_v0 = vpop.f32.mrf.mxu1 }
 0x6d1   :  { %v1907_v18 = vadd.f32 %v1906_v59, %v4810_v26  ;;  %v1948_v20 = vadd.f32 %v1947_v0, %v4744_v17 }
 0x6d2   :  { %v1908_v21 = vpop.f32.mrf.mxu0  ;;  %v2875_v24 = vpop.f32.mrf.mxu1 }
 0x6d3   :  { %v2034_v36 = vadd.f32 %v1907_v18, %v1863_v23  ;;  %v1909_v35 = vadd.f32 %v1908_v21, %v4811_v19  ;;  %v1870_v23 = vunpack.c.h.bf16 %v2364_v4 }
 0x6d4   :  { %v1910_v51 = vpop.f32.mrf.mxu0  ;;  %v1950_v5 = vpop.f32.mrf.mxu1 }
 0x6d5   :  { %v2462_v25 = vmul.f32 -1.442695, %v2034_v36  ;;  %v2041_v37 = vadd.f32 %v1909_v35, %v1864_v56 }
 0x6d6   :  { %v1911_v49 = vpop.f32.mrf.mxu0  ;;  %v2876_v50 = vpop.f32.mrf.mxu1 }
 0x6d7   :  { %3125 = vpow2.f32 %v2462_v25  ;;  %v2463_v39 = vmul.f32 -1.442695, %v2041_v37 }
 0x6d9   :  { %3127 = vpow2.f32 %v2463_v39 }
 0x6e4   :  { %v3126_v40 = vpop.eup %3125 }
 0x6e5   :  { %v2038_v41 = vadd.f32 1.0, %v3126_v40 }
 0x6e6   :  { %v3128_v42 = vpop.eup %3127 }
 0x6e7   :  { %3129 = vrcp.f32 %v2038_v41  ;;  %v2045_v47 = vadd.f32 1.0, %v3128_v42 }
 0x6e9   :  { %3131 = vrcp.f32 %v2045_v47 }
 0x6f0   :  { %v1987_v45 = vpop.f32.mrf.mxu0  ;;  %v2028_v46 = vpop.f32.mrf.mxu1 }
 0x6f1   :  { %v1988_v58 = vadd.f32 %v1987_v45, %v4743_v22  ;;  %v1868_v45 = vld [vmem:[#allocation5 + $0x14] sm:$0xf] }
 0x6f2   :  { %v1989_v14 = vpop.f32.mrf.mxu0  ;;  %v2895_v31 = vpop.f32.mrf.mxu1 }
 0x6f3   :  { %v2055_v13 = vadd.f32 %v1988_v58, %v1869_v43  ;;  %v1990_v36 = vadd.f32 %v1989_v14, %v3656_v55  ;;  %v1871_v58 = vunpack.c.l.bf16 %v1868_v45 }
 0x6f4   :  { %v3130_v48 = vpop.eup %3129  ;;  %v1991_v59 = vpop.f32.mrf.mxu0 }
 0x6f5   :  { %v2031_v18 = vpop.f32.mrf.mxu1  ;;  %v2048_v21 = vmul.f32 %v3130_v48, %v1948_v20  ;;  %v2464_v24 = vmul.f32 -1.442695, %v2055_v13  ;;  %v2062_v56 = vadd.f32 %v1990_v36, %v1870_v23 }
 0x6f6   :  { %v1992_v51 = vpop.f32.mrf.mxu0  ;;  %v3132_v49 = vpop.eup %3131 }
 0x6f7   :  { %v2896_v5 = vpop.f32.mrf.mxu1  ;;  %v2049_v25 = vadd.f32 %v2048_v21, %v1865_v53  ;;  %3133 = vpow2.f32 %v2464_v24  ;;  %v2465_v35 = vmul.f32 -1.442695, %v2062_v56  ;;  %v2051_v37 = vsub.f32 1.0, %v3132_v49 }
 0x6f8   :  { %v2053_v40 = vmul.f32 %v3132_v49, %v4440_v61  ;;  %v3216_v61 = vld [vmem:[%s4633_s3 + $0x94] ss:$12 sps:$4 sm:$0xff]  }
 0x6f9   :  { %3135 = vtanh.f32 %v2049_v25 }
 0x6fa   :  { %3137 = vpow2.f32 %v2465_v35 }
 0x704   :  { %v3134_v0 = vpop.eup %3133 }
 0x705   :  { %v2059_v50 = vadd.f32 1.0, %v3134_v0 }
 0x706   :  { %v3136_v4 = vpop.eup %3135 }
 0x707   :  { %3139 = vrcp.f32 %v2059_v50  ;;  %v2052_v39 = vmul.f32 %v3136_v4, %v2051_v37  ;;  %v3138_v43 = vpop.eup %3137 }
 0x708   :  { %v2066_v47 = vadd.f32 1.0, %v3138_v43 }
 0x709   :  { %v4552_v41 = vadd.f32 %v2053_v40, %v2052_v39 }
 0x70a   :  { %3141 = vrcp.f32 %v2066_v47 }
 0x70b   :  { %v2076_v42 = vpack.c.bf16 %v4552_v41, %v4552_v41 }
 0x70d   :  { %2466 = vst [vmem:[%s4636_s6 + $0x18] sm:$0xf] %v2076_v42  ;;  %2126 = vmatmul.mubr.bf16.vlgmr.msra.gmra.mxu0 %v2076_v42  ;;  %2914 = vmatmul.mubr.bf16.vlgmr.msra.gmra.mxu1 %v2076_v42 }
 0x70e   :  { %2175 = vmatpush1.bf16.msra.mxu0 %v3215_v44  ;;  %2918 = vmatpush3.bf16.msra.mxu1 %v4130_v10  ;;  %v2029_v10 = vadd.f32 %v2028_v46, %v3663_v16 }
 0x70f   :  { %2176 = vmatprep.subr.bf16.mxu0 %v3216_v61  ;;  %2919 = vmatprep.subr.bf16.mxu1 %v4727_v32 }
 0x710   :  { %2206 = vmatprep.mubr.bf16.mxu0 %v4728_v60  ;;  %2933 = vmatprep.mubr.msk.bf16.mxu1 %vm3219_vm0, %v4727_v32 }
 0x712   :  { %2177 = vmatpush1.bf16.msra.mxu0 %v4141_v7  ;;  %2920 = vmatpush3.bf16.msra.mxu1 %v4147_v8 }
 0x713   :  { %2178 = vmatprep.subr.bf16.mxu0 %v4154_v27  ;;  %2921 = vmatprep.subr.bf16.mxu1 %v4727_v32 }
 0x714   :  { %v3140_v14 = vpop.eup %3139 }
 0x715   :  { %v2069_v31 = vmul.f32 %v3140_v14, %v2029_v10 }
 0x716   :  { %2179 = vmatpush1.bf16.msra.mxu0 %v4161_v2  ;;  %2922 = vmatpush3.bf16.msra.mxu1 %v4167_v28 }
 0x717   :  { %v2070_v60 = vadd.f32 %v2069_v31, %v1871_v58  ;;  %2180 = vmatprep.subr.bf16.mxu0 %v4173_v52  ;;  %2923 = vmatprep.subr.bf16.mxu1 %v4727_v32  ;;  %v3142_v7 = vpop.eup %3141 }
 0x718   :  { %v2072_v8 = vsub.f32 1.0, %v3142_v7  ;;  %v2074_v28 = vmul.f32 %v3142_v7, %v4480_v15 }
 0x719   :  { %3143 = vtanh.f32 %v2070_v60 }
 0x71a   :  { %2181 = vmatpush1.bf16.msra.mxu0 %v4180_v11  ;;  %2924 = vmatpush3.bf16.msra.mxu1 %v4186_v29  ;;  %v2363_v29 = vld [vmem:[%s4631_s1 + $0xc] sm:$0xff] }
 0x71b   :  { %2182 = vmatprep.subr.bf16.mxu0 %v4192_v30  ;;  %2925 = vmatprep.subr.bf16.mxu1 %v4727_v32  ;;  %v2371_v30 = vld [vmem:[%s4631_s1 + $0x14] sm:$0xf]  ;;  %v2090_v59 = vunpack.c.l.bf16 %v2363_v29  ;;  %v2091_v49 = vunpack.c.h.bf16 %v2363_v29 }
 0x71c   :  { %121 = vst [vmem:[#allocation5 + $0x8] sm:$0xf] %v2371_v30 }
 0x71e   :  { %2183 = vmatpush1.bf16.msra.mxu0 %v4199_v33  ;;  %2926 = vmatpush3.bf16.msra.mxu1 %v4205_v6  ;;  %v2085_v33 = vunpack.c.l.bf16 %v4542_v54 }
 0x71f   :  { %2184 = vmatprep.subr.bf16.mxu0 %v4211_v34  ;;  %2927 = vmatprep.subr.bf16.mxu1 %v4727_v32 }
 0x722   :  { %2185 = vmatpush1.bf16.msra.mxu0 %v4218_v1  ;;  %2928 = vmatpush3.bf16.msra.mxu1 %v4224_v38 }
 0x723   :  { %2186 = vmatprep.subr.bf16.mxu0 %v4230_v63  ;;  %2929 = vmatprep.subr.bf16.mxu1 %v4727_v32  ;;  %v2089_v7 = vld [vmem:[#allocation5 + $0x8] sm:$0xf] }
 0x726   :  { %v3144_v27 = vpop.eup %3143  ;;  %2187 = vmatpush1.bf16.msra.mxu0 %v4237_v12  ;;  %2930 = vmatpush3.bf16.msra.mxu1 %v4777_v57  ;;  %v2086_v57 = vunpack.c.h.bf16 %v4542_v54 }
 0x727   :  { %2188 = vmatprep.subr.bf16.mxu0 %v4249_v9  ;;  %2931 = vmatprep.subr.bf16.mxu1 %v4727_v32  ;;  %v2073_v2 = vmul.f32 %v3144_v27, %v2072_v8  ;;  %v2362_v32 = vld [vmem:[%s4630_s0 + $0xb0] sm:$0xf]  ;;  %v2092_v27 = vunpack.c.l.bf16 %v2089_v7 }
 0x728   :  { %70 = vst [vmem:[#allocation4 + $0x5c] sm:$0xf] %v2362_v32 }
 0x729   :  { %v4596_v52 = vadd.f32 %v2074_v28, %v2073_v2 }
 0x72a   :  { %2189 = vmatpush1.bf16.msra.mxu0 %v4259_v3  ;;  %2932 = vmatpush3.bf16.msra.mxu1 %v4265_v62 }
 0x72b   :  { %v2079_v11 = vpack.c.bf16 %v4596_v52, %v4596_v52 }
 0x72d   :  { %2467 = vst [vmem:[%s4637_s7 + $0x4] sm:$0xf] %v2079_v11  ;;  %2207 = vmatmul.mubr.bf16.vlgmr.msra.gmra.mxu0 %v2079_v11  ;;  %2934 = vmatmul.mubr.bf16.vlgmr.msra.gmra.mxu1 %v2079_v11 }
 0x72f   :  { %v2084_v18 = vld [vmem:[#allocation4 + $0x5c] sm:$0xf] }
 0x7cd   :  { %v2127_v6 = vpop.f32.mrf.mxu0  ;;  %v2168_v34 = vpop.f32.mrf.mxu1 }
 0x7ce   :  { %v2128_v1 = vadd.f32 %v2127_v6, %v4810_v26  ;;  %v2169_v25 = vadd.f32 %v2168_v34, %v4744_v17 }
 0x7cf   :  { %v2129_v38 = vpop.f32.mrf.mxu0  ;;  %v2915_v63 = vpop.f32.mrf.mxu1 }
 0x7d0   :  { %v2255_v12 = vadd.f32 %v2128_v1, %v2085_v33  ;;  %v2130_v15 = vadd.f32 %v2129_v38, %v4811_v19  ;;  %v2087_v19 = vunpack.c.l.bf16 %v2084_v18 }
 0x7d1   :  { %v2131_v62 = vpop.f32.mrf.mxu0  ;;  %v2171_v9 = vpop.f32.mrf.mxu1 }
 0x7d2   :  { %v2468_v3 = vmul.f32 -1.442695, %v2255_v12  ;;  %v2262_v20 = vadd.f32 %v2130_v15, %v2086_v57 }
 0x7d3   :  { %v2132_v46 = vpop.f32.mrf.mxu0  ;;  %v2916_v53 = vpop.f32.mrf.mxu1 }
 0x7d4   :  { %3145 = vpow2.f32 %v2468_v3  ;;  %v2469_v13 = vmul.f32 -1.442695, %v2262_v20 }
 0x7d6   :  { %3147 = vpow2.f32 %v2469_v13 }
 0x7e1   :  { %v3146_v48 = vpop.eup %3145 }
 0x7e2   :  { %v2259_v23 = vadd.f32 1.0, %v3146_v48 }
 0x7e3   :  { %v3148_v26 = vpop.eup %3147 }
 0x7e4   :  { %3149 = vrcp.f32 %v2259_v23  ;;  %v2266_v36 = vadd.f32 1.0, %v3148_v26 }
 0x7e6   :  { %3151 = vrcp.f32 %v2266_v36 }
 0x7ed   :  { %v2208_v21 = vpop.f32.mrf.mxu0  ;;  %v2249_v24 = vpop.f32.mrf.mxu1 }
 0x7ee   :  { %v2209_v51 = vadd.f32 %v2208_v21, %v4743_v22  ;;  %v2250_v2 = vadd.f32 %v2249_v24, %v3663_v16 }
 0x7ef   :  { %v2210_v54 = vpop.f32.mrf.mxu0  ;;  %v2935_v5 = vpop.f32.mrf.mxu1 }
 0x7f0   :  { %v2276_v56 = vadd.f32 %v2209_v51, %v2090_v59  ;;  %v2211_v39 = vadd.f32 %v2210_v54, %v3656_v55 }
 0x7f1   :  { %v3150_v35 = vpop.eup %3149  ;;  %v2212_v0 = vpop.f32.mrf.mxu0 }
 0x7f2   :  { %v2252_v50 = vpop.f32.mrf.mxu1  ;;  %v2269_v37 = vmul.f32 %v3150_v35, %v2169_v25  ;;  %v2470_v4 = vmul.f32 -1.442695, %v2276_v56  ;;  %v2283_v22 = vadd.f32 %v2211_v39, %v2091_v49 }
 0x7f3   :  { %v2213_v40 = vpop.f32.mrf.mxu0  ;;  %v3152_v61 = vpop.eup %3151 }
 0x7f4   :  { %v2936_v42 = vpop.f32.mrf.mxu1  ;;  %v2270_v43 = vadd.f32 %v2269_v37, %v2087_v19  ;;  %3153 = vpow2.f32 %v2470_v4  ;;  %v2471_v44 = vmul.f32 -1.442695, %v2283_v22  ;;  %v2272_v45 = vsub.f32 1.0, %v3152_v61 }
 0x7f5   :  { %v2274_v14 = vmul.f32 %v3152_v61, %v4552_v41 }
 0x7f6   :  { %3155 = vtanh.f32 %v2270_v43 }
 0x7f7   :  { %3157 = vpow2.f32 %v2471_v44 }
 0x801   :  { %v3154_v17 = vpop.eup %3153 }
 0x802   :  { %v2280_v47 = vadd.f32 1.0, %v3154_v17 }
 0x803   :  { %v3156_v58 = vpop.eup %3155 }
 0x804   :  { %v2273_v10 = vmul.f32 %v3156_v58, %v2272_v45  ;;  %3159 = vrcp.f32 %v2280_v47  ;;  %v3158_v55 = vpop.eup %3157 }
 0x805   :  { %v2287_v8 = vadd.f32 1.0, %v3158_v55 }
 0x806   :  { %v2275_v31 = vadd.f32 %v2274_v14, %v2273_v10 }
 0x807   :  { %3161 = vrcp.f32 %v2287_v8 }
 0x808   :  { %v2297_v60 = vpack.c.bf16 %v2275_v31, %v2275_v31 }
 0x80a   :  { %2472 = vst [vmem:[%s4636_s6 + $0x1c] sm:$0xf] %v2297_v60 }
 0x811   :  { %v3160_v28 = vpop.eup %3159 }
 0x812   :  { %v2290_v11 = vmul.f32 %v3160_v28, %v2250_v2 }
 0x814   :  { %v2291_v32 = vadd.f32 %v2290_v11, %v2092_v27  ;;  %v3162_v29 = vpop.eup %3161 }
 0x815   :  { %v2293_v41 = vsub.f32 1.0, %v3162_v29  ;;  %v2295_v6 = vmul.f32 %v3162_v29, %v4596_v52 }
 0x816   :  { %3163 = vtanh.f32 %v2291_v32 }
 0x823   :  { %v3164_v30 = vpop.eup %3163 }
 0x824   :  { %v2294_v33 = vmul.f32 %v3164_v30, %v2293_v41 }
 0x826   :  { %v2296_v34 = vadd.f32 %v2295_v6, %v2294_v33 }
 0x828   :  { %v2300_v1 = vpack.c.bf16 %v2296_v34, %v2296_v34 }
 0x82a   :  { %2301 = vst [vmem:[%s4637_s7] sm:$0xf] %v2300_v1 }

</bundles_post_ra>
